<compile_context>
chip_gen: v7x
topology: tpu7x:2x2x1
jax: 0.10.0
libtpu: 0.0.40
codegen_flags: <defaults>
</compile_context>

<pallas_src>
import jax
import jax.numpy as jnp
from jax.experimental import pallas as pl
from jax.experimental.pallas import tpu as pltpu

NEG_SLOPE = 0.01  # PyTorch nn.LeakyReLU default


def _round_up(x, m):
    return ((x + m - 1) // m) * m


def _leaky_relu(x):
    # slope in (0, 1): max(x, a*x) == where(x > 0, x, a*x)
    return jnp.maximum(x, NEG_SLOPE * x)


def _vmem_capacity_bytes():
    try:
        return int(pltpu.get_tpu_info().vmem_capacity_bytes)
    except Exception:
        return 64 << 20  # conservative (v7x-sized) fallback


def _mlp_kernel(x_ref,
                w1_ref, b1_ref,
                w2_ref, b2_ref,
                w3_ref, b3_ref,
                w4_ref, b4_ref,
                o_ref):
    # x streamed in its source dtype (f32 on the no-copy path); one in-register
    # cast to bf16 for the MXU.
    x = x_ref[...].astype(jnp.bfloat16)                          # (TILE_B, D_pad)

    h = jnp.dot(x, w1_ref[...], preferred_element_type=jnp.float32) + b1_ref[...]
    h = _leaky_relu(h)

    h = jnp.dot(h.astype(jnp.bfloat16), w2_ref[...],
                preferred_element_type=jnp.float32) + b2_ref[...]
    h = _leaky_relu(h)

    h = jnp.dot(h.astype(jnp.bfloat16), w3_ref[...],
                preferred_element_type=jnp.float32) + b3_ref[...]
    h = _leaky_relu(h)                                           # (TILE_B, H_pad) f32

    # Final H -> 1 layer as a plain (TILE_B, H) @ (H, 1) matmul: no transposed
    # (minor-dim) contraction, so no XLU relayout of the activation tile.  The
    # (TILE_B, 1) masked store costs only tile_b*4 bytes per grid step.
    z = jnp.dot(h.astype(jnp.bfloat16), w4_ref[...],
                preferred_element_type=jnp.float32) + b4_ref[...]  # (TILE_B, 1)

    # Sigmoid; exp overflow for very negative z saturates cleanly to 0.0.
    o_ref[...] = (1.0 / (1.0 + jnp.exp(-z))).astype(o_ref.dtype)


def _pad2(a, rows, cols, dtype):
    a = jnp.asarray(a, dtype)
    pr, pc = rows - a.shape[0], cols - a.shape[1]
    if pr or pc:
        a = jnp.pad(a, ((0, pr), (0, pc)))
    return a


def linear_discriminator_forward(x, params):
    """x: (B, D) or (B, ...) flattened to (B, -1). Returns (B, 1) float32."""
    if x.ndim != 2:
        x = x.reshape(x.shape[0], -1)
    B, D = x.shape

    (w1, b1), (w2, b2), (w3, b3), (w4, b4) = params
    H = w1.shape[1]
    D_pad = _round_up(D, 128)
    H_pad = _round_up(H, 128)

    # ---- input: avoid the wrapper-side pad/cast copy whenever possible --------
    if D == D_pad:
        x_in = x                     # stream as-is; cast to bf16 inside the kernel
    else:
        # Padding D is unavoidable; since we're copying anyway, also cast to bf16
        # to halve the kernel's HBM read traffic.
        x_in = jnp.pad(x.astype(jnp.bfloat16), ((0, 0), (0, D_pad - D)))
    x_itemsize = jnp.dtype(x_in.dtype).itemsize

    # ---- generation-aware batch tile ------------------------------------------
    # Per-x-buffer budget ~ VMEM/8: ~16 MiB on v5e/v6e (128 MiB), ~8 MiB on v7x.
    # NOTE: for very large D (D_pad >= ~8192) a K-tiled variant would be needed to
    # keep the double-buffered x tile inside v7x's 64 MiB; not required here.
    vmem_cap = _vmem_capacity_bytes()
    x_buf_budget = vmem_cap // 8
    bytes_per_row = D_pad * x_itemsize
    tile_cap = max(128, min(4096, (x_buf_budget // bytes_per_row) // 128 * 128))
    b_ceil = _round_up(B, 128)
    tile_b = min(tile_cap, b_ceil)
    # v7x has 2 TensorCores sharing the chip: if the whole batch fits one tile but
    # is big enough to split, use two tiles so both cores get work.
    if tile_b == b_ceil and b_ceil >= 256:
        tile_b = _round_up(b_ceil // 2, 128)
    grid = (pl.cdiv(B, tile_b),)

    # ---- weights: zero-pad the tiny operands to full-lane shapes (exact) ------
    w1p = _pad2(w1, D_pad, H_pad, jnp.bfloat16)
    b1p = _pad2(jnp.asarray(b1).reshape(1, -1), 1, H_pad, jnp.float32)
    w2p = _pad2(w2, H_pad, H_pad, jnp.bfloat16)
    b2p = _pad2(jnp.asarray(b2).reshape(1, -1), 1, H_pad, jnp.float32)
    w3p = _pad2(w3, H_pad, H_pad, jnp.bfloat16)
    b3p = _pad2(jnp.asarray(b3).reshape(1, -1), 1, H_pad, jnp.float32)
    w4p = _pad2(w4, H_pad, 1, jnp.bfloat16)                    # (H_pad, 1) column
    b4p = jnp.asarray(b4, jnp.float32).reshape(1, 1)

    # ---- VMEM budget for the compiler (sized to the real working set) ---------
    x_bufs = 2 * tile_b * D_pad * x_itemsize                   # double-buffered x
    w_bufs = 2 * ((D_pad * H_pad + 2 * H_pad * H_pad + H_pad) * 2
                  + (3 * H_pad + 1) * 4)                       # weights (worst case 2x)
    act_bufs = 6 * tile_b * H_pad * 4                          # f32 h + bf16 temps
    out_bufs = 2 * tile_b * 4
    working_set = x_bufs + w_bufs + act_bufs + out_bufs
    vmem_limit = min(max(32 << 20, int(1.5 * working_set) + (4 << 20)),
                     int(0.9 * vmem_cap))

    def run(single_buffer_weights):
        resident_kwargs = (
            dict(pipeline_mode=pl.Buffered(1)) if single_buffer_weights else {})
        const = lambda i: (0, 0)
        in_specs = [
            pl.BlockSpec((tile_b, D_pad), lambda i: (i, 0)),          # x (streamed)
            pl.BlockSpec((D_pad, H_pad), const, **resident_kwargs),  # w1 (resident)
            pl.BlockSpec((1, H_pad), const, **resident_kwargs),      # b1
            pl.BlockSpec((H_pad, H_pad), const, **resident_kwargs),  # w2
            pl.BlockSpec((1, H_pad), const, **resident_kwargs),      # b2
            pl.BlockSpec((H_pad, H_pad), const, **resident_kwargs),  # w3
            pl.BlockSpec((1, H_pad), const, **resident_kwargs),      # b3
            pl.BlockSpec((H_pad, 1), const, **resident_kwargs),      # w4 column
            pl.BlockSpec((1, 1), const, **resident_kwargs),          # b4
        ]
        out_specs = pl.BlockSpec((tile_b, 1), lambda i: (i, 0))
        return pl.pallas_call(
            _mlp_kernel,
            out_shape=jax.ShapeDtypeStruct((B, 1), jnp.float32),
            grid=grid,
            in_specs=in_specs,
            out_specs=out_specs,
            compiler_params=pltpu.CompilerParams(
                dimension_semantics=("parallel",),
                vmem_limit_bytes=vmem_limit),
        )(x_in, w1p, b1p, w2p, b2p, w3p, b3p, w4p, b4p)

    try:
        # Resident operands never change block index -> single-buffer them
        # (halves their VMEM footprint; matters for large D and on v7x).
        out = run(single_buffer_weights=True)
    except Exception:
        # pipeline_mode=pl.Buffered(1) not supported on this jax/libtpu version:
        # fall back to default double-buffering (cheap here -- weights are tiny).
        out = run(single_buffer_weights=False)
    return out


def init_params(key, input_dim, hidden_size=50):
    """PyTorch-Linear-style init; weights stored as (in, out), biases (1, out)."""
    dims = [(input_dim, hidden_size),
            (hidden_size, hidden_size),
            (hidden_size, hidden_size),
            (hidden_size, 1)]
    params = []
    for (fan_in, fan_out) in dims:
        key, kw, kb = jax.random.split(key, 3)
        bound = 1.0 / jnp.sqrt(jnp.float32(fan_in))
        w = jax.random.uniform(kw, (fan_in, fan_out), jnp.float32, -bound, bound)
        b = jax.random.uniform(kb, (1, fan_out), jnp.float32, -bound, bound)
        params.append((w, b))
    return params


def _reference_forward(x, params):
    """Pure-JAX reference mirroring the kernel math (bf16 MXU inputs, f32 accum)."""
    if x.ndim != 2:
        x = x.reshape(x.shape[0], -1)
    h = x.astype(jnp.float32)
    (w1, b1), (w2, b2), (w3, b3), (w4, b4) = params
    for (w, b) in ((w1, b1), (w2, b2), (w3, b3)):
        h = jnp.dot(h.astype(jnp.bfloat16), w.astype(jnp.bfloat16),
                    preferred_element_type=jnp.float32) + b
        h = jnp.maximum(h, NEG_SLOPE * h)
    z = jnp.dot(h.astype(jnp.bfloat16), w4.astype(jnp.bfloat16),
                preferred_element_type=jnp.float32) + b4
    return 1.0 / (1.0 + jnp.exp(-z))


if __name__ == "__main__":
    key = jax.random.PRNGKey(0)
    k_in, k_par = jax.random.split(key)

    # NCHW-style input (2, 4, 16, 16) -> flattened D = 1024 (multiple of 128).
    B, C, H, W = 2, 4, 16, 16
    input_dim = C * H * W
    hidden_size = 50

    x = jax.random.normal(k_in, (B, C, H, W), jnp.float32)
    params = init_params(k_par, input_dim, hidden_size)

    out = jax.block_until_ready(linear_discriminator_forward(x, params))
    ref = _reference_forward(x, params)

    assert out.shape == (B, 1), out.shape
    assert bool(jnp.all(jnp.isfinite(out))), out
    assert jnp.allclose(out, ref, atol=5e-3, rtol=5e-3), (out, ref)

    print("KERNEL_OK")
</pallas_src>

<mosaic_0001>
module attributes {stable_mosaic.version = 11 : i64} {
  func.func @_mlp_kernel(%arg0: i32, %arg1: memref<128x1024xf32, #tpu.memory_space<vmem>>, %arg2: memref<1024x128xbf16, #tpu.memory_space<vmem>>, %arg3: memref<1x128xf32, #tpu.memory_space<vmem>>, %arg4: memref<128x128xbf16, #tpu.memory_space<vmem>>, %arg5: memref<1x128xf32, #tpu.memory_space<vmem>>, %arg6: memref<128x128xbf16, #tpu.memory_space<vmem>>, %arg7: memref<1x128xf32, #tpu.memory_space<vmem>>, %arg8: memref<128x1xbf16, #tpu.memory_space<vmem>>, %arg9: memref<1x1xf32, #tpu.memory_space<vmem>>, %arg10: memref<128x1xf32, #tpu.memory_space<vmem>>) attributes {dimension_semantics = [#tpu.dimension_semantics<parallel>], iteration_bounds = array<i64: 1>, scalar_prefetch = 0 : i64, scratch_operands = 0 : i64, tpu.core_type = #tpu.core_type<tc>, window_params = [{transform_indices = @transform_0, window_bounds = array<i64: 128, 1024>}, {pipeline_mode = #tpu.pipeline_mode<synchronous>, transform_indices = @transform_1, window_bounds = array<i64: 1024, 128>}, {pipeline_mode = #tpu.pipeline_mode<synchronous>, transform_indices = @transform_2, window_bounds = array<i64: 1, 128>}, {pipeline_mode = #tpu.pipeline_mode<synchronous>, transform_indices = @transform_3, window_bounds = array<i64: 128, 128>}, {pipeline_mode = #tpu.pipeline_mode<synchronous>, transform_indices = @transform_4, window_bounds = array<i64: 1, 128>}, {pipeline_mode = #tpu.pipeline_mode<synchronous>, transform_indices = @transform_5, window_bounds = array<i64: 128, 128>}, {pipeline_mode = #tpu.pipeline_mode<synchronous>, transform_indices = @transform_6, window_bounds = array<i64: 1, 128>}, {pipeline_mode = #tpu.pipeline_mode<synchronous>, transform_indices = @transform_7, window_bounds = array<i64: 128, 1>}, {pipeline_mode = #tpu.pipeline_mode<synchronous>, transform_indices = @transform_8, window_bounds = array<i64: 1, 1>}, {transform_indices = @transform_9, window_bounds = array<i64: 128, 1>}]} {
    %c0 = arith.constant 0 : index
    %c0_0 = arith.constant 0 : index
    %0 = vector.load %arg1[%c0, %c0_0] : memref<128x1024xf32, #tpu.memory_space<vmem>>, vector<128x1024xf32>
    %1 = arith.truncf %0 : vector<128x1024xf32> to vector<128x1024xbf16>
    %c0_1 = arith.constant 0 : index
    %c0_2 = arith.constant 0 : index
    %2 = vector.load %arg2[%c0_1, %c0_2] : memref<1024x128xbf16, #tpu.memory_space<vmem>>, vector<1024x128xbf16>
    %cst = arith.constant dense<0.000000e+00> : vector<128x128xf32>
    %3 = tpu.matmul %1, %2, %cst {dimension_numbers = #tpu.dot_dimension_numbers<[1], [0], [0], [1], [0, 0, 1, 1], [], []>} : vector<128x1024xbf16>, vector<1024x128xbf16>, vector<128x128xf32> -> vector<128x128xf32>
    %c0_3 = arith.constant 0 : index
    %c0_4 = arith.constant 0 : index
    %4 = vector.load %arg3[%c0_3, %c0_4] : memref<1x128xf32, #tpu.memory_space<vmem>>, vector<1x128xf32>
    %5 = vector.broadcast %4 : vector<1x128xf32> to vector<128x128xf32>
    %6 = arith.addf %3, %5 : vector<128x128xf32>
    %cst_5 = arith.constant 0.00999999977 : f32
    %7 = vector.broadcast %cst_5 : f32 to vector<128x128xf32>
    %8 = arith.mulf %7, %6 : vector<128x128xf32>
    %9 = arith.maximumf %6, %8 : vector<128x128xf32>
    %10 = arith.truncf %9 : vector<128x128xf32> to vector<128x128xbf16>
    %c0_6 = arith.constant 0 : index
    %c0_7 = arith.constant 0 : index
    %11 = vector.load %arg4[%c0_6, %c0_7] : memref<128x128xbf16, #tpu.memory_space<vmem>>, vector<128x128xbf16>
    %cst_8 = arith.constant dense<0.000000e+00> : vector<128x128xf32>
    %12 = tpu.matmul %10, %11, %cst_8 {dimension_numbers = #tpu.dot_dimension_numbers<[1], [0], [0], [1], [0, 0, 1, 1], [], []>} : vector<128x128xbf16>, vector<128x128xbf16>, vector<128x128xf32> -> vector<128x128xf32>
    %c0_9 = arith.constant 0 : index
    %c0_10 = arith.constant 0 : index
    %13 = vector.load %arg5[%c0_9, %c0_10] : memref<1x128xf32, #tpu.memory_space<vmem>>, vector<1x128xf32>
    %14 = vector.broadcast %13 : vector<1x128xf32> to vector<128x128xf32>
    %15 = arith.addf %12, %14 : vector<128x128xf32>
    %cst_11 = arith.constant 0.00999999977 : f32
    %16 = vector.broadcast %cst_11 : f32 to vector<128x128xf32>
    %17 = arith.mulf %16, %15 : vector<128x128xf32>
    %18 = arith.maximumf %15, %17 : vector<128x128xf32>
    %19 = arith.truncf %18 : vector<128x128xf32> to vector<128x128xbf16>
    %c0_12 = arith.constant 0 : index
    %c0_13 = arith.constant 0 : index
    %20 = vector.load %arg6[%c0_12, %c0_13] : memref<128x128xbf16, #tpu.memory_space<vmem>>, vector<128x128xbf16>
    %cst_14 = arith.constant dense<0.000000e+00> : vector<128x128xf32>
    %21 = tpu.matmul %19, %20, %cst_14 {dimension_numbers = #tpu.dot_dimension_numbers<[1], [0], [0], [1], [0, 0, 1, 1], [], []>} : vector<128x128xbf16>, vector<128x128xbf16>, vector<128x128xf32> -> vector<128x128xf32>
    %c0_15 = arith.constant 0 : index
    %c0_16 = arith.constant 0 : index
    %22 = vector.load %arg7[%c0_15, %c0_16] : memref<1x128xf32, #tpu.memory_space<vmem>>, vector<1x128xf32>
    %23 = vector.broadcast %22 : vector<1x128xf32> to vector<128x128xf32>
    %24 = arith.addf %21, %23 : vector<128x128xf32>
    %cst_17 = arith.constant 0.00999999977 : f32
    %25 = vector.broadcast %cst_17 : f32 to vector<128x128xf32>
    %26 = arith.mulf %25, %24 : vector<128x128xf32>
    %27 = arith.maximumf %24, %26 : vector<128x128xf32>
    %28 = arith.truncf %27 : vector<128x128xf32> to vector<128x128xbf16>
    %c0_18 = arith.constant 0 : index
    %c0_19 = arith.constant 0 : index
    %29 = vector.load %arg8[%c0_18, %c0_19] : memref<128x1xbf16, #tpu.memory_space<vmem>>, vector<128x1xbf16>
    %cst_20 = arith.constant dense<0.000000e+00> : vector<128x1xf32>
    %30 = tpu.matmul %28, %29, %cst_20 {dimension_numbers = #tpu.dot_dimension_numbers<[1], [0], [0], [1], [0, 0, 1, 1], [], []>} : vector<128x128xbf16>, vector<128x1xbf16>, vector<128x1xf32> -> vector<128x1xf32>
    %c0_21 = arith.constant 0 : index
    %c0_22 = arith.constant 0 : index
    %31 = vector.load %arg9[%c0_21, %c0_22] : memref<1x1xf32, #tpu.memory_space<vmem>>, vector<1x1xf32>
    %32 = vector.broadcast %31 : vector<1x1xf32> to vector<128x1xf32>
    %33 = arith.addf %30, %32 : vector<128x1xf32>
    %cst_23 = arith.constant 0.000000e+00 : f32
    %34 = vector.broadcast %cst_23 : f32 to vector<128x1xf32>
    %35 = arith.subf %34, %33 : vector<128x1xf32>
    %36 = math.exp %35 : vector<128x1xf32>
    %cst_24 = arith.constant 1.000000e+00 : f32
    %37 = vector.broadcast %cst_24 : f32 to vector<128x1xf32>
    %38 = arith.addf %37, %36 : vector<128x1xf32>
    %cst_25 = arith.constant 1.000000e+00 : f32
    %39 = vector.broadcast %cst_25 : f32 to vector<128x1xf32>
    %40 = arith.divf %39, %38 : vector<128x1xf32>
    %c0_26 = arith.constant 0 : index
    %c0_27 = arith.constant 0 : index
    %41 = vector.load %arg10[%c0_26, %c0_27] : memref<128x1xf32, #tpu.memory_space<vmem>>, vector<128x1xf32>
    tpu.vector_store %arg10[%c0_26, %c0_27], %40 {strides = array<i32>} : memref<128x1xf32, #tpu.memory_space<vmem>>, vector<128x1xf32>,
    return
  }
  func.func @transform_0(%arg0: i32) -> (i32, i32) {
    %c0_i32 = arith.constant 0 : i32
    %c0_i32_0 = arith.constant 0 : i32
    return %arg0, %c0_i32 : i32, i32
  }
  func.func @transform_1(%arg0: i32) -> (i32, i32) {
    %c0_i32 = arith.constant 0 : i32
    %c0_i32_0 = arith.constant 0 : i32
    %c0_i32_1 = arith.constant 0 : i32
    return %c0_i32, %c0_i32_0 : i32, i32
  }
  func.func @transform_2(%arg0: i32) -> (i32, i32) {
    %c0_i32 = arith.constant 0 : i32
    %c0_i32_0 = arith.constant 0 : i32
    %c0_i32_1 = arith.constant 0 : i32
    return %c0_i32, %c0_i32_0 : i32, i32
  }
  func.func @transform_3(%arg0: i32) -> (i32, i32) {
    %c0_i32 = arith.constant 0 : i32
    %c0_i32_0 = arith.constant 0 : i32
    %c0_i32_1 = arith.constant 0 : i32
    return %c0_i32, %c0_i32_0 : i32, i32
  }
  func.func @transform_4(%arg0: i32) -> (i32, i32) {
    %c0_i32 = arith.constant 0 : i32
    %c0_i32_0 = arith.constant 0 : i32
    %c0_i32_1 = arith.constant 0 : i32
    return %c0_i32, %c0_i32_0 : i32, i32
  }
  func.func @transform_5(%arg0: i32) -> (i32, i32) {
    %c0_i32 = arith.constant 0 : i32
    %c0_i32_0 = arith.constant 0 : i32
    %c0_i32_1 = arith.constant 0 : i32
    return %c0_i32, %c0_i32_0 : i32, i32
  }
  func.func @transform_6(%arg0: i32) -> (i32, i32) {
    %c0_i32 = arith.constant 0 : i32
    %c0_i32_0 = arith.constant 0 : i32
    %c0_i32_1 = arith.constant 0 : i32
    return %c0_i32, %c0_i32_0 : i32, i32
  }
  func.func @transform_7(%arg0: i32) -> (i32, i32) {
    %c0_i32 = arith.constant 0 : i32
    %c0_i32_0 = arith.constant 0 : i32
    %c0_i32_1 = arith.constant 0 : i32
    return %c0_i32, %c0_i32_0 : i32, i32
  }
  func.func @transform_8(%arg0: i32) -> (i32, i32) {
    %c0_i32 = arith.constant 0 : i32
    %c0_i32_0 = arith.constant 0 : i32
    %c0_i32_1 = arith.constant 0 : i32
    return %c0_i32, %c0_i32_0 : i32, i32
  }
  func.func @transform_9(%arg0: i32) -> (i32, i32) {
    %c0_i32 = arith.constant 0 : i32
    %c0_i32_0 = arith.constant 0 : i32
    return %arg0, %c0_i32 : i32, i32
  }
}

module attributes {stable_mosaic.version = 11 : i64} {
  func.func @_mlp_kernel(%arg0: i32, %arg1: memref<128x1024xf32, #tpu.memory_space<vmem>>, %arg2: memref<1024x128xbf16, #tpu.memory_space<vmem>>, %arg3: memref<1x128xf32, #tpu.memory_space<vmem>>, %arg4: memref<128x128xbf16, #tpu.memory_space<vmem>>, %arg5: memref<1x128xf32, #tpu.memory_space<vmem>>, %arg6: memref<128x128xbf16, #tpu.memory_space<vmem>>, %arg7: memref<1x128xf32, #tpu.memory_space<vmem>>, %arg8: memref<128x1xbf16, #tpu.memory_space<vmem>>, %arg9: memref<1x1xf32, #tpu.memory_space<vmem>>, %arg10: memref<128x1xf32, #tpu.memory_space<vmem>>) attributes {dimension_semantics = [#tpu.dimension_semantics<parallel>], iteration_bounds = array<i64: 1>, scalar_prefetch = 0 : i64, scratch_operands = 0 : i64, tpu.core_type = #tpu.core_type<tc>, window_params = [{transform_indices = @transform_0, window_bounds = array<i64: 128, 1024>}, {pipeline_mode = #tpu.pipeline_mode<synchronous>, transform_indices = @transform_1, window_bounds = array<i64: 1024, 128>}, {pipeline_mode = #tpu.pipeline_mode<synchronous>, transform_indices = @transform_2, window_bounds = array<i64: 1, 128>}, {pipeline_mode = #tpu.pipeline_mode<synchronous>, transform_indices = @transform_3, window_bounds = array<i64: 128, 128>}, {pipeline_mode = #tpu.pipeline_mode<synchronous>, transform_indices = @transform_4, window_bounds = array<i64: 1, 128>}, {pipeline_mode = #tpu.pipeline_mode<synchronous>, transform_indices = @transform_5, window_bounds = array<i64: 128, 128>}, {pipeline_mode = #tpu.pipeline_mode<synchronous>, transform_indices = @transform_6, window_bounds = array<i64: 1, 128>}, {pipeline_mode = #tpu.pipeline_mode<synchronous>, transform_indices = @transform_7, window_bounds = array<i64: 128, 1>}, {pipeline_mode = #tpu.pipeline_mode<synchronous>, transform_indices = @transform_8, window_bounds = array<i64: 1, 1>}, {transform_indices = @transform_9, window_bounds = array<i64: 128, 1>}]} {
    %c0 = arith.constant 0 : index
    %c0_0 = arith.constant 0 : index
    %0 = vector.load %arg1[%c0, %c0_0] : memref<128x1024xf32, #tpu.memory_space<vmem>>, vector<128x1024xf32>
    %1 = arith.truncf %0 : vector<128x1024xf32> to vector<128x1024xbf16>
    %c0_1 = arith.constant 0 : index
    %c0_2 = arith.constant 0 : index
    %2 = vector.load %arg2[%c0_1, %c0_2] : memref<1024x128xbf16, #tpu.memory_space<vmem>>, vector<1024x128xbf16>
    %cst = arith.constant dense<0.000000e+00> : vector<128x128xf32>
    %3 = tpu.matmul %1, %2, %cst {dimension_numbers = #tpu.dot_dimension_numbers<[1], [0], [0], [1], [0, 0, 1, 1], [], []>} : vector<128x1024xbf16>, vector<1024x128xbf16>, vector<128x128xf32> -> vector<128x128xf32>
    %c0_3 = arith.constant 0 : index
    %c0_4 = arith.constant 0 : index
    %4 = vector.load %arg3[%c0_3, %c0_4] : memref<1x128xf32, #tpu.memory_space<vmem>>, vector<1x128xf32>
    %5 = vector.broadcast %4 : vector<1x128xf32> to vector<128x128xf32>
    %6 = arith.addf %3, %5 : vector<128x128xf32>
    %cst_5 = arith.constant 0.00999999977 : f32
    %7 = vector.broadcast %cst_5 : f32 to vector<128x128xf32>
    %8 = arith.mulf %7, %6 : vector<128x128xf32>
    %9 = arith.maximumf %6, %8 : vector<128x128xf32>
    %10 = arith.truncf %9 : vector<128x128xf32> to vector<128x128xbf16>
    %c0_6 = arith.constant 0 : index
    %c0_7 = arith.constant 0 : index
    %11 = vector.load %arg4[%c0_6, %c0_7] : memref<128x128xbf16, #tpu.memory_space<vmem>>, vector<128x128xbf16>
    %cst_8 = arith.constant dense<0.000000e+00> : vector<128x128xf32>
    %12 = tpu.matmul %10, %11, %cst_8 {dimension_numbers = #tpu.dot_dimension_numbers<[1], [0], [0], [1], [0, 0, 1, 1], [], []>} : vector<128x128xbf16>, vector<128x128xbf16>, vector<128x128xf32> -> vector<128x128xf32>
    %c0_9 = arith.constant 0 : index
    %c0_10 = arith.constant 0 : index
    %13 = vector.load %arg5[%c0_9, %c0_10] : memref<1x128xf32, #tpu.memory_space<vmem>>, vector<1x128xf32>
    %14 = vector.broadcast %13 : vector<1x128xf32> to vector<128x128xf32>
    %15 = arith.addf %12, %14 : vector<128x128xf32>
    %cst_11 = arith.constant 0.00999999977 : f32
    %16 = vector.broadcast %cst_11 : f32 to vector<128x128xf32>
    %17 = arith.mulf %16, %15 : vector<128x128xf32>
    %18 = arith.maximumf %15, %17 : vector<128x128xf32>
    %19 = arith.truncf %18 : vector<128x128xf32> to vector<128x128xbf16>
    %c0_12 = arith.constant 0 : index
    %c0_13 = arith.constant 0 : index
    %20 = vector.load %arg6[%c0_12, %c0_13] : memref<128x128xbf16, #tpu.memory_space<vmem>>, vector<128x128xbf16>
    %cst_14 = arith.constant dense<0.000000e+00> : vector<128x128xf32>
    %21 = tpu.matmul %19, %20, %cst_14 {dimension_numbers = #tpu.dot_dimension_numbers<[1], [0], [0], [1], [0, 0, 1, 1], [], []>} : vector<128x128xbf16>, vector<128x128xbf16>, vector<128x128xf32> -> vector<128x128xf32>
    %c0_15 = arith.constant 0 : index
    %c0_16 = arith.constant 0 : index
    %22 = vector.load %arg7[%c0_15, %c0_16] : memref<1x128xf32, #tpu.memory_space<vmem>>, vector<1x128xf32>
    %23 = vector.broadcast %22 : vector<1x128xf32> to vector<128x128xf32>
    %24 = arith.addf %21, %23 : vector<128x128xf32>
    %cst_17 = arith.constant 0.00999999977 : f32
    %25 = vector.broadcast %cst_17 : f32 to vector<128x128xf32>
    %26 = arith.mulf %25, %24 : vector<128x128xf32>
    %27 = arith.maximumf %24, %26 : vector<128x128xf32>
    %28 = arith.truncf %27 : vector<128x128xf32> to vector<128x128xbf16>
    %c0_18 = arith.constant 0 : index
    %c0_19 = arith.constant 0 : index
    %29 = vector.load %arg8[%c0_18, %c0_19] : memref<128x1xbf16, #tpu.memory_space<vmem>>, vector<128x1xbf16>
    %cst_20 = arith.constant dense<0.000000e+00> : vector<128x1xf32>
    %30 = tpu.matmul %28, %29, %cst_20 {dimension_numbers = #tpu.dot_dimension_numbers<[1], [0], [0], [1], [0, 0, 1, 1], [], []>} : vector<128x128xbf16>, vector<128x1xbf16>, vector<128x1xf32> -> vector<128x1xf32>
    %c0_21 = arith.constant 0 : index
    %c0_22 = arith.constant 0 : index
    %31 = vector.load %arg9[%c0_21, %c0_22] : memref<1x1xf32, #tpu.memory_space<vmem>>, vector<1x1xf32>
    %32 = vector.broadcast %31 : vector<1x1xf32> to vector<128x1xf32>
    %33 = arith.addf %30, %32 : vector<128x1xf32>
    %cst_23 = arith.constant 0.000000e+00 : f32
    %34 = vector.broadcast %cst_23 : f32 to vector<128x1xf32>
    %35 = arith.subf %34, %33 : vector<128x1xf32>
    %36 = math.exp %35 : vector<128x1xf32>
    %cst_24 = arith.constant 1.000000e+00 : f32
    %37 = vector.broadcast %cst_24 : f32 to vector<128x1xf32>
    %38 = arith.addf %37, %36 : vector<128x1xf32>
    %cst_25 = arith.constant 1.000000e+00 : f32
    %39 = vector.broadcast %cst_25 : f32 to vector<128x1xf32>
    %40 = arith.divf %39, %38 : vector<128x1xf32>
    %c0_26 = arith.constant 0 : index
    %c0_27 = arith.constant 0 : index
    %41 = vector.load %arg10[%c0_26, %c0_27] : memref<128x1xf32, #tpu.memory_space<vmem>>, vector<128x1xf32>
    tpu.vector_store %arg10[%c0_26, %c0_27], %40 {strides = array<i32>} : memref<128x1xf32, #tpu.memory_space<vmem>>, vector<128x1xf32>,
    return
  }
  func.func @transform_0(%arg0: i32) -> (i32, i32) {
    %c0_i32 = arith.constant 0 : i32
    %c0_i32_0 = arith.constant 0 : i32
    return %arg0, %c0_i32 : i32, i32
  }
  func.func @transform_1(%arg0: i32) -> (i32, i32) {
    %c0_i32 = arith.constant 0 : i32
    %c0_i32_0 = arith.constant 0 : i32
    %c0_i32_1 = arith.constant 0 : i32
    return %c0_i32, %c0_i32_0 : i32, i32
  }
  func.func @transform_2(%arg0: i32) -> (i32, i32) {
    %c0_i32 = arith.constant 0 : i32
    %c0_i32_0 = arith.constant 0 : i32
    %c0_i32_1 = arith.constant 0 : i32
    return %c0_i32, %c0_i32_0 : i32, i32
  }
  func.func @transform_3(%arg0: i32) -> (i32, i32) {
    %c0_i32 = arith.constant 0 : i32
    %c0_i32_0 = arith.constant 0 : i32
    %c0_i32_1 = arith.constant 0 : i32
    return %c0_i32, %c0_i32_0 : i32, i32
  }
  func.func @transform_4(%arg0: i32) -> (i32, i32) {
    %c0_i32 = arith.constant 0 : i32
    %c0_i32_0 = arith.constant 0 : i32
    %c0_i32_1 = arith.constant 0 : i32
    return %c0_i32, %c0_i32_0 : i32, i32
  }
  func.func @transform_5(%arg0: i32) -> (i32, i32) {
    %c0_i32 = arith.constant 0 : i32
    %c0_i32_0 = arith.constant 0 : i32
    %c0_i32_1 = arith.constant 0 : i32
    return %c0_i32, %c0_i32_0 : i32, i32
  }
  func.func @transform_6(%arg0: i32) -> (i32, i32) {
    %c0_i32 = arith.constant 0 : i32
    %c0_i32_0 = arith.constant 0 : i32
    %c0_i32_1 = arith.constant 0 : i32
    return %c0_i32, %c0_i32_0 : i32, i32
  }
  func.func @transform_7(%arg0: i32) -> (i32, i32) {
    %c0_i32 = arith.constant 0 : i32
    %c0_i32_0 = arith.constant 0 : i32
    %c0_i32_1 = arith.constant 0 : i32
    return %c0_i32, %c0_i32_0 : i32, i32
  }
  func.func @transform_8(%arg0: i32) -> (i32, i32) {
    %c0_i32 = arith.constant 0 : i32
    %c0_i32_0 = arith.constant 0 : i32
    %c0_i32_1 = arith.constant 0 : i32
    return %c0_i32, %c0_i32_0 : i32, i32
  }
  func.func @transform_9(%arg0: i32) -> (i32, i32) {
    %c0_i32 = arith.constant 0 : i32
    %c0_i32_0 = arith.constant 0 : i32
    return %arg0, %c0_i32 : i32, i32
  }
}

</mosaic_0001>

<bundles_post_ra>
// kernel: tpu_custom_call.1
= control target key start
LH: loop header
LB: loop body
LE: loop exit
PB: predicated region body
PF: predicated region fallthrough
CT: control target
= control target key end

     0   :  { %s5088_s0 = inlined_call_operand.vmem [shape: f32[2,1024], index: 0, kind: input, shape index: {}]   ;;  %s5089_s1 = inlined_call_operand.hbm [shape: bf16[1024,128], index: 1, kind: input, shape index: {}]   ;;  %s5090_s2 = inlined_call_operand.hbm [shape: f32[1,128], index: 2, kind: input, shape index: {}]   ;;  %s5091_s3 = inlined_call_operand.vmem [shape: bf16[128,128], index: 3, kind: input, shape index: {}]   ;;  %s5092_s4 = inlined_call_operand.vmem [shape: f32[1,128], index: 4, kind: input, shape index: {}]   ;;  %s5093_s5 = inlined_call_operand.hbm [shape: bf16[128,128], index: 5, kind: input, shape index: {}]   ;;  %s5094_s6 = inlined_call_operand.vmem [shape: f32[1,128], index: 6, kind: input, shape index: {}]   ;;  %s5095_s7 = inlined_call_operand.vmem [shape: bf16[128,1], index: 7, kind: input, shape index: {}]   ;;  %s5096_s8 = inlined_call_operand.<no memory space> [shape: f32[1,1], index: 8, kind: input, shape index: {}]   ;;  %s5097_s9 = inlined_call_operand.vmem [shape: f32[2,1], index: 9, kind: output, shape index: {}]  }
   0x1   :  { %v14_v0 = vstv %s5096_s8 }
   0x2   :  { %15 = vst [vmem:[#allocation2] sm:$0x1] %v14_v0 }
   0x3   :  { %16 = vsyncpa [#allocation4], 0 }
   0x4   :  { %17 = vsyncpa [#allocation6], 0  ;;  %s4287_s11 = smov [#allocation5]   ;;  %s4288_s13 = smov [#allocation3]  }
   0x5   :  { %s38_s12 = sshll.u32 %s4287_s11, 4  ;;  %s25_s14 = sshll.u32 %s4288_s13, 4  ;;  %s39_s12 = int_to_ptr.vmem [resolvable:$true] %s38_s12  ;;  %s4346_s14 = int_to_ptr.vmem [resolvable:$true] %s25_s14 }
   0x6   :  { %s4217_s17 = scalar_lea.hbm %s5090_s2, 16 }
   0x7   :  { %p4218_p0 = scmp.ne.s32.totalorder %s5090_s2, %s4217_s17  ;;  %p4221_p1 = scmp.lt.u32.totalorder %s4217_s17, %s5090_s2 }
   0x9   :  { %p4223_p2 = pnand %p4221_p1, %p4218_p0 }
   0xb   :  { %4226 = shalt.err (!%p4223_p2)
}
   0xc   :  { %s4227_s21 = scalar_lea.vmem %s39_s12, 16  ;;  %s4231_s22 = scalar_lea.vmem %s39_s12, 32 }
   0xd   :  { %p4228_p3 = scmp.ne.s32.totalorder %s39_s12, %s4227_s21  ;;  %p4232_p4 = scmp.lt.s32.totalorder %s39_s12, %s39_s12 }
   0xe   :  { %p4233_p5 = scmp.lt.s32.totalorder %s4231_s22, %s4227_s21 }
  0x10   :  { %p4234_p6 = por %p4233_p5, %p4232_p4 }
  0x12   :  { %p4235_p7 = pnand %p4234_p6, %p4228_p3 }
  0x14   :  { %4238 = shalt.err (!%p4235_p7)
}
  0x15   :  { %41 = dma.hbm_to_vmem [thread:$0]  %s5090_s2, 16, %s39_s12, [#allocation6]  }
  0x16   :  { %s4239_s27 = scalar_lea.hbm %s5089_s1, 8192 }
  0x17   :  { %p4240_p8 = scmp.ne.s32.totalorder %s5089_s1, %s4239_s27  ;;  %p4243_p9 = scmp.lt.u32.totalorder %s4239_s27, %s5089_s1 }
  0x19   :  { %p4245_p10 = pnand %p4243_p9, %p4240_p8 }
  0x1b   :  { %4248 = shalt.err (!%p4245_p10)
}
  0x1c   :  { %s4249_s11 = scalar_lea.vmem %s4346_s14, 8192  ;;  %p4254_p12 = scmp.lt.s32.totalorder %s4346_s14, %s4346_s14 }
  0x1d   :  { %p4250_p11 = scmp.ne.s32.totalorder %s4346_s14, %s4249_s11  ;;  %p4255_p13 = scmp.lt.s32.totalorder %s4249_s11, %s4249_s11 }
  0x1f   :  { %p4256_p0 = por %p4255_p13, %p4254_p12 }
  0x21   :  { %p4257_p1 = pnand %p4256_p0, %p4250_p11 }
  0x23   :  { %4260 = shalt.err (!%p4257_p1)
}
  0x24   :  { %s4289_s2 = smov 64   ;;  %s4290_s12 = smov 4  }
  0x25   :  { %31 = dma.hbm_to_vmem [thread:$0]  %s5089_s1, 8192, %s4346_s14, [#allocation4], %s4289_s2, %s4289_s2, %s4290_s12  }
  0x26   :  { %s4291_s16 = smov [#allocation7]   ;;  %s4261_s20 = scalar_lea.hbm %s5093_s5, 1024 }
  0x27   :  { %s51_s17 = sshll.u32 %s4291_s16, 4  ;;  %p4262_p2 = scmp.ne.s32.totalorder %s5093_s5, %s4261_s20  ;;  %s52_s17 = int_to_ptr.vmem [resolvable:$true] %s51_s17 }
  0x28   :  { %p4265_p3 = scmp.lt.u32.totalorder %s4261_s20, %s5093_s5 }
  0x2a   :  { %p4267_p4 = pnand %p4265_p3, %p4262_p2 }
  0x2c   :  { %4270 = shalt.err (!%p4267_p4)
}
  0x2d   :  { %s4271_s24 = scalar_lea.vmem %s52_s17, 1024  ;;  %p4276_p6 = scmp.lt.s32.totalorder %s52_s17, %s52_s17 }
  0x2e   :  { %p4272_p5 = scmp.ne.s32.totalorder %s52_s17, %s4271_s24  ;;  %p4277_p7 = scmp.lt.s32.totalorder %s4271_s24, %s4271_s24 }
  0x30   :  { %p4278_p8 = por %p4277_p7, %p4276_p6 }
  0x32   :  { %p4279_p9 = pnand %p4278_p8, %p4272_p5 }
  0x34   :  { %4282 = shalt.err (!%p4279_p9)
}
  0x35   :  { %57 = dma.hbm_to_vmem [thread:$0]  %s5093_s5, 1024, %s52_s17, [#allocation6], %s4289_s2, %s4289_s2, %s4290_s12  }
  0x36   :  { %4283 = dma.done.wait [#allocation4], 8192  }
  0x37   :  { %4284 = vsyncadd [#allocation4], 4294959104 }
  0x38   :  { %4285 = dma.done.wait [#allocation6], 1040  }
  0x39   :  { %4286 = vsyncadd [#allocation6], 4294966256  ;;  %v3873_v1 = vld [vmem:[#allocation3 + $0x40] sm:$0xff]   ;;  %v3877_v5 = vld [vmem:[#allocation3 + $0x48] sm:$0xff]   ;;  %v4292_v26 = vmov 1983009808   ;;  %v337_v28 = vlaneseq }
  0x3a   :  { %v3874_v2 = vld [vmem:[#allocation3 + $0xc0] sm:$0xff]   ;;  %3451 = vmatprep.subr.bf16.mxu0 %v3873_v1  ;;  %v3878_v6 = vld [vmem:[#allocation3 + $0xc8] sm:$0xff]   ;;  %v3881_v9 = vld [vmem:[#allocation3 + $0x50] sm:$0xff]   ;;  %v335_v27 = vunpack.c.l.s4 %v4292_v26  ;;  %vm3301_vm0 = vcmask 7168  }
  0x3b   :  { %v3875_v3 = vld [vmem:[#allocation3] sm:$0xff]   ;;  %3515 = vmatprep.subr.bf16.mxu1 %v3874_v2  ;;  %v3879_v7 = vld [vmem:[#allocation3 + $0x8] sm:$0xff]   ;;  %v3882_v10 = vld [vmem:[#allocation3 + $0xd0] sm:$0xff]   ;;  %v338_v34 = vshrl.u32 %v337_v28, 7 }
  0x3c   :  { %v3876_v4 = vld [vmem:[#allocation3 + $0x80] sm:$0xff]   ;;  %3452 = vmatpush3.bf16.msra.mxu0 %v3875_v3  ;;  %v3880_v8 = vld [vmem:[#allocation3 + $0x88] sm:$0xff]   ;;  %v3883_v11 = vld [vmem:[#allocation3 + $0x10] sm:$0xff]   ;;  %v336_v33 = vunpack.c.0.s8 %v335_v27 }
  0x3d   :  { %3516 = vmatpush3.bf16.msra.mxu1 %v3876_v4  ;;  %3453 = vmatprep.subr.bf16.mxu0 %v3877_v5  ;;  %v3884_v12 = vld [vmem:[#allocation3 + $0x90] sm:$0xff]   ;;  %v3885_v13 = vld [vmem:[#allocation3 + $0x58] sm:$0xff]   ;;  %v3889_v17 = vld [vmem:[#allocation3 + $0x60] sm:$0xff]  }
  0x3e   :  { %3517 = vmatprep.subr.bf16.mxu1 %v3878_v6  ;;  %v3886_v14 = vld [vmem:[#allocation3 + $0xd8] sm:$0xff]   ;;  %v3890_v18 = vld [vmem:[#allocation3 + $0xe0] sm:$0xff]   ;;  %v3893_v21 = vld [vmem:[#allocation3 + $0x68] sm:$0xff]   ;;  %v4389_v38 = vsub.s32 %v336_v33, %v338_v34 }
  0x3f   :  { %v3887_v15 = vld [vmem:[#allocation3 + $0x18] sm:$0xff]   ;;  %v3891_v19 = vld [vmem:[#allocation3 + $0x20] sm:$0xff]   ;;  %v3894_v22 = vld [vmem:[#allocation3 + $0xe8] sm:$0xff]  }
  0x40   :  { %3454 = vmatpush3.bf16.msra.mxu0 %v3879_v7  ;;  %v3888_v16 = vld [vmem:[#allocation3 + $0x98] sm:$0xff]   ;;  %v3892_v20 = vld [vmem:[#allocation3 + $0xa0] sm:$0xff]   ;;  %v3895_v23 = vld [vmem:[#allocation3 + $0x28] sm:$0xff]  }
  0x41   :  { %3518 = vmatpush3.bf16.msra.mxu1 %v3880_v8  ;;  %3455 = vmatprep.subr.bf16.mxu0 %v3881_v9  ;;  %v3896_v24 = vld [vmem:[#allocation3 + $0xa8] sm:$0xff]   ;;  %v3897_v25 = vld [vmem:[#allocation3 + $0x70] sm:$0xff]   ;;  %v3901_v32 = vld [vmem:[#allocation3 + $0x78] sm:$0xff]  }
  0x42   :  { %3519 = vmatprep.subr.bf16.mxu1 %v3882_v10  ;;  %v3898_v29 = vld [vmem:[#allocation3 + $0xf0] sm:$0xff]   ;;  %v3902_v35 = vld [vmem:[#allocation3 + $0xf8] sm:$0xff]   ;;  %v3917_v54 = vld [vmem:[#allocation3 + $0x140] sm:$0xff]  }
  0x43   :  { %v3899_v30 = vld [vmem:[#allocation3 + $0x30] sm:$0xff]   ;;  %v3903_v36 = vld [vmem:[#allocation3 + $0x38] sm:$0xff]   ;;  %v3918_v59 = vld [vmem:[#allocation3 + $0x100] sm:$0xff]  }
  0x44   :  { %3456 = vmatpush3.bf16.msra.mxu0 %v3883_v11  ;;  %v3900_v31 = vld [vmem:[#allocation3 + $0xb0] sm:$0xff]   ;;  %v3904_v37 = vld [vmem:[#allocation3 + $0xb8] sm:$0xff]   ;;  %v3919_v63 = vld [vmem:[#allocation3 + $0x1c0] sm:$0xff]  }
  0x45   :  { %3520 = vmatpush3.bf16.msra.mxu1 %v3884_v12  ;;  %3457 = vmatprep.subr.bf16.mxu0 %v3885_v13  ;;  %v3905_v39 = vld [vmem:[%s5088_s0] ss:$16 sps:$4 sm:$0xff]   ;;  %v3913_v44 = vld [vmem:[%s5088_s0 + $0x4] ss:$16 sps:$4 sm:$0xff]  }
  0x46   :  { %3521 = vmatprep.subr.bf16.mxu1 %v3886_v14  ;;  %v3907_v40 = vld [vmem:[%s5088_s0 + $0x20] ss:$16 sps:$4 sm:$0xff]   ;;  %v340_v43 = vrot.slane %v3905_v39, %v4389_v38  ;;  %v3914_v45 = vld [vmem:[%s5088_s0 + $0x24] ss:$16 sps:$4 sm:$0xff]   ;;  %v347_v51 = vrot.slane %v3913_v44, %v4389_v38 }
  0x47   :  { %v3909_v41 = vld [vmem:[%s5088_s0 + $0x40] ss:$16 sps:$4 sm:$0xff]   ;;  %v3915_v46 = vld [vmem:[%s5088_s0 + $0x44] ss:$16 sps:$4 sm:$0xff]   ;;  %v354_v47 = vrot.slane %v3907_v40, %v4389_v38  ;;  %v361_v52 = vrot.slane %v3914_v45, %v4389_v38 }
  0x48   :  { %3458 = vmatpush3.bf16.msra.mxu0 %v3887_v15  ;;  %v3911_v42 = vld [vmem:[%s5088_s0 + $0x60] ss:$16 sps:$4 sm:$0xff]   ;;  %v412_v48 = vrot.slane %v3909_v41, %v4389_v38  ;;  %v3916_v50 = vld [vmem:[%s5088_s0 + $0x64] ss:$16 sps:$4 sm:$0xff]   ;;  %v419_v53 = vrot.slane %v3915_v46, %v4389_v38 }
  0x49   :  { %3522 = vmatpush3.bf16.msra.mxu1 %v3888_v16  ;;  %3459 = vmatprep.subr.bf16.mxu0 %v3889_v17  ;;  %v426_v49 = vrot.slane %v3911_v42, %v4389_v38  ;;  %v363_v55 = vcombine.high %v340_v43, %v354_v47  ;;  %v433_v57 = vrot.slane %v3916_v50, %v4389_v38  ;;  %v3920_v3 = vld [vmem:[#allocation3 + $0x180] sm:$0xff]   ;;  %v3934_v26 = vld [vmem:[#allocation3 + $0x108] sm:$0xff]  }
  0x4a   :  { %3523 = vmatprep.subr.bf16.mxu1 %v3890_v18  ;;  %v362_v58 = vcombine.low %v340_v43, %v354_v47  ;;  %v365_v60 = vcombine.high %v347_v51, %v361_v52  ;;  %v364_v62 = vcombine.low %v347_v51, %v361_v52  ;;  %v3921_v7 = vld [vmem:[%s5088_s0 + $0x80] ss:$16 sps:$4 sm:$0xff]   ;;  %v3929_v11 = vld [vmem:[%s5088_s0 + $0x84] ss:$16 sps:$4 sm:$0xff]  }
  0x4b   :  { %v435_v56 = vcombine.high %v412_v48, %v426_v49  ;;  %v434_v61 = vcombine.low %v412_v48, %v426_v49  ;;  %v437_v1 = vcombine.high %v419_v53, %v433_v57  ;;  %v436_v2 = vcombine.low %v419_v53, %v433_v57  ;;  %v3923_v8 = vld [vmem:[%s5088_s0 + $0xa0] ss:$16 sps:$4 sm:$0xff]   ;;  %v3930_v12 = vld [vmem:[%s5088_s0 + $0xa4] ss:$16 sps:$4 sm:$0xff]  }
  0x4c   :  { %3460 = vmatpush3.bf16.msra.mxu0 %v3891_v19  ;;  %v3925_v9 = vld [vmem:[%s5088_s0 + $0xc0] ss:$16 sps:$4 sm:$0xff]   ;;  %v484_v13 = vrot.slane %v3921_v7, %v4389_v38  ;;  %v498_v14 = vrot.slane %v3923_v8, %v4389_v38  ;;  %v3931_v16 = vld [vmem:[%s5088_s0 + $0xc4] ss:$16 sps:$4 sm:$0xff]   ;;  %v491_v19 = vrot.slane %v3929_v11, %v4389_v38 }
  0x4d   :  { %3524 = vmatpush3.bf16.msra.mxu1 %v3892_v20  ;;  %3461 = vmatprep.subr.bf16.mxu0 %v3893_v21  ;;  %v1611_v0 = vpack.c.bf16 %v435_v56, %v363_v55  ;;  %v1610_v4 = vpack.c.bf16 %v434_v61, %v362_v58  ;;  %v1613_v5 = vpack.c.bf16 %v437_v1, %v365_v60  ;;  %v3927_v10 = vld [vmem:[%s5088_s0 + $0xe0] ss:$16 sps:$4 sm:$0xff]   ;;  %v3932_v17 = vld [vmem:[%s5088_s0 + $0xe4] ss:$16 sps:$4 sm:$0xff]  }
  0x4e   :  { %3525 = vmatprep.subr.bf16.mxu1 %v3894_v22  ;;  %v1612_v6 = vpack.c.bf16 %v436_v2, %v364_v62  ;;  %v556_v15 = vrot.slane %v3925_v9, %v4389_v38  ;;  %v570_v18 = vrot.slane %v3927_v10, %v4389_v38  ;;  %v505_v20 = vrot.slane %v3930_v12, %v4389_v38  ;;  %v3933_v21 = vld [vmem:[#allocation3 + $0x148] sm:$0xff]   ;;  %v3945_v44 = vld [vmem:[%s5088_s0 + $0x104] ss:$16 sps:$4 sm:$0xff]  }
  0x4f   :  { %2225 = vmatprep.mubr.bf16.mxu0 %v1611_v0  ;;  %2322 = vmatprep.mubr.bf16.mxu1 %v1613_v5  ;;  %v507_v22 = vcombine.high %v484_v13, %v498_v14  ;;  %v3936_v34 = vld [vmem:[#allocation3 + $0x188] sm:$0xff]   ;;  %v3946_v47 = vld [vmem:[%s5088_s0 + $0x124] ss:$16 sps:$4 sm:$0xff]   ;;  %v635_v52 = vrot.slane %v3945_v44, %v4389_v38 }
  0x50   :  { %3462 = vmatpush3.bf16.msra.mxu0 %v3895_v23  ;;  %v563_v23 = vrot.slane %v3931_v16, %v4389_v38  ;;  %v579_v27 = vcombine.high %v556_v15, %v570_v18  ;;  %v509_v28 = vcombine.high %v491_v19, %v505_v20  ;;  %v3937_v40 = vld [vmem:[%s5088_s0 + $0x100] ss:$16 sps:$4 sm:$0xff]   ;;  %v3947_v48 = vld [vmem:[%s5088_s0 + $0x144] ss:$16 sps:$4 sm:$0xff]   ;;  %v649_v55 = vrot.slane %v3946_v47, %v4389_v38 }
  0x51   :  { %3526 = vmatpush3.bf16.msra.mxu1 %v3896_v24  ;;  %3463 = vmatprep.subr.bf16.mxu0 %v3897_v25  ;;  %v577_v24 = vrot.slane %v3932_v17, %v4389_v38  ;;  %v506_v25 = vcombine.low %v484_v13, %v498_v14  ;;  %v3939_v41 = vld [vmem:[%s5088_s0 + $0x120] ss:$16 sps:$4 sm:$0xff]   ;;  %v628_v45 = vrot.slane %v3937_v40, %v4389_v38  ;;  %v3948_v49 = vld [vmem:[%s5088_s0 + $0x164] ss:$16 sps:$4 sm:$0xff]  }
  0x52   :  { %3527 = vmatprep.subr.bf16.mxu1 %v3898_v29  ;;  %v578_v29 = vcombine.low %v556_v15, %v570_v18  ;;  %v3941_v42 = vld [vmem:[%s5088_s0 + $0x140] ss:$16 sps:$4 sm:$0xff]   ;;  %v642_v46 = vrot.slane %v3939_v41, %v4389_v38  ;;  %v707_v56 = vrot.slane %v3947_v48, %v4389_v38  ;;  %v721_v57 = vrot.slane %v3948_v49, %v4389_v38  ;;  %v3961_v13 = vld [vmem:[%s5088_s0 + $0x184] ss:$16 sps:$4 sm:$0xff]  }
  0x53   :  { %v580_v33 = vcombine.low %v563_v23, %v577_v24  ;;  %v3943_v43 = vld [vmem:[%s5088_s0 + $0x160] ss:$16 sps:$4 sm:$0xff]   ;;  %v700_v50 = vrot.slane %v3941_v42, %v4389_v38  ;;  %v652_v1 = vcombine.low %v635_v52, %v649_v55  ;;  %v3962_v14 = vld [vmem:[%s5088_s0 + $0x1a4] ss:$16 sps:$4 sm:$0xff]  }
  0x54   :  { %3464 = vmatpush3.bf16.msra.mxu0 %v3899_v30  ;;  %v508_v30 = vcombine.low %v491_v19, %v505_v20  ;;  %v714_v51 = vrot.slane %v3943_v43, %v4389_v38  ;;  %v3949_v53 = vld [vmem:[#allocation3 + $0x150] sm:$0xff]   ;;  %v650_v60 = vcombine.low %v628_v45, %v642_v46  ;;  %v725_v0 = vcombine.high %v707_v56, %v721_v57 }
  0x55   :  { %3528 = vmatpush3.bf16.msra.mxu1 %v3900_v31  ;;  %3465 = vmatprep.subr.bf16.mxu0 %v3901_v32  ;;  %v3935_v31 = vld [vmem:[#allocation3 + $0x1c8] sm:$0xff]   ;;  %v581_v32 = vcombine.high %v563_v23, %v577_v24  ;;  %v3950_v58 = vld [vmem:[#allocation3 + $0x110] sm:$0xff]   ;;  %v724_v2 = vcombine.low %v707_v56, %v721_v57  ;;  %v779_v20 = vrot.slane %v3961_v13, %v4389_v38  ;;  %v3965_v23 = vld [vmem:[#allocation3 + $0x158] sm:$0xff]  }
  0x56   :  { %3529 = vmatprep.subr.bf16.mxu1 %v3902_v35  ;;  %v1619_v35 = vpack.c.bf16 %v579_v27, %v507_v22  ;;  %v1620_v39 = vpack.c.bf16 %v580_v33, %v508_v30  ;;  %v722_v61 = vcombine.low %v700_v50, %v714_v51  ;;  %v3951_v62 = vld [vmem:[#allocation3 + $0x1d0] sm:$0xff]  }
  0x57   :  { %v1628_v7 = vpack.c.bf16 %v724_v2, %v652_v1  ;;  %v3953_v8 = vld [vmem:[%s5088_s0 + $0x180] ss:$16 sps:$4 sm:$0xff]   ;;  %v3963_v15 = vld [vmem:[%s5088_s0 + $0x1c4] ss:$16 sps:$4 sm:$0xff]  }
  0x58   :  { %3466 = vmatpush3.bf16.msra.mxu0 %v3903_v36  ;;  %v1618_v36 = vpack.c.bf16 %v578_v29, %v506_v25  ;;  %v1626_v5 = vpack.c.bf16 %v722_v61, %v650_v60  ;;  %v3955_v9 = vld [vmem:[%s5088_s0 + $0x1a0] ss:$16 sps:$4 sm:$0xff]   ;;  %v772_v12 = vrot.slane %v3953_v8, %v4389_v38  ;;  %v3964_v19 = vld [vmem:[%s5088_s0 + $0x1e4] ss:$16 sps:$4 sm:$0xff]   ;;  %v851_v22 = vrot.slane %v3963_v15, %v4389_v38 }
  0x59   :  { %3530 = vmatpush3.bf16.msra.mxu1 %v3904_v37  ;;  %3579 = vmatprep.subr.bf16.mxu0 %v3917_v54  ;;  %v1621_v37 = vpack.c.bf16 %v581_v32, %v509_v28  ;;  %v651_v54 = vcombine.high %v628_v45, %v642_v46  ;;  %v3957_v10 = vld [vmem:[%s5088_s0 + $0x1c0] ss:$16 sps:$4 sm:$0xff]   ;;  %v786_v16 = vrot.slane %v3955_v9, %v4389_v38  ;;  %v3977_v45 = vld [vmem:[%s5088_s0 + $0x204] ss:$16 sps:$4 sm:$0xff]  }
  0x5a   :  { %3643 = vmatprep.subr.bf16.mxu1 %v3919_v63  ;;  %v653_v63 = vcombine.high %v635_v52, %v649_v55  ;;  %v3959_v11 = vld [vmem:[%s5088_s0 + $0x1e0] ss:$16 sps:$4 sm:$0xff]   ;;  %v844_v17 = vrot.slane %v3957_v10, %v4389_v38  ;;  %v3978_v46 = vld [vmem:[%s5088_s0 + $0x224] ss:$16 sps:$4 sm:$0xff]  }
  0x5b   :  { %2226 = vmatmul.mubr.bf16.vlgmr.msra.gmra.mrb[0].mxu0 %v1610_v4  ;;  %v858_v18 = vrot.slane %v3959_v11, %v4389_v38  ;;  %v795_v24 = vcombine.high %v772_v12, %v786_v16  ;;  %v794_v27 = vcombine.low %v772_v12, %v786_v16  ;;  %v3966_v28 = vld [vmem:[#allocation3 + $0x118] sm:$0xff]   ;;  %v3981_v55 = vld [vmem:[#allocation3 + $0x160] sm:$0xff]  }
  0x5c   :  { %3580 = vmatpush3.bf16.msra.mxu0 %v3918_v59  ;;  %2323 = vmatmul.mubr.bf16.vlgmr.msra.gmra.mrb[0].mxu1 %v1612_v6  ;;  %v723_v59 = vcombine.high %v700_v50, %v714_v51  ;;  %v1629_v6 = vpack.c.bf16 %v725_v0, %v653_v63  ;;  %v3967_v32 = vld [vmem:[#allocation3 + $0x1d8] sm:$0xff]   ;;  %v3979_v50 = vld [vmem:[%s5088_s0 + $0x244] ss:$16 sps:$4 sm:$0xff]  }
  0x5d   :  { %3644 = vmatpush3.bf16.msra.mxu1 %v3920_v3  ;;  %3581 = vmatprep.subr.bf16.mxu0 %v3933_v21  ;;  %v3952_v3 = vld [vmem:[#allocation3 + $0x190] sm:$0xff]   ;;  %v793_v21 = vrot.slane %v3962_v14, %v4389_v38  ;;  %v867_v25 = vcombine.high %v844_v17, %v858_v18  ;;  %v866_v30 = vcombine.low %v844_v17, %v858_v18  ;;  %v3982_v60 = vld [vmem:[#allocation3 + $0x120] sm:$0xff]  }
  0x5e   :  { %3645 = vmatprep.subr.bf16.mxu1 %v3935_v31  ;;  %2233 = vmatprep.mubr.bf16.mxu0 %v1619_v35  ;;  %v1627_v4 = vpack.c.bf16 %v723_v59, %v651_v54  ;;  %v3969_v41 = vld [vmem:[%s5088_s0 + $0x200] ss:$16 sps:$4 sm:$0xff]   ;;  %v3980_v51 = vld [vmem:[%s5088_s0 + $0x264] ss:$16 sps:$4 sm:$0xff]   ;;  %v937_v54 = vrot.slane %v3978_v46, %v4389_v38  ;;  %v995_v57 = vrot.slane %v3979_v50, %v4389_v38 }
  0x5f   :  { %2330 = vmatprep.mubr.bf16.mxu1 %v1621_v37  ;;  %v797_v29 = vcombine.high %v779_v20, %v793_v21  ;;  %v796_v31 = vcombine.low %v779_v20, %v793_v21  ;;  %v1635_v33 = vpack.c.bf16 %v867_v25, %v795_v24  ;;  %v1634_v37 = vpack.c.bf16 %v866_v30, %v794_v27  ;;  %v3971_v42 = vld [vmem:[%s5088_s0 + $0x220] ss:$16 sps:$4 sm:$0xff]   ;;  %v3993_v13 = vld [vmem:[%s5088_s0 + $0x284] ss:$16 sps:$4 sm:$0xff]  }
  0x60   :  { %3582 = vmatpush3.bf16.msra.mxu0 %v3934_v26  ;;  %v865_v26 = vrot.slane %v3964_v19, %v4389_v38  ;;  %v3973_v43 = vld [vmem:[%s5088_s0 + $0x240] ss:$16 sps:$4 sm:$0xff]   ;;  %v916_v47 = vrot.slane %v3969_v41, %v4389_v38  ;;  %v930_v48 = vrot.slane %v3971_v42, %v4389_v38  ;;  %v3994_v16 = vld [vmem:[%s5088_s0 + $0x2a4] ss:$16 sps:$4 sm:$0xff]   ;;  %v1067_v21 = vrot.slane %v3993_v13, %v4389_v38 }
  0x61   :  { %3646 = vmatpush3.bf16.msra.mxu1 %v3936_v34  ;;  %3583 = vmatprep.subr.bf16.mxu0 %v3949_v53  ;;  %v3975_v44 = vld [vmem:[%s5088_s0 + $0x260] ss:$16 sps:$4 sm:$0xff]   ;;  %v988_v49 = vrot.slane %v3973_v43, %v4389_v38  ;;  %v923_v53 = vrot.slane %v3977_v45, %v4389_v38  ;;  %v3995_v17 = vld [vmem:[%s5088_s0 + $0x2c4] ss:$16 sps:$4 sm:$0xff]   ;;  %v1081_v24 = vrot.slane %v3994_v16, %v4389_v38 }
  0x62   :  { %3647 = vmatprep.subr.bf16.mxu1 %v3951_v62  ;;  %v869_v34 = vcombine.high %v851_v22, %v865_v26  ;;  %v868_v35 = vcombine.low %v851_v22, %v865_v26  ;;  %v1002_v52 = vrot.slane %v3975_v44, %v4389_v38  ;;  %v939_v56 = vcombine.high %v916_v47, %v930_v48  ;;  %v3983_v1 = vld [vmem:[#allocation3 + $0x1e0] sm:$0xff]   ;;  %v3997_v22 = vld [vmem:[#allocation3 + $0x168] sm:$0xff]  }
  0x63   :  { %2234 = vmatmul.mubr.bf16.gmra.mrb[4].mxu0 %v1618_v36  ;;  %v3968_v36 = vld [vmem:[#allocation3 + $0x198] sm:$0xff]   ;;  %v938_v59 = vcombine.low %v916_v47, %v930_v48  ;;  %v941_v62 = vcombine.high %v923_v53, %v937_v54  ;;  %v940_v0 = vcombine.low %v923_v53, %v937_v54  ;;  %v3996_v18 = vld [vmem:[%s5088_s0 + $0x2e4] ss:$16 sps:$4 sm:$0xff]   ;;  %v1139_v25 = vrot.slane %v3995_v17, %v4389_v38  ;;  %v3998_v27 = vld [vmem:[#allocation3 + $0x128] sm:$0xff]  }
  0x64   :  { %2331 = vmatmul.mubr.bf16.gmra.mrb[4].mxu1 %v1620_v39  ;;  %3584 = vmatpush3.bf16.msra.mxu0 %v3950_v58  ;;  %v1637_v39 = vpack.c.bf16 %v869_v34, %v797_v29  ;;  %v1636_v40 = vpack.c.bf16 %v868_v35, %v796_v31  ;;  %v1009_v58 = vrot.slane %v3980_v51, %v4389_v38  ;;  %v3985_v9 = vld [vmem:[%s5088_s0 + $0x280] ss:$16 sps:$4 sm:$0xff]   ;;  %v4009_v47 = vld [vmem:[%s5088_s0 + $0x304] ss:$16 sps:$4 sm:$0xff]  }
  0x65   :  { %3648 = vmatpush3.bf16.msra.mxu1 %v3952_v3  ;;  %2241 = vmatprep.mubr.bf16.mxu0 %v1627_v4  ;;  %v1011_v61 = vcombine.high %v988_v49, %v1002_v52  ;;  %v1010_v63 = vcombine.low %v988_v49, %v1002_v52  ;;  %v3984_v4 = vld [vmem:[#allocation3 + $0x1a0] sm:$0xff]   ;;  %v1060_v14 = vrot.slane %v3985_v9, %v4389_v38  ;;  %v3999_v31 = vld [vmem:[#allocation3 + $0x1e8] sm:$0xff]  }
  0x66   :  { %2338 = vmatprep.mubr.bf16.mxu1 %v1629_v6  ;;  %3585 = vmatprep.subr.bf16.mxu0 %v3965_v23  ;;  %v1013_v2 = vcombine.high %v995_v57, %v1009_v58  ;;  %v1012_v3 = vcombine.low %v995_v57, %v1009_v58  ;;  %v3987_v10 = vld [vmem:[%s5088_s0 + $0x2a0] ss:$16 sps:$4 sm:$0xff]   ;;  %v1153_v26 = vrot.slane %v3996_v18, %v4389_v38  ;;  %v4010_v48 = vld [vmem:[%s5088_s0 + $0x324] ss:$16 sps:$4 sm:$0xff]  }
  0x67   :  { %3649 = vmatprep.subr.bf16.mxu1 %v3967_v32  ;;  %v1642_v6 = vpack.c.bf16 %v1010_v63, %v938_v59  ;;  %v3989_v11 = vld [vmem:[%s5088_s0 + $0x2c0] ss:$16 sps:$4 sm:$0xff]   ;;  %v1074_v15 = vrot.slane %v3987_v10, %v4389_v38  ;;  %v1085_v32 = vcombine.high %v1067_v21, %v1081_v24  ;;  %v1084_v34 = vcombine.low %v1067_v21, %v1081_v24  ;;  %v4011_v49 = vld [vmem:[%s5088_s0 + $0x344] ss:$16 sps:$4 sm:$0xff]  }
  0x68   :  { %3586 = vmatpush3.bf16.msra.mxu0 %v3966_v28  ;;  %v1644_v8 = vpack.c.bf16 %v1012_v3, %v940_v0  ;;  %v3991_v12 = vld [vmem:[%s5088_s0 + $0x2e0] ss:$16 sps:$4 sm:$0xff]   ;;  %v1132_v19 = vrot.slane %v3989_v11, %v4389_v38  ;;  %v1156_v35 = vcombine.low %v1139_v25, %v1153_v26  ;;  %v4012_v53 = vld [vmem:[%s5088_s0 + $0x364] ss:$16 sps:$4 sm:$0xff]   ;;  %v1211_v54 = vrot.slane %v4009_v47, %v4389_v38  ;;  %v4041_v47 = vld [vmem:[%s5088_s0 + $0xc] ss:$16 sps:$4 sm:$0xff]  }
  0x69   :  { %3650 = vmatpush3.bf16.msra.mxu1 %v3968_v36  ;;  %3587 = vmatprep.subr.bf16.mxu0 %v3981_v55  ;;  %v1146_v20 = vrot.slane %v3991_v12, %v4389_v38  ;;  %v1083_v23 = vcombine.high %v1060_v14, %v1074_v15  ;;  %v1082_v29 = vcombine.low %v1060_v14, %v1074_v15  ;;  %v4000_v36 = vld [vmem:[#allocation3 + $0x1a8] sm:$0xff]   ;;  %v4013_v57 = vld [vmem:[#allocation3 + $0x170] sm:$0xff]   ;;  %v4029_v24 = vld [vmem:[#allocation3 + $0x178] sm:$0xff]  }
  0x6a   :  { %3651 = vmatprep.subr.bf16.mxu1 %v3983_v1  ;;  %v1652_v41 = vpack.c.bf16 %v1156_v35, %v1084_v34  ;;  %v4001_v42 = vld [vmem:[%s5088_s0 + $0x300] ss:$16 sps:$4 sm:$0xff]   ;;  %v1225_v55 = vrot.slane %v4010_v48, %v4389_v38  ;;  %v4025_v14 = vld [vmem:[%s5088_s0 + $0x384] ss:$16 sps:$4 sm:$0xff]  }
  0x6b   :  { %2242 = vmatmul.mubr.bf16.gmra.mrb[8].mxu0 %v1626_v5  ;;  %v1643_v5 = vpack.c.bf16 %v1011_v61, %v939_v56  ;;  %v1155_v28 = vcombine.high %v1132_v19, %v1146_v20  ;;  %v1154_v30 = vcombine.low %v1132_v19, %v1146_v20  ;;  %v4003_v43 = vld [vmem:[%s5088_s0 + $0x320] ss:$16 sps:$4 sm:$0xff]   ;;  %v1204_v46 = vrot.slane %v4001_v42, %v4389_v38  ;;  %v4026_v15 = vld [vmem:[%s5088_s0 + $0x3a4] ss:$16 sps:$4 sm:$0xff]  }
  0x6c   :  { %2339 = vmatmul.mubr.bf16.gmra.mrb[8].mxu1 %v1628_v7  ;;  %2249 = vmatprep.mubr.bf16.mxu0 %v1635_v33  ;;  %v1645_v7 = vpack.c.bf16 %v1013_v2, %v941_v62  ;;  %v1157_v33 = vcombine.high %v1139_v25, %v1153_v26  ;;  %v4005_v44 = vld [vmem:[%s5088_s0 + $0x340] ss:$16 sps:$4 sm:$0xff]   ;;  %v1218_v50 = vrot.slane %v4003_v43, %v4389_v38  ;;  %v4027_v19 = vld [vmem:[%s5088_s0 + $0x3c4] ss:$16 sps:$4 sm:$0xff]   ;;  %v4033_v43 = vld [vmem:[%s5088_s0 + $0x8] ss:$16 sps:$4 sm:$0xff]  }
  0x6d   :  { %2346 = vmatprep.mubr.bf16.mxu1 %v1637_v39  ;;  %3588 = vmatpush3.bf16.msra.mxu0 %v3982_v60  ;;  %v1650_v39 = vpack.c.bf16 %v1154_v30, %v1082_v29  ;;  %v4007_v45 = vld [vmem:[%s5088_s0 + $0x360] ss:$16 sps:$4 sm:$0xff]   ;;  %v1276_v51 = vrot.slane %v4005_v44, %v4389_v38  ;;  %v1283_v56 = vrot.slane %v4011_v49, %v4389_v38  ;;  %v4028_v20 = vld [vmem:[%s5088_s0 + $0x3e4] ss:$16 sps:$4 sm:$0xff]   ;;  %v4035_v44 = vld [vmem:[%s5088_s0 + $0x28] ss:$16 sps:$4 sm:$0xff]  }
  0x6e   :  { %3652 = vmatpush3.bf16.msra.mxu1 %v3984_v4  ;;  %3589 = vmatprep.subr.bf16.mxu0 %v3997_v22  ;;  %v1290_v52 = vrot.slane %v4007_v45, %v4389_v38  ;;  %v1227_v58 = vcombine.high %v1204_v46, %v1218_v50  ;;  %v1297_v60 = vrot.slane %v4012_v53, %v4389_v38  ;;  %v4014_v62 = vld [vmem:[#allocation3 + $0x130] sm:$0xff]   ;;  %v4030_v29 = vld [vmem:[#allocation3 + $0x138] sm:$0xff]  }
  0x6f   :  { %3653 = vmatprep.subr.bf16.mxu1 %v3999_v31  ;;  %v1226_v61 = vcombine.low %v1204_v46, %v1218_v50  ;;  %v1229_v63 = vcombine.high %v1211_v54, %v1225_v55  ;;  %v1228_v1 = vcombine.low %v1211_v54, %v1225_v55  ;;  %v4015_v2 = vld [vmem:[#allocation3 + $0x1f0] sm:$0xff]   ;;  %v1355_v22 = vrot.slane %v4025_v14, %v4389_v38  ;;  %v4031_v34 = vld [vmem:[#allocation3 + $0x1f8] sm:$0xff]  }
  0x70   :  { %v1299_v59 = vcombine.high %v1276_v51, %v1290_v52  ;;  %v1298_v0 = vcombine.low %v1276_v51, %v1290_v52  ;;  %v1301_v4 = vcombine.high %v1283_v56, %v1297_v60  ;;  %v4017_v10 = vld [vmem:[%s5088_s0 + $0x380] ss:$16 sps:$4 sm:$0xff]   ;;  %v1427_v26 = vrot.slane %v4027_v19, %v4389_v38  ;;  %v4037_v45 = vld [vmem:[%s5088_s0 + $0x48] ss:$16 sps:$4 sm:$0xff]   ;;  %v4042_v50 = vld [vmem:[%s5088_s0 + $0x2c] ss:$16 sps:$4 sm:$0xff]  }
  0x71   :  { %3590 = vmatpush3.bf16.msra.mxu0 %v3998_v27  ;;  %v4019_v11 = vld [vmem:[%s5088_s0 + $0x3a0] ss:$16 sps:$4 sm:$0xff]   ;;  %v1348_v16 = vrot.slane %v4017_v10, %v4389_v38  ;;  %v1441_v27 = vrot.slane %v4028_v20, %v4389_v38  ;;  %v4039_v46 = vld [vmem:[%s5088_s0 + $0x68] ss:$16 sps:$4 sm:$0xff]   ;;  %v376_v48 = vrot.slane %v4033_v43, %v4389_v38  ;;  %v390_v49 = vrot.slane %v4035_v44, %v4389_v38  ;;  %v4043_v51 = vld [vmem:[%s5088_s0 + $0x4c] ss:$16 sps:$4 sm:$0xff]  }
  0x72   :  { %3654 = vmatpush3.bf16.msra.mxu1 %v4000_v36  ;;  %3591 = vmatprep.subr.bf16.mxu0 %v4013_v57  ;;  %v1659_v3 = vpack.c.bf16 %v1299_v59, %v1227_v58  ;;  %v4021_v12 = vld [vmem:[%s5088_s0 + $0x3c0] ss:$16 sps:$4 sm:$0xff]   ;;  %v1362_v17 = vrot.slane %v4019_v11, %v4389_v38  ;;  %v4044_v52 = vld [vmem:[%s5088_s0 + $0x6c] ss:$16 sps:$4 sm:$0xff]   ;;  %v448_v53 = vrot.slane %v4037_v45, %v4389_v38 }
  0x73   :  { %2250 = vmatmul.mubr.bf16.gmra.mrb[12].mxu0 %v1634_v37  ;;  %v1651_v37 = vpack.c.bf16 %v1155_v28, %v1083_v23  ;;  %3655 = vmatprep.subr.bf16.mxu1 %v4015_v2  ;;  %v4023_v13 = vld [vmem:[%s5088_s0 + $0x3e0] ss:$16 sps:$4 sm:$0xff]   ;;  %v1420_v18 = vrot.slane %v4021_v12, %v4389_v38  ;;  %v1369_v23 = vrot.slane %v4026_v15, %v4389_v38  ;;  %v4047_v2 = vld [vmem:[%s5088_s0 + $0xa8] ss:$16 sps:$4 sm:$0xff]   ;;  %v4054_v10 = vld [vmem:[%s5088_s0 + $0xac] ss:$16 sps:$4 sm:$0xff]  }
  0x74   :  { %2347 = vmatmul.mubr.bf16.gmra.mrb[12].mxu1 %v1636_v40  ;;  %2257 = vmatprep.mubr.bf16.mxu0 %v1643_v5  ;;  %v1653_v40 = vpack.c.bf16 %v1157_v33, %v1085_v32  ;;  %v1300_v5 = vcombine.low %v1283_v56, %v1297_v60  ;;  %v1434_v21 = vrot.slane %v4023_v13, %v4389_v38  ;;  %v4055_v11 = vld [vmem:[%s5088_s0 + $0xcc] ss:$16 sps:$4 sm:$0xff]  }
  0x75   :  { %2354 = vmatprep.mubr.bf16.mxu1 %v1645_v7  ;;  %3592 = vmatpush3.bf16.msra.mxu0 %v4014_v62  ;;  %v1658_v7 = vpack.c.bf16 %v1298_v0, %v1226_v61  ;;  %v1371_v25 = vcombine.high %v1348_v16, %v1362_v17  ;;  %v1370_v28 = vcombine.low %v1348_v16, %v1362_v17  ;;  %v4056_v16 = vld [vmem:[%s5088_s0 + $0xec] ss:$16 sps:$4 sm:$0xff]  }
  0x76   :  { %v1660_v9 = vpack.c.bf16 %v1300_v5, %v1228_v1  ;;  %v1443_v30 = vcombine.high %v1420_v18, %v1434_v21  ;;  %v1373_v31 = vcombine.high %v1355_v22, %v1369_v23  ;;  %v1442_v32 = vcombine.low %v1420_v18, %v1434_v21  ;;  %3593 = vmatprep.subr.bf16.mxu0 %v4029_v24  ;;  %v4068_v43 = vld [vmem:[%s5088_s0 + $0x16c] ss:$16 sps:$4 sm:$0xff]  }
  0x77   :  { %v1372_v33 = vcombine.low %v1355_v22, %v1369_v23  ;;  %v1445_v35 = vcombine.high %v1427_v26, %v1441_v27  ;;  %v1444_v36 = vcombine.low %v1427_v26, %v1441_v27  ;;  %v462_v54 = vrot.slane %v4039_v46, %v4389_v38 }
  0x78   :  { %v383_v55 = vrot.slane %v4041_v47, %v4389_v38  ;;  %v398_v56 = vcombine.low %v376_v48, %v390_v49  ;;  %v399_v57 = vcombine.high %v376_v48, %v390_v49  ;;  %v397_v58 = vrot.slane %v4042_v50, %v4389_v38 }
  0x79   :  { %3594 = vmatpush3.bf16.msra.mxu0 %v4030_v29  ;;  %v1668_v42 = vpack.c.bf16 %v1444_v36, %v1372_v33  ;;  %v455_v59 = vrot.slane %v4043_v51, %v4389_v38  ;;  %v470_v60 = vcombine.low %v448_v53, %v462_v54  ;;  %v471_v61 = vcombine.high %v448_v53, %v462_v54  ;;  %v4059_v29 = vld [vmem:[%s5088_s0 + $0x128] ss:$16 sps:$4 sm:$0xff]   ;;  %v4065_v36 = vld [vmem:[%s5088_s0 + $0x10c] ss:$16 sps:$4 sm:$0xff]  }
  0x7a   :  { %v469_v62 = vrot.slane %v4044_v52, %v4389_v38  ;;  %v400_v0 = vcombine.low %v383_v55, %v397_v58  ;;  %v401_v1 = vcombine.high %v383_v55, %v397_v58  ;;  %v534_v13 = vrot.slane %v4047_v2, %v4389_v38  ;;  %v4069_v54 = vld [vmem:[%s5088_s0 + $0x188] ss:$16 sps:$4 sm:$0xff]  }
  0x7b   :  { %2258 = vmatmul.mubr.bf16.gmra.mrb[16].mxu0 %v1642_v6  ;;  %v4016_v6 = vld [vmem:[#allocation3 + $0x1b0] sm:$0xff]   ;;  %v1615_v5 = vpack.c.bf16 %v471_v61, %v399_v57  ;;  %v541_v20 = vrot.slane %v4054_v10, %v4389_v38  ;;  %v599_v23 = vrot.slane %v4055_v11, %v4389_v38  ;;  %v613_v24 = vrot.slane %v4056_v16, %v4389_v38 }
  0x7c   :  { %2355 = vmatmul.mubr.bf16.gmra.mrb[16].mxu1 %v1644_v8  ;;  %2265 = vmatprep.mubr.bf16.mxu0 %v1651_v37  ;;  %v1661_v8 = vpack.c.bf16 %v1301_v4, %v1229_v63  ;;  %v4032_v37 = vld [vmem:[#allocation3 + $0x1b8] sm:$0xff]   ;;  %v671_v47 = vrot.slane %v4065_v36, %v4389_v38  ;;  %v757_v51 = vrot.slane %v4068_v43, %v4389_v38 }
  0x7d   :  { %2362 = vmatprep.mubr.bf16.mxu1 %v1653_v40  ;;  %3656 = vmatpush3.bf16.msra.mxu1 %v4016_v6  ;;  %v1666_v40 = vpack.c.bf16 %v1442_v32, %v1370_v28  ;;  %v4045_v63 = vld [vmem:[%s5088_s0 + $0x88] ss:$16 sps:$4 sm:$0xff]   ;;  %v472_v6 = vcombine.low %v455_v59, %v469_v62  ;;  %v617_v32 = vcombine.high %v599_v23, %v613_v24 }
  0x7e   :  { %3657 = vmatprep.subr.bf16.mxu1 %v4031_v34  ;;  %v4051_v4 = vld [vmem:[%s5088_s0 + $0xe8] ss:$16 sps:$4 sm:$0xff]   ;;  %v520_v12 = vrot.slane %v4045_v63, %v4389_v38  ;;  %v616_v34 = vcombine.low %v599_v23, %v613_v24 }
  0x7f   :  { %v606_v15 = vrot.slane %v4051_v4, %v4389_v38  ;;  %v1616_v18 = vpack.c.bf16 %v472_v6, %v400_v0  ;;  %v4057_v28 = vld [vmem:[%s5088_s0 + $0x108] ss:$16 sps:$4 sm:$0xff]   ;;  %v4079_v4 = vld [vmem:[%s5088_s0 + $0x1cc] ss:$16 sps:$4 sm:$0xff]  }
  0x80   :  { %v543_v21 = vcombine.high %v520_v12, %v534_v13  ;;  %v542_v26 = vcombine.low %v520_v12, %v534_v13  ;;  %v4071_v55 = vld [vmem:[%s5088_s0 + $0x1a8] ss:$16 sps:$4 sm:$0xff]  }
  0x81   :  { %3658 = vmatpush3.bf16.msra.mxu1 %v4032_v37  ;;  %v4066_v37 = vld [vmem:[%s5088_s0 + $0x12c] ss:$16 sps:$4 sm:$0xff]   ;;  %v4075_v61 = vld [vmem:[%s5088_s0 + $0x1e8] ss:$16 sps:$4 sm:$0xff]   ;;  %v822_v2 = vrot.slane %v4071_v55, %v4389_v38 }
  0x82   :  { %v685_v49 = vrot.slane %v4066_v37, %v4389_v38  ;;  %v4081_v16 = vld [vmem:[%s5088_s0 + $0x208] ss:$16 sps:$4 sm:$0xff]  }
  0x83   :  { %2266 = vmatmul.mubr.bf16.gmra.mrb[20].mxu0 %v1650_v39  ;;  %v1667_v39 = vpack.c.bf16 %v1443_v30, %v1371_v25  ;;  %v4061_v30 = vld [vmem:[%s5088_s0 + $0x148] ss:$16 sps:$4 sm:$0xff]  }
  0x84   :  { %2363 = vmatmul.mubr.bf16.gmra.mrb[20].mxu1 %v1652_v41  ;;  %2273 = vmatprep.mubr.bf16.mxu0 %v1659_v3  ;;  %v1669_v41 = vpack.c.bf16 %v1445_v35, %v1373_v31  ;;  %v4049_v3 = vld [vmem:[%s5088_s0 + $0xc8] ss:$16 sps:$4 sm:$0xff]   ;;  %v688_v0 = vcombine.low %v671_v47, %v685_v49 }
  0x85   :  { %2370 = vmatprep.mubr.bf16.mxu1 %v1661_v8  ;;  %v1614_v8 = vpack.c.bf16 %v470_v60, %v398_v56  ;;  %v592_v14 = vrot.slane %v4049_v3, %v4389_v38  ;;  %v4063_v35 = vld [vmem:[%s5088_s0 + $0x168] ss:$16 sps:$4 sm:$0xff]   ;;  %v689_v56 = vcombine.high %v671_v47, %v685_v49  ;;  %v4078_v3 = vld [vmem:[%s5088_s0 + $0x1ac] ss:$16 sps:$4 sm:$0xff]  }
  0x86   :  { %v750_v46 = vrot.slane %v4063_v35, %v4389_v38  ;;  %v4073_v60 = vld [vmem:[%s5088_s0 + $0x1c8] ss:$16 sps:$4 sm:$0xff]   ;;  %v829_v12 = vrot.slane %v4078_v3, %v4389_v38 }
  0x87   :  { %v615_v22 = vcombine.high %v592_v14, %v606_v15  ;;  %v614_v27 = vcombine.low %v592_v14, %v606_v15  ;;  %v887_v14 = vrot.slane %v4079_v4, %v4389_v38  ;;  %v4093_v43 = vld [vmem:[%s5088_s0 + $0x288] ss:$16 sps:$4 sm:$0xff]  }
  0x89   :  { %v1623_v31 = vpack.c.bf16 %v615_v22, %v543_v21  ;;  %v1622_v45 = vpack.c.bf16 %v614_v27, %v542_v26  ;;  %v4087_v21 = vld [vmem:[%s5088_s0 + $0x268] ss:$16 sps:$4 sm:$0xff]   ;;  %v4089_v26 = vld [vmem:[%s5088_s0 + $0x20c] ss:$16 sps:$4 sm:$0xff]  }
  0x8a   :  { %v4090_v27 = vld [vmem:[%s5088_s0 + $0x22c] ss:$16 sps:$4 sm:$0xff]   ;;  %v959_v36 = vrot.slane %v4089_v26, %v4389_v38 }
  0x8b   :  { %2274 = vmatmul.mubr.bf16.gmra.mrb[24].mxu0 %v1658_v7  ;;  %v473_v7 = vcombine.high %v455_v59, %v469_v62  ;;  %v4077_v62 = vld [vmem:[%s5088_s0 + $0x18c] ss:$16 sps:$4 sm:$0xff]   ;;  %v973_v37 = vrot.slane %v4090_v27, %v4389_v38 }
  0x8c   :  { %2371 = vmatmul.mubr.bf16.gmra.mrb[24].mxu1 %v1660_v9  ;;  %2281 = vmatprep.mubr.bf16.mxu0 %v1667_v39  ;;  %v4053_v9 = vld [vmem:[%s5088_s0 + $0x8c] ss:$16 sps:$4 sm:$0xff]   ;;  %v664_v39 = vrot.slane %v4057_v28, %v4389_v38  ;;  %v815_v11 = vrot.slane %v4077_v62, %v4389_v38 }
  0x8d   :  { %2378 = vmatprep.mubr.bf16.mxu1 %v1669_v41  ;;  %v1617_v17 = vpack.c.bf16 %v473_v7, %v401_v1  ;;  %v527_v19 = vrot.slane %v4053_v9, %v4389_v38  ;;  %v736_v41 = vrot.slane %v4061_v30, %v4389_v38  ;;  %v808_v1 = vrot.slane %v4069_v54, %v4389_v38  ;;  %v4091_v28 = vld [vmem:[%s5088_s0 + $0x24c] ss:$16 sps:$4 sm:$0xff]  }
  0x8e   :  { %v894_v9 = vrot.slane %v4075_v61, %v4389_v38  ;;  %v4104_v54 = vld [vmem:[%s5088_s0 + $0x2ec] ss:$16 sps:$4 sm:$0xff]  }
  0x8f   :  { %v545_v25 = vcombine.high %v527_v19, %v541_v20  ;;  %v544_v33 = vcombine.low %v527_v19, %v541_v20  ;;  %v759_v53 = vcombine.high %v736_v41, %v750_v46  ;;  %v758_v59 = vcombine.low %v736_v41, %v750_v46  ;;  %v4083_v19 = vld [vmem:[%s5088_s0 + $0x228] ss:$16 sps:$4 sm:$0xff]  }
  0x90   :  { %v831_v10 = vcombine.high %v808_v1, %v822_v2  ;;  %v4085_v20 = vld [vmem:[%s5088_s0 + $0x248] ss:$16 sps:$4 sm:$0xff]   ;;  %v966_v30 = vrot.slane %v4083_v19, %v4389_v38  ;;  %v1031_v41 = vrot.slane %v4091_v28, %v4389_v38  ;;  %v832_v46 = vcombine.low %v815_v11, %v829_v12 }
  0x91   :  { %v1625_v44 = vpack.c.bf16 %v617_v32, %v545_v25  ;;  %v1624_v52 = vpack.c.bf16 %v616_v34, %v544_v33  ;;  %v4788_v25 = vrot.slane %v4081_v16, %v4389_v38  ;;  %v1038_v32 = vrot.slane %v4087_v21, %v4389_v38  ;;  %v4092_v33 = vld [vmem:[%s5088_s0 + $0x26c] ss:$16 sps:$4 sm:$0xff]  }
  0x93   :  { %2282 = vmatmul.mubr.bf16.gmra.mrb[28].mxu0 %v1666_v40  ;;  %v678_v40 = vrot.slane %v4059_v29, %v4389_v38  ;;  %v830_v29 = vcombine.low %v808_v1, %v822_v2  ;;  %v4105_v1 = vld [vmem:[%s5088_s0 + $0x308] ss:$16 sps:$4 sm:$0xff]  }
  0x94   :  { %2379 = vmatmul.mubr.bf16.gmra.mrb[28].mxu1 %v1668_v42  ;;  %2419 = vmatprep.mubr.bf16.mxu0 %v1615_v5  ;;  %v4067_v42 = vld [vmem:[%s5088_s0 + $0x14c] ss:$16 sps:$4 sm:$0xff]  }
  0x95   :  { %2516 = vmatprep.mubr.bf16.mxu1 %v1617_v17  ;;  %v687_v48 = vcombine.high %v664_v39, %v678_v40  ;;  %v743_v50 = vrot.slane %v4067_v42, %v4389_v38  ;;  %v686_v58 = vcombine.low %v664_v39, %v678_v40  ;;  %v4080_v5 = vld [vmem:[%s5088_s0 + $0x1ec] ss:$16 sps:$4 sm:$0xff]   ;;  %v975_v39 = vcombine.high %v4788_v25, %v966_v30 }
  0x96   :  { %v901_v15 = vrot.slane %v4080_v5, %v4389_v38  ;;  %v1045_v42 = vrot.slane %v4092_v33, %v4389_v38  ;;  %v1189_v5 = vrot.slane %v4104_v54, %v4389_v38  ;;  %v4121_v33 = vld [vmem:[%s5088_s0 + $0x3c8] ss:$16 sps:$4 sm:$0xff]  }
  0x97   :  { %v761_v57 = vcombine.high %v743_v50, %v757_v51  ;;  %v1631_v63 = vpack.c.bf16 %v759_v53, %v687_v48  ;;  %v760_v7 = vcombine.low %v743_v50, %v757_v51  ;;  %v1630_v17 = vpack.c.bf16 %v758_v59, %v686_v58  ;;  %v4099_v50 = vld [vmem:[%s5088_s0 + $0x2e8] ss:$16 sps:$4 sm:$0xff]   ;;  %v4101_v51 = vld [vmem:[%s5088_s0 + $0x28c] ss:$16 sps:$4 sm:$0xff]  }
  0x98   :  { %v905_v24 = vcombine.high %v887_v14, %v901_v15  ;;  %v904_v47 = vcombine.low %v887_v14, %v901_v15  ;;  %v977_v48 = vcombine.high %v959_v36, %v973_v37  ;;  %v1049_v49 = vcombine.high %v1031_v41, %v1045_v42  ;;  %v4103_v53 = vld [vmem:[%s5088_s0 + $0x2cc] ss:$16 sps:$4 sm:$0xff]  }
  0x99   :  { %v1633_v6 = vpack.c.bf16 %v761_v57, %v689_v56  ;;  %v1632_v22 = vpack.c.bf16 %v760_v7, %v688_v0  ;;  %v4835_v57 = vrot.slane %v4093_v43, %v4389_v38  ;;  %v1103_v2 = vrot.slane %v4101_v51, %v4389_v38  ;;  %v4109_v7 = vld [vmem:[%s5088_s0 + $0x348] ss:$16 sps:$4 sm:$0xff]   ;;  %v4128_v43 = vld [vmem:[%s5088_s0 + $0x3ec] ss:$16 sps:$4 sm:$0xff]  }
  0x9a   :  { %v1640_v61 = vpack.c.bf16 %v904_v47, %v832_v46  ;;  %v1649_v62 = vpack.c.bf16 %v1049_v49, %v977_v48  ;;  %v1175_v4 = vrot.slane %v4103_v53, %v4389_v38  ;;  %v1048_v14 = vcombine.low %v1031_v41, %v1045_v42  ;;  %v4126_v41 = vld [vmem:[%s5088_s0 + $0x3ac] ss:$16 sps:$4 sm:$0xff]  }
  0x9b   :  { %2420 = vmatmul.mubr.bf16.vlgmr.msra.gmra.mrb[32].mxu0 %v1614_v8  ;;  %v880_v8 = vrot.slane %v4073_v60, %v4389_v38  ;;  %v1182_v60 = vrot.slane %v4099_v50, %v4389_v38  ;;  %v4127_v42 = vld [vmem:[%s5088_s0 + $0x3cc] ss:$16 sps:$4 sm:$0xff]  }
  0x9c   :  { %2517 = vmatmul.mubr.bf16.vlgmr.msra.gmra.mrb[32].mxu1 %v1616_v18  ;;  %2427 = vmatprep.mubr.bf16.mxu0 %v1623_v31  ;;  %v833_v18 = vcombine.high %v815_v11, %v829_v12  ;;  %v1024_v31 = vrot.slane %v4085_v20, %v4389_v38  ;;  %v4115_v11 = vld [vmem:[%s5088_s0 + $0x34c] ss:$16 sps:$4 sm:$0xff]   ;;  %v1193_v19 = vcombine.high %v1175_v4, %v1189_v5 }
  0x9d   :  { %2524 = vmatprep.mubr.bf16.mxu1 %v1625_v44  ;;  %v903_v13 = vcombine.high %v880_v8, %v894_v9  ;;  %v902_v35 = vcombine.low %v880_v8, %v894_v9  ;;  %v4095_v44 = vld [vmem:[%s5088_s0 + $0x2a8] ss:$16 sps:$4 sm:$0xff]   ;;  %v4113_v9 = vld [vmem:[%s5088_s0 + $0x30c] ss:$16 sps:$4 sm:$0xff]   ;;  %v1240_v20 = vrot.slane %v4105_v1, %v4389_v38  ;;  %v1319_v28 = vrot.slane %v4115_v11, %v4389_v38 }
  0x9e   :  { %v1641_v34 = vpack.c.bf16 %v905_v24, %v833_v18  ;;  %v1047_v40 = vcombine.high %v1024_v31, %v1038_v32  ;;  %v1110_v58 = vrot.slane %v4095_v44, %v4389_v38  ;;  %v1046_v0 = vcombine.low %v1024_v31, %v1038_v32  ;;  %v4111_v8 = vld [vmem:[%s5088_s0 + $0x368] ss:$16 sps:$4 sm:$0xff]   ;;  %v4116_v12 = vld [vmem:[%s5088_s0 + $0x36c] ss:$16 sps:$4 sm:$0xff]  }
  0x9f   :  { %v1639_v23 = vpack.c.bf16 %v903_v13, %v831_v10  ;;  %v1638_v55 = vpack.c.bf16 %v902_v35, %v830_v29  ;;  %v4114_v10 = vld [vmem:[%s5088_s0 + $0x32c] ss:$16 sps:$4 sm:$0xff]   ;;  %v976_v13 = vcombine.low %v959_v36, %v973_v37  ;;  %v1247_v26 = vrot.slane %v4113_v9, %v4389_v38  ;;  %v4117_v31 = vld [vmem:[%s5088_s0 + $0x388] ss:$16 sps:$4 sm:$0xff]  }
  0xa0   :  { %v1647_v56 = vpack.c.bf16 %v1047_v40, %v975_v39  ;;  %v1119_v15 = vcombine.high %v4835_v57, %v1110_v58  ;;  %v1261_v27 = vrot.slane %v4114_v10, %v4389_v38  ;;  %v1333_v29 = vrot.slane %v4116_v12, %v4389_v38  ;;  %v4119_v32 = vld [vmem:[%s5088_s0 + $0x3a8] ss:$16 sps:$4 sm:$0xff]   ;;  %v4125_v40 = vld [vmem:[%s5088_s0 + $0x38c] ss:$16 sps:$4 sm:$0xff]  }
  0xa1   :  { %v1648_v24 = vpack.c.bf16 %v1048_v14, %v976_v13  ;;  %v1118_v35 = vcombine.low %v4835_v57, %v1110_v58  ;;  %v1384_v50 = vrot.slane %v4117_v31, %v4389_v38  ;;  %v1398_v51 = vrot.slane %v4119_v32, %v4389_v38  ;;  %v4129_v13 = vld [vmem:[%s5091_s3] sm:$0xff]   ;;  %v4130_v14 = vld [vmem:[%s5091_s3 + $0x8] sm:$0xff]  }
  0xa2   :  { %v1265_v46 = vcombine.high %v1247_v26, %v1261_v27  ;;  %v1337_v47 = vcombine.high %v1319_v28, %v1333_v29  ;;  %v1405_v57 = vrot.slane %v4126_v41, %v4389_v38  ;;  %v1463_v58 = vrot.slane %v4127_v42, %v4389_v38  ;;  %3755 = vmatprep.subr.bf16.mxu0 %v4129_v13 }
  0xa3   :  { %2428 = vmatmul.mubr.bf16.gmra.mrb[36].mxu0 %v1622_v45  ;;  %v4097_v45 = vld [vmem:[%s5088_s0 + $0x2c8] ss:$16 sps:$4 sm:$0xff]   ;;  %v1336_v1 = vcombine.low %v1319_v28, %v1333_v29 }
  0xa4   :  { %2525 = vmatmul.mubr.bf16.gmra.mrb[36].mxu1 %v1624_v52  ;;  %2435 = vmatprep.mubr.bf16.mxu0 %v1631_v63  ;;  %v4102_v52 = vld [vmem:[%s5088_s0 + $0x2ac] ss:$16 sps:$4 sm:$0xff]   ;;  %v1168_v59 = vrot.slane %v4097_v45, %v4389_v38  ;;  %v974_v63 = vcombine.low %v4788_v25, %v966_v30  ;;  %v1192_v45 = vcombine.low %v1175_v4, %v1189_v5 }
  0xa5   :  { %2532 = vmatprep.mubr.bf16.mxu1 %v1633_v6  ;;  %v1117_v3 = vrot.slane %v4102_v52, %v4389_v38  ;;  %v4107_v6 = vld [vmem:[%s5088_s0 + $0x328] ss:$16 sps:$4 sm:$0xff]   ;;  %v1456_v52 = vrot.slane %v4121_v33, %v4389_v38  ;;  %3756 = vmatpush3.bf16.msra.mxu0 %v4129_v13 }
  0xa6   :  { %v1191_v16 = vcombine.high %v1168_v59, %v1182_v60  ;;  %v1254_v21 = vrot.slane %v4107_v6, %v4389_v38  ;;  %v1190_v36 = vcombine.low %v1168_v59, %v1182_v60  ;;  %v1477_v59 = vrot.slane %v4128_v43, %v4389_v38  ;;  %3757 = vmatprep.subr.bf16.mxu0 %v4130_v14 }
  0xa7   :  { %v1121_v18 = vcombine.high %v1103_v2, %v1117_v3  ;;  %v1120_v44 = vcombine.low %v1103_v2, %v1117_v3 }
  0xa8   :  { %v1655_v25 = vpack.c.bf16 %v1191_v16, %v1119_v15  ;;  %v1263_v37 = vcombine.high %v1240_v20, %v1254_v21  ;;  %v1654_v48 = vpack.c.bf16 %v1190_v36, %v1118_v35  ;;  %v1262_v60 = vcombine.low %v1240_v20, %v1254_v21  ;;  %v4131_v15 = vld [vmem:[%s5091_s3 + $0x10] sm:$0xff]   ;;  %v4132_v16 = vld [vmem:[%s5091_s3 + $0x18] sm:$0xff]  }
  0xa9   :  { %v1657_v30 = vpack.c.bf16 %v1193_v19, %v1121_v18  ;;  %v1656_v54 = vpack.c.bf16 %v1192_v45, %v1120_v44  ;;  %v1481_v3 = vcombine.high %v1463_v58, %v1477_v59  ;;  %v1480_v10 = vcombine.low %v1463_v58, %v1477_v59  ;;  %3758 = vmatpush3.bf16.msra.mxu0 %v4130_v14  ;;  %v4134_v18 = vld [vmem:[%s5091_s3 + $0x28] sm:$0xff]   ;;  %v4135_v19 = vld [vmem:[%s5091_s3 + $0x30] sm:$0xff]   ;;  %v4136_v20 = vld [vmem:[%s5091_s3 + $0x38] sm:$0xff]  }
  0xaa   :  { %3759 = vmatprep.subr.bf16.mxu0 %v4131_v15 }
  0xab   :  { %2436 = vmatmul.mubr.bf16.gmra.mrb[40].mxu0 %v1630_v17  ;;  %v1646_v17 = vpack.c.bf16 %v1046_v0, %v974_v63  ;;  %v1264_v0 = vcombine.low %v1247_v26, %v1261_v27 }
  0xac   :  { %2443 = vmatprep.mubr.bf16.mxu0 %v1639_v23  ;;  %2533 = vmatmul.mubr.bf16.gmra.mrb[40].mxu1 %v1632_v22  ;;  %v1312_v22 = vrot.slane %v4109_v7, %v4389_v38  ;;  %v1326_v23 = vrot.slane %v4111_v8, %v4389_v38  ;;  %v1406_v8 = vcombine.low %v1384_v50, %v1398_v51 }
  0xad   :  { %2540 = vmatprep.mubr.bf16.mxu1 %v1641_v34  ;;  %v4123_v34 = vld [vmem:[%s5088_s0 + $0x3e8] ss:$16 sps:$4 sm:$0xff]   ;;  %v1664_v6 = vpack.c.bf16 %v1336_v1, %v1264_v0  ;;  %3760 = vmatpush3.bf16.msra.mxu0 %v4131_v15 }
  0xae   :  { %v1335_v39 = vcombine.high %v1312_v22, %v1326_v23  ;;  %v1470_v53 = vrot.slane %v4123_v34, %v4389_v38  ;;  %3761 = vmatprep.subr.bf16.mxu0 %v4132_v16 }
  0xb0   :  { %v1663_v49 = vpack.c.bf16 %v1335_v39, %v1263_v37  ;;  %v1479_v63 = vcombine.high %v1456_v52, %v1470_v53  ;;  %v1478_v9 = vcombine.low %v1456_v52, %v1470_v53 }
  0xb1   :  { %3762 = vmatpush3.bf16.msra.mxu0 %v4132_v16 }
  0xb2   :  { %v1670_v11 = vpack.c.bf16 %v1478_v9, %v1406_v8 }
  0xb3   :  { %2444 = vmatmul.mubr.bf16.gmra.mrb[44].mxu0 %v1638_v55  ;;  %v1665_v55 = vpack.c.bf16 %v1337_v47, %v1265_v46 }
  0xb4   :  { %2451 = vmatprep.mubr.bf16.mxu0 %v1647_v56  ;;  %2541 = vmatmul.mubr.bf16.gmra.mrb[44].mxu1 %v1640_v61  ;;  %v1391_v56 = vrot.slane %v4125_v40, %v4389_v38  ;;  %v1334_v61 = vcombine.low %v1312_v22, %v1326_v23  ;;  %v4935_v22 = vld [vmem:[#allocation5] ss:$0 sm:$0xff] }
  0xb5   :  { %2548 = vmatprep.mubr.bf16.mxu1 %v1649_v62  ;;  %v1407_v62 = vcombine.high %v1384_v50, %v1398_v51 }
  0xb6   :  { %v1409_v2 = vcombine.high %v1391_v56, %v1405_v57  ;;  %v1662_v4 = vpack.c.bf16 %v1334_v61, %v1262_v60  ;;  %v1408_v38 = vcombine.low %v1391_v56, %v1405_v57  ;;  %v4137_v56 = vld [vmem:[#allocation7] sm:$0xff]   ;;  %v4138_v57 = vld [vmem:[#allocation7 + $0x8] sm:$0xff]  }
  0xb7   :  { %v1671_v5 = vpack.c.bf16 %v1479_v63, %v1407_v62  ;;  %3787 = vmatprep.subr.bf16.mxu1 %v4137_v56 }
  0xb8   :  { %v1673_v7 = vpack.c.bf16 %v1481_v3, %v1409_v2  ;;  %v1672_v12 = vpack.c.bf16 %v1480_v10, %v1408_v38  ;;  %3788 = vmatpush3.bf16.msra.mxu1 %v4137_v56  ;;  %v4140_v38 = vld [vmem:[#allocation7 + $0x18] sm:$0xff]  }
  0xb9   :  { %3789 = vmatprep.subr.bf16.mxu1 %v4138_v57 }
  0xbb   :  { %2452 = vmatmul.mubr.bf16.gmra.mrb[48].mxu0 %v1646_v17  ;;  %v4133_v17 = vld [vmem:[%s5091_s3 + $0x20] sm:$0xff]  }
  0xbc   :  { %2459 = vmatprep.mubr.bf16.mxu0 %v1655_v25  ;;  %2549 = vmatmul.mubr.bf16.gmra.mrb[48].mxu1 %v1648_v24 }
  0xbd   :  { %2556 = vmatprep.mubr.bf16.mxu1 %v1657_v30  ;;  %3763 = vmatprep.subr.bf16.mxu0 %v4133_v17 }
  0xbe   :  { %3764 = vmatpush3.bf16.msra.mxu0 %v4133_v17  ;;  %3790 = vmatpush3.bf16.msra.mxu1 %v4138_v57  ;;  %v4141_v17 = vld [vmem:[#allocation7 + $0x20] sm:$0xff]  }
  0xbf   :  { %3765 = vmatprep.subr.bf16.mxu0 %v4134_v18 }
  0xc2   :  { %3766 = vmatpush3.bf16.msra.mxu0 %v4134_v18 }
  0xc3   :  { %2460 = vmatmul.mubr.bf16.gmra.mrb[52].mxu0 %v1654_v48  ;;  %3767 = vmatprep.subr.bf16.mxu0 %v4135_v19 }
  0xc4   :  { %2467 = vmatprep.mubr.bf16.mxu0 %v1663_v49  ;;  %2557 = vmatmul.mubr.bf16.gmra.mrb[52].mxu1 %v1656_v54 }
  0xc5   :  { %2564 = vmatprep.mubr.bf16.mxu1 %v1665_v55 }
  0xc6   :  { %3768 = vmatpush3.bf16.msra.mxu0 %v4135_v19 }
  0xc7   :  { %3769 = vmatprep.subr.bf16.mxu0 %v4136_v20 }
  0xca   :  { %3770 = vmatpush3.bf16.msra.mxu0 %v4136_v20 }
  0xcb   :  { %2468 = vmatmul.mubr.bf16.gmra.mrb[56].mxu0 %v1662_v4 }
  0xcc   :  { %2475 = vmatprep.mubr.bf16.mxu0 %v1671_v5  ;;  %2565 = vmatmul.mubr.bf16.gmra.mrb[56].mxu1 %v1664_v6  ;;  %v4139_v5 = vld [vmem:[#allocation7 + $0x10] sm:$0xff]  }
  0xcd   :  { %2572 = vmatprep.mubr.bf16.mxu1 %v1673_v7  ;;  %3791 = vmatprep.subr.bf16.mxu1 %v4139_v5 }
  0xce   :  { %3792 = vmatpush3.bf16.msra.mxu1 %v4139_v5 }
  0xcf   :  { %3793 = vmatprep.subr.bf16.mxu1 %v4140_v38 }
  0xd2   :  { %3794 = vmatpush3.bf16.msra.mxu1 %v4140_v38 }
  0xd3   :  { %2476 = vmatmul.mubr.bf16.gmra.mrb[60].mxu0 %v1670_v11  ;;  %3795 = vmatprep.subr.bf16.mxu1 %v4141_v17 }
  0xd4   :  { %2573 = vmatmul.mubr.bf16.gmra.mrb[60].mxu1 %v1672_v12 }
  0xd6   :  { %3796 = vmatpush3.bf16.msra.mxu1 %v4141_v17 }
 0x12e   :  { %v3467_v21 = vpop.f32.mrb[0].mxu0 }
 0x12f   :  { %v3468_v23 = vpop.f32.mrb[1].mxu0  ;;  %v3531_v24 = vpop.f32.mrb[0].mxu1 }
 0x130   :  { %v3469_v25 = vadd.f32 %v3468_v23, %v3467_v21  ;;  %v3470_v26 = vpop.f32.mrb[2].mxu0  ;;  %v3532_v27 = vpop.f32.mrb[1].mxu1 }
 0x131   :  { %v3471_v28 = vpop.f32.mrb[3].mxu0  ;;  %v3533_v30 = vadd.f32 %v3532_v27, %v3531_v24  ;;  %v3534_v31 = vpop.f32.mrb[2].mxu1 }
 0x132   :  { %v2228_v29 = vadd.f32 %v3469_v25, %v4935_v22  ;;  %v3472_v32 = vadd.f32 %v3471_v28, %v3470_v26  ;;  %v3535_v33 = vpop.f32.mrb[3].mxu1 }
 0x133   :  { %v3536_v36 = vadd.f32 %v3535_v33, %v3534_v31 }
 0x134   :  { %v4938_v34 = vadd.f32 %v3533_v30, %v2228_v29  ;;  %v2231_v35 = vadd.f32 %v3472_v32, %v4935_v22 }
 0x136   :  { %v4941_v37 = vadd.f32 %v3536_v36, %v2231_v35  ;;  %v3473_v39 = vpop.f32.mrb[4].mxu0 }
 0x137   :  { %v3537_v40 = vpop.f32.mrb[4].mxu1  ;;  %v3474_v41 = vpop.f32.mrb[5].mxu0 }
 0x138   :  { %v3475_v42 = vadd.f32 %v3474_v41, %v3473_v39  ;;  %v3538_v43 = vpop.f32.mrb[5].mxu1  ;;  %v3476_v44 = vpop.f32.mrb[6].mxu0 }
 0x139   :  { %v3539_v45 = vadd.f32 %v3538_v43, %v3537_v40  ;;  %v3540_v46 = vpop.f32.mrb[6].mxu1  ;;  %v3477_v47 = vpop.f32.mrb[7].mxu0 }
 0x13a   :  { %v2236_v48 = vadd.f32 %v3475_v42, %v4935_v22  ;;  %v3478_v49 = vadd.f32 %v3477_v47, %v3476_v44  ;;  %v3541_v50 = vpop.f32.mrb[7].mxu1 }
 0x13b   :  { %v3542_v51 = vadd.f32 %v3541_v50, %v3540_v46 }
 0x13c   :  { %v4944_v52 = vadd.f32 %v3539_v45, %v2236_v48  ;;  %v2239_v53 = vadd.f32 %v3478_v49, %v4935_v22 }
 0x13e   :  { %v4947_v54 = vadd.f32 %v3542_v51, %v2239_v53  ;;  %v3479_v55 = vpop.f32.mrb[8].mxu0 }
 0x13f   :  { %v3543_v58 = vpop.f32.mrb[8].mxu1  ;;  %v3480_v59 = vpop.f32.mrb[9].mxu0 }
 0x140   :  { %v3481_v60 = vadd.f32 %v3480_v59, %v3479_v55  ;;  %v3544_v61 = vpop.f32.mrb[9].mxu1  ;;  %v3482_v62 = vpop.f32.mrb[10].mxu0 }
 0x141   :  { %v3545_v63 = vadd.f32 %v3544_v61, %v3543_v58  ;;  %v3546_v0 = vpop.f32.mrb[10].mxu1  ;;  %v3483_v1 = vpop.f32.mrb[11].mxu0 }
 0x142   :  { %v2244_v2 = vadd.f32 %v3481_v60, %v4935_v22  ;;  %v3484_v3 = vadd.f32 %v3483_v1, %v3482_v62  ;;  %v3547_v4 = vpop.f32.mrb[11].mxu1 }
 0x143   :  { %v3548_v6 = vadd.f32 %v3547_v4, %v3546_v0 }
 0x144   :  { %v4950_v7 = vadd.f32 %v3545_v63, %v2244_v2  ;;  %v2247_v8 = vadd.f32 %v3484_v3, %v4935_v22 }
 0x146   :  { %v4953_v9 = vadd.f32 %v3548_v6, %v2247_v8  ;;  %v3485_v10 = vpop.f32.mrb[12].mxu0 }
 0x147   :  { %v3486_v11 = vpop.f32.mrb[13].mxu0  ;;  %v3549_v12 = vpop.f32.mrb[12].mxu1 }
 0x148   :  { %v3487_v13 = vadd.f32 %v3486_v11, %v3485_v10  ;;  %v3488_v14 = vpop.f32.mrb[14].mxu0  ;;  %v3550_v15 = vpop.f32.mrb[13].mxu1 }
 0x149   :  { %v3489_v16 = vpop.f32.mrb[15].mxu0  ;;  %v3551_v19 = vadd.f32 %v3550_v15, %v3549_v12  ;;  %v3552_v20 = vpop.f32.mrb[14].mxu1 }
 0x14a   :  { %v2252_v18 = vadd.f32 %v3487_v13, %v4935_v22  ;;  %v3490_v21 = vadd.f32 %v3489_v16, %v3488_v14  ;;  %v3553_v23 = vpop.f32.mrb[15].mxu1 }
 0x14b   :  { %v3554_v26 = vadd.f32 %v3553_v23, %v3552_v20 }
 0x14c   :  { %v4956_v24 = vadd.f32 %v3551_v19, %v2252_v18  ;;  %v2255_v25 = vadd.f32 %v3490_v21, %v4935_v22 }
 0x14e   :  { %v4959_v27 = vadd.f32 %v3554_v26, %v2255_v25  ;;  %v3491_v28 = vpop.f32.mrb[16].mxu0 }
 0x14f   :  { %v3555_v29 = vpop.f32.mrb[16].mxu1  ;;  %v3492_v30 = vpop.f32.mrb[17].mxu0 }
 0x150   :  { %v3493_v31 = vadd.f32 %v3492_v30, %v3491_v28  ;;  %v3556_v32 = vpop.f32.mrb[17].mxu1  ;;  %v3494_v33 = vpop.f32.mrb[18].mxu0 }
 0x151   :  { %v3557_v35 = vadd.f32 %v3556_v32, %v3555_v29  ;;  %v3558_v36 = vpop.f32.mrb[18].mxu1  ;;  %v3495_v39 = vpop.f32.mrb[19].mxu0 }
 0x152   :  { %v2260_v40 = vadd.f32 %v3493_v31, %v4935_v22  ;;  %v3496_v41 = vadd.f32 %v3495_v39, %v3494_v33  ;;  %v3559_v42 = vpop.f32.mrb[19].mxu1 }
 0x153   :  { %v3560_v43 = vadd.f32 %v3559_v42, %v3558_v36 }
 0x154   :  { %v4962_v44 = vadd.f32 %v3557_v35, %v2260_v40  ;;  %v2263_v45 = vadd.f32 %v3496_v41, %v4935_v22 }
 0x156   :  { %v4965_v46 = vadd.f32 %v3560_v43, %v2263_v45  ;;  %v3497_v47 = vpop.f32.mrb[20].mxu0 }
 0x157   :  { %v3561_v48 = vpop.f32.mrb[20].mxu1  ;;  %v3498_v49 = vpop.f32.mrb[21].mxu0 }
 0x158   :  { %v3499_v50 = vadd.f32 %v3498_v49, %v3497_v47  ;;  %v3562_v51 = vpop.f32.mrb[21].mxu1  ;;  %v3500_v53 = vpop.f32.mrb[22].mxu0 }
 0x159   :  { %v3563_v55 = vadd.f32 %v3562_v51, %v3561_v48  ;;  %v3564_v56 = vpop.f32.mrb[22].mxu1  ;;  %v3501_v57 = vpop.f32.mrb[23].mxu0 }
 0x15a   :  { %v2268_v58 = vadd.f32 %v3499_v50, %v4935_v22  ;;  %v3502_v59 = vadd.f32 %v3501_v57, %v3500_v53  ;;  %v3565_v60 = vpop.f32.mrb[23].mxu1 }
 0x15b   :  { %v3566_v61 = vadd.f32 %v3565_v60, %v3564_v56 }
 0x15c   :  { %v4968_v62 = vadd.f32 %v3563_v55, %v2268_v58  ;;  %v2271_v63 = vadd.f32 %v3502_v59, %v4935_v22 }
 0x15e   :  { %v4971_v0 = vadd.f32 %v3566_v61, %v2271_v63  ;;  %v3503_v1 = vpop.f32.mrb[24].mxu0 }
 0x15f   :  { %v3504_v2 = vpop.f32.mrb[25].mxu0  ;;  %v3567_v3 = vpop.f32.mrb[24].mxu1 }
 0x160   :  { %v3505_v4 = vadd.f32 %v3504_v2, %v3503_v1  ;;  %v3506_v5 = vpop.f32.mrb[26].mxu0  ;;  %v3568_v6 = vpop.f32.mrb[25].mxu1 }
 0x161   :  { %v3507_v8 = vpop.f32.mrb[27].mxu0  ;;  %v3569_v10 = vadd.f32 %v3568_v6, %v3567_v3  ;;  %v3570_v11 = vpop.f32.mrb[26].mxu1 }
 0x162   :  { %v2276_v38 = vadd.f32 %v3505_v4, %v4935_v22  ;;  %v3508_v12 = vadd.f32 %v3507_v8, %v3506_v5  ;;  %v3571_v13 = vpop.f32.mrb[27].mxu1 }
 0x163   :  { %v3572_v16 = vadd.f32 %v3571_v13, %v3570_v11 }
 0x164   :  { %v4974_v14 = vadd.f32 %v3569_v10, %v2276_v38  ;;  %v2279_v15 = vadd.f32 %v3508_v12, %v4935_v22 }
 0x166   :  { %v4977_v17 = vadd.f32 %v3572_v16, %v2279_v15  ;;  %v3509_v18 = vpop.f32.mrb[28].mxu0 }
 0x167   :  { %v3573_v19 = vpop.f32.mrb[28].mxu1  ;;  %v3510_v20 = vpop.f32.mrb[29].mxu0 }
 0x168   :  { %v3511_v21 = vadd.f32 %v3510_v20, %v3509_v18  ;;  %v3574_v23 = vpop.f32.mrb[29].mxu1  ;;  %v3512_v25 = vpop.f32.mrb[30].mxu0 }
 0x169   :  { %v3575_v26 = vadd.f32 %v3574_v23, %v3573_v19  ;;  %v3576_v28 = vpop.f32.mrb[30].mxu1  ;;  %v3513_v29 = vpop.f32.mrb[31].mxu0 }
 0x16a   :  { %v2284_v30 = vadd.f32 %v3511_v21, %v4935_v22  ;;  %v3514_v31 = vadd.f32 %v3513_v29, %v3512_v25  ;;  %v3577_v32 = vpop.f32.mrb[31].mxu1 }
 0x16b   :  { %v3578_v33 = vadd.f32 %v3577_v32, %v3576_v28 }
 0x16c   :  { %v4980_v35 = vadd.f32 %v3575_v26, %v2284_v30  ;;  %v2287_v36 = vadd.f32 %v3514_v31, %v4935_v22 }
 0x16e   :  { %v4983_v39 = vadd.f32 %v3578_v33, %v2287_v36  ;;  %v3595_v40 = vpop.f32.mrb[32].mxu0 }
 0x16f   :  { %v3596_v41 = vpop.f32.mrb[33].mxu0  ;;  %v3659_v42 = vpop.f32.mrb[32].mxu1 }
 0x170   :  { %v3597_v43 = vadd.f32 %v3596_v41, %v3595_v40  ;;  %v3598_v45 = vpop.f32.mrb[34].mxu0  ;;  %v3660_v47 = vpop.f32.mrb[33].mxu1 }
 0x171   :  { %v3599_v48 = vpop.f32.mrb[35].mxu0  ;;  %v3661_v50 = vadd.f32 %v3660_v47, %v3659_v42  ;;  %v3662_v51 = vpop.f32.mrb[34].mxu1 }
 0x172   :  { %v2422_v49 = vadd.f32 %v3597_v43, %v4938_v34  ;;  %v3600_v53 = vadd.f32 %v3599_v48, %v3598_v45  ;;  %v3663_v55 = vpop.f32.mrb[35].mxu1 }
 0x173   :  { %v3664_v58 = vadd.f32 %v3663_v55, %v3662_v51 }
 0x174   :  { %v2519_v56 = vadd.f32 %v3661_v50, %v2422_v49  ;;  %v2425_v57 = vadd.f32 %v3600_v53, %v4941_v37 }
 0x176   :  { %v2581_v22 = vmul.f32 0.01, %v2519_v56  ;;  %v2522_v59 = vadd.f32 %v3664_v58, %v2425_v57  ;;  %v3601_v60 = vpop.f32.mrb[36].mxu0 }
 0x177   :  { %v3602_v61 = vpop.f32.mrb[37].mxu0  ;;  %v3665_v1 = vpop.f32.mrb[36].mxu1 }
 0x178   :  { %v2582_v63 = vmul.f32 0.01, %v2522_v59  ;;  %v3603_v2 = vadd.f32 %v3602_v61, %v3601_v60  ;;  %v3604_v3 = vpop.f32.mrb[38].mxu0  ;;  %v2597_v4 = vmax.f32 %v2519_v56, %v2581_v22  ;;  %v3666_v5 = vpop.f32.mrb[37].mxu1 }
 0x179   :  { %v3605_v6 = vpop.f32.mrb[39].mxu0  ;;  %v3667_v38 = vadd.f32 %v3666_v5, %v3665_v1  ;;  %v3668_v10 = vpop.f32.mrb[38].mxu1 }
 0x17a   :  { %v2598_v34 = vmax.f32 %v2522_v59, %v2582_v63  ;;  %v2430_v8 = vadd.f32 %v3603_v2, %v4944_v52  ;;  %v3606_v11 = vadd.f32 %v3605_v6, %v3604_v3  ;;  %v3669_v12 = vpop.f32.mrb[39].mxu1 }
 0x17b   :  { %v3670_v15 = vadd.f32 %v3669_v12, %v3668_v10 }
 0x17c   :  { %v2527_v37 = vadd.f32 %v3667_v38, %v2430_v8  ;;  %v2433_v13 = vadd.f32 %v3606_v11, %v4947_v54  ;;  %v2613_v16 = vpack.c.bf16 %v2598_v34, %v2597_v4 }
 0x17e   :  { %v2583_v18 = vmul.f32 0.01, %v2527_v37  ;;  %v2530_v19 = vadd.f32 %v3670_v15, %v2433_v13  ;;  %v3607_v20 = vpop.f32.mrb[40].mxu0  ;;  %3771 = vmatprep.mubr.bf16.mxu0 %v2613_v16 }
 0x17f   :  { %v3608_v21 = vpop.f32.mrb[41].mxu0  ;;  %v3671_v25 = vpop.f32.mrb[40].mxu1 }
 0x180   :  { %v2584_v23 = vmul.f32 0.01, %v2530_v19  ;;  %v3609_v26 = vadd.f32 %v3608_v21, %v3607_v20  ;;  %v3610_v28 = vpop.f32.mrb[42].mxu0  ;;  %v2599_v29 = vmax.f32 %v2527_v37, %v2583_v18  ;;  %v3672_v52 = vpop.f32.mrb[41].mxu1 }
 0x181   :  { %v3611_v30 = vpop.f32.mrb[43].mxu0  ;;  %v3673_v33 = vadd.f32 %v3672_v52, %v3671_v25  ;;  %v3674_v36 = vpop.f32.mrb[42].mxu1 }
 0x182   :  { %v2600_v31 = vmax.f32 %v2530_v19, %v2584_v23  ;;  %v2438_v32 = vadd.f32 %v3609_v26, %v4950_v7  ;;  %v3612_v54 = vadd.f32 %v3611_v30, %v3610_v28  ;;  %v3675_v40 = vpop.f32.mrb[43].mxu1 }
 0x183   :  { %v3676_v45 = vadd.f32 %v3675_v40, %v3674_v36 }
 0x184   :  { %v2614_v41 = vpack.c.bf16 %v2600_v31, %v2599_v29  ;;  %v2535_v42 = vadd.f32 %v3673_v33, %v2438_v32  ;;  %v2441_v43 = vadd.f32 %v3612_v54, %v4953_v9 }
 0x186   :  { %v2585_v47 = vmul.f32 0.01, %v2535_v42  ;;  %v2538_v48 = vadd.f32 %v3676_v45, %v2441_v43  ;;  %v3613_v49 = vpop.f32.mrb[44].mxu0  ;;  %3772 = vmatmul.mubr.bf16.vlgmr.msra.gmra.mrb[64].mxu0 %v2614_v41 }
 0x187   :  { %v3614_v50 = vpop.f32.mrb[45].mxu0  ;;  %v3677_v53 = vpop.f32.mrb[44].mxu1 }
 0x188   :  { %v2586_v51 = vmul.f32 0.01, %v2538_v48  ;;  %v3615_v55 = vadd.f32 %v3614_v50, %v3613_v49  ;;  %v3616_v56 = vpop.f32.mrb[46].mxu0  ;;  %v2601_v57 = vmax.f32 %v2535_v42, %v2585_v47  ;;  %v3678_v7 = vpop.f32.mrb[45].mxu1 }
 0x189   :  { %v3617_v58 = vpop.f32.mrb[47].mxu0  ;;  %v3679_v60 = vadd.f32 %v3678_v7, %v3677_v53  ;;  %v3680_v61 = vpop.f32.mrb[46].mxu1 }
 0x18a   :  { %v2602_v22 = vmax.f32 %v2538_v48, %v2586_v51  ;;  %v2446_v59 = vadd.f32 %v3615_v55, %v4956_v24  ;;  %v3618_v63 = vadd.f32 %v3617_v58, %v3616_v56  ;;  %v3681_v9 = vpop.f32.mrb[47].mxu1 }
 0x18b   :  { %v3682_v3 = vadd.f32 %v3681_v9, %v3680_v61 }
 0x18c   :  { %v2543_v1 = vadd.f32 %v3679_v60, %v2446_v59  ;;  %v2449_v2 = vadd.f32 %v3618_v63, %v4959_v27  ;;  %v2615_v4 = vpack.c.bf16 %v2602_v22, %v2601_v57 }
 0x18e   :  { %v2587_v5 = vmul.f32 0.01, %v2543_v1  ;;  %v2546_v6 = vadd.f32 %v3682_v3, %v2449_v2  ;;  %v3619_v34 = vpop.f32.mrb[48].mxu0  ;;  %3775 = vmatprep.mubr.bf16.mxu0 %v2615_v4 }
 0x18f   :  { %v3620_v8 = vpop.f32.mrb[49].mxu0  ;;  %v3683_v10 = vpop.f32.mrb[48].mxu1 }
 0x190   :  { %v2588_v38 = vmul.f32 0.01, %v2546_v6  ;;  %v3621_v11 = vadd.f32 %v3620_v8, %v3619_v34  ;;  %v3622_v12 = vpop.f32.mrb[50].mxu0  ;;  %v2603_v37 = vmax.f32 %v2543_v1, %v2587_v5  ;;  %v3684_v24 = vpop.f32.mrb[49].mxu1 }
 0x191   :  { %v3623_v13 = vpop.f32.mrb[51].mxu0  ;;  %v3685_v18 = vadd.f32 %v3684_v24, %v3683_v10  ;;  %v3686_v19 = vpop.f32.mrb[50].mxu1 }
 0x192   :  { %v2604_v15 = vmax.f32 %v2546_v6, %v2588_v38  ;;  %v2454_v16 = vadd.f32 %v3621_v11, %v4962_v44  ;;  %v3624_v27 = vadd.f32 %v3623_v13, %v3622_v12  ;;  %v3687_v20 = vpop.f32.mrb[51].mxu1 }
 0x193   :  { %v3688_v25 = vadd.f32 %v3687_v20, %v3686_v19 }
 0x194   :  { %v2551_v21 = vadd.f32 %v3685_v18, %v2454_v16  ;;  %v2457_v23 = vadd.f32 %v3624_v27, %v4965_v46  ;;  %v2616_v26 = vpack.c.bf16 %v2604_v15, %v2603_v37 }
 0x196   :  { %v2589_v28 = vmul.f32 0.01, %v2551_v21  ;;  %v2554_v29 = vadd.f32 %v3688_v25, %v2457_v23  ;;  %v3625_v52 = vpop.f32.mrb[52].mxu0  ;;  %3776 = vmatmul.mubr.bf16.gmra.mrb[68].mxu0 %v2616_v26 }
 0x197   :  { %v3626_v30 = vpop.f32.mrb[53].mxu0  ;;  %v3689_v32 = vpop.f32.mrb[52].mxu1 }
 0x198   :  { %v2590_v31 = vmul.f32 0.01, %v2554_v29  ;;  %v3627_v33 = vadd.f32 %v3626_v30, %v3625_v52  ;;  %v3628_v36 = vpop.f32.mrb[54].mxu0  ;;  %v2605_v54 = vmax.f32 %v2551_v21, %v2589_v28  ;;  %v3690_v44 = vpop.f32.mrb[53].mxu1 }
 0x199   :  { %v3629_v40 = vpop.f32.mrb[55].mxu0  ;;  %v3691_v43 = vadd.f32 %v3690_v44, %v3689_v32  ;;  %v3692_v45 = vpop.f32.mrb[54].mxu1  ;;  %v4146_v44 = vld [vmem:[%s5095_s7 + $0x8] sm:$0xff]  }
 0x19a   :  { %v2606_v41 = vmax.f32 %v2554_v29, %v2590_v31  ;;  %v2462_v42 = vadd.f32 %v3627_v33, %v4968_v62  ;;  %v3630_v46 = vadd.f32 %v3629_v40, %v3628_v36  ;;  %v3693_v47 = vpop.f32.mrb[55].mxu1  ;;  %v4142_v36 = vld [vmem:[#allocation7 + $0x28] sm:$0xff]  }
 0x19b   :  { %v3694_v50 = vadd.f32 %v3693_v47, %v3692_v45  ;;  %3797 = vmatprep.subr.bf16.mxu1 %v4142_v36  ;;  %v4147_v40 = vld [vmem:[%s5095_s7 + $0x10] sm:$0xff]  }
 0x19c   :  { %v2559_v48 = vadd.f32 %v3691_v43, %v2462_v42  ;;  %v2465_v49 = vadd.f32 %v3630_v46, %v4971_v0  ;;  %v2617_v51 = vpack.c.bf16 %v2606_v41, %v2605_v54  ;;  %3798 = vmatpush3.bf16.msra.mxu1 %v4142_v36  ;;  %v4144_v54 = vld [vmem:[#allocation7 + $0x38] sm:$0xff]  }
 0x19d   :  { %v4148_v41 = vld [vmem:[%s5095_s7 + $0x18] sm:$0xff]   ;;  %v4149_v42 = vld [vmem:[%s5095_s7 + $0x20] sm:$0xff]  }
 0x19e   :  { %v2591_v53 = vmul.f32 0.01, %v2559_v48  ;;  %v2562_v55 = vadd.f32 %v3694_v50, %v2465_v49  ;;  %v3631_v56 = vpop.f32.mrb[56].mxu0  ;;  %3779 = vmatprep.mubr.bf16.mxu0 %v2617_v51  ;;  %v5019_v43 = vld [vmem:[%s5092_s4] ss:$0 sm:$0xff] }
 0x19f   :  { %v3632_v57 = vpop.f32.mrb[57].mxu0  ;;  %v3695_v58 = vpop.f32.mrb[56].mxu1 }
 0x1a0   :  { %v2592_v7 = vmul.f32 0.01, %v2562_v55  ;;  %v3633_v22 = vadd.f32 %v3632_v57, %v3631_v56  ;;  %v3634_v59 = vpop.f32.mrb[58].mxu0  ;;  %v2607_v60 = vmax.f32 %v2559_v48, %v2591_v53  ;;  %v3696_v62 = vpop.f32.mrb[57].mxu1 }
 0x1a1   :  { %v3635_v61 = vpop.f32.mrb[59].mxu0  ;;  %v3697_v1 = vadd.f32 %v3696_v62, %v3695_v58  ;;  %v3698_v2 = vpop.f32.mrb[58].mxu1 }
 0x1a2   :  { %v2608_v63 = vmax.f32 %v2562_v55, %v2592_v7  ;;  %v2470_v9 = vadd.f32 %v3633_v22, %v4974_v14  ;;  %v3636_v0 = vadd.f32 %v3635_v61, %v3634_v59  ;;  %v3699_v3 = vpop.f32.mrb[59].mxu1 }
 0x1a3   :  { %v3700_v6 = vadd.f32 %v3699_v3, %v3698_v2 }
 0x1a4   :  { %v2567_v4 = vadd.f32 %v3697_v1, %v2470_v9  ;;  %v2473_v5 = vadd.f32 %v3636_v0, %v4977_v17  ;;  %v2618_v34 = vpack.c.bf16 %v2608_v63, %v2607_v60 }
 0x1a6   :  { %v2593_v8 = vmul.f32 0.01, %v2567_v4  ;;  %v2570_v38 = vadd.f32 %v3700_v6, %v2473_v5  ;;  %v3637_v10 = vpop.f32.mrb[60].mxu0  ;;  %3780 = vmatmul.mubr.bf16.gmra.mrb[72].mxu0 %v2618_v34 }
 0x1a7   :  { %v3638_v11 = vpop.f32.mrb[61].mxu0  ;;  %v3701_v37 = vpop.f32.mrb[60].mxu1 }
 0x1a8   :  { %v2594_v12 = vmul.f32 0.01, %v2570_v38  ;;  %v3639_v24 = vadd.f32 %v3638_v11, %v3637_v10  ;;  %v3640_v13 = vpop.f32.mrb[62].mxu0  ;;  %v2609_v15 = vmax.f32 %v2567_v4, %v2593_v8  ;;  %v3702_v14 = vpop.f32.mrb[61].mxu1 }
 0x1a9   :  { %v3641_v16 = vpop.f32.mrb[63].mxu0  ;;  %v3703_v27 = vadd.f32 %v3702_v14, %v3701_v37  ;;  %v3704_v20 = vpop.f32.mrb[62].mxu1 }
 0x1aa   :  { %v2610_v18 = vmax.f32 %v2570_v38, %v2594_v12  ;;  %v2478_v19 = vadd.f32 %v3639_v24, %v4980_v35  ;;  %v3642_v17 = vadd.f32 %v3641_v16, %v3640_v13  ;;  %v3705_v21 = vpop.f32.mrb[63].mxu1  ;;  %v4143_v35 = vld [vmem:[#allocation7 + $0x30] sm:$0xff]  }
 0x1ab   :  { %v3706_v26 = vadd.f32 %v3705_v21, %v3704_v20  ;;  %3799 = vmatprep.subr.bf16.mxu1 %v4143_v35 }
 0x1ac   :  { %v2575_v23 = vadd.f32 %v3703_v27, %v2478_v19  ;;  %v2481_v25 = vadd.f32 %v3642_v17, %v4983_v39  ;;  %v2619_v28 = vpack.c.bf16 %v2610_v18, %v2609_v15  ;;  %3800 = vmatpush3.bf16.msra.mxu1 %v4143_v35  ;;  %v4145_v39 = vld [vmem:[%s5095_s7] sm:$0xff]  }
 0x1ad   :  { %3801 = vmatprep.subr.bf16.mxu1 %v4144_v54  ;;  %3819 = vmatprep.subr.bf16.mxu0 %v4145_v39 }
 0x1ae   :  { %v2595_v29 = vmul.f32 0.01, %v2575_v23  ;;  %v2578_v52 = vadd.f32 %v3706_v26, %v2481_v25  ;;  %3783 = vmatprep.mubr.bf16.mxu0 %v2619_v28  ;;  %3820 = vmatpush3.bf16.msra.mxu0 %v4145_v39 }
 0x1af   :  { %3821 = vmatprep.subr.bf16.mxu0 %v4146_v44 }
 0x1b0   :  { %v2596_v30 = vmul.f32 0.01, %v2578_v52  ;;  %v2611_v31 = vmax.f32 %v2575_v23, %v2595_v29  ;;  %3802 = vmatpush3.bf16.msra.mxu1 %v4144_v54 }
 0x1b1   :  { %3851 = vmatprep.subr.bf16.mxu1 %v4145_v39 }
 0x1b2   :  { %v2612_v32 = vmax.f32 %v2578_v52, %v2596_v30  ;;  %3822 = vmatpush3.bf16.msra.mxu0 %v4146_v44 }
 0x1b3   :  { %3823 = vmatprep.subr.bf16.mxu0 %v4147_v40 }
 0x1b4   :  { %v2620_v33 = vpack.c.bf16 %v2612_v32, %v2611_v31 }
 0x1b6   :  { %3784 = vmatmul.mubr.bf16.gmra.mrb[76].mxu0 %v2620_v33 }
 0x1b7   :  { %3824 = vmatpush3.bf16.msra.mxu0 %v4147_v40 }
 0x1b8   :  { %3825 = vmatprep.subr.bf16.mxu0 %v4148_v41 }
 0x1bb   :  { %3826 = vmatpush3.bf16.msra.mxu0 %v4148_v41 }
 0x1bc   :  { %3827 = vmatprep.subr.bf16.mxu0 %v4149_v42 }
 0x1bf   :  { %3828 = vmatpush3.bf16.msra.mxu0 %v4149_v42 }
 0x259   :  { %v3773_v45 = vpop.f32.mrb[64].mxu0 }
 0x25a   :  { %v2735_v46 = vadd.f32 %v3773_v45, %v5019_v43  ;;  %v2726_v47 = vpop.f32.mrb[65].mxu0 }
 0x25b   :  { %v2727_v48 = vadd.f32 %v5019_v43, %v2726_v47  ;;  %v3774_v49 = vpop.f32.mrb[66].mxu0 }
 0x25c   :  { %v2791_v50 = vmul.f32 0.01, %v2735_v46  ;;  %v2738_v51 = vadd.f32 %v3774_v49, %v5019_v43  ;;  %v2729_v53 = vpop.f32.mrb[67].mxu0 }
 0x25d   :  { %v2789_v55 = vmul.f32 0.01, %v2727_v48  ;;  %v2730_v56 = vadd.f32 %v5019_v43, %v2729_v53 }
 0x25e   :  { %v2792_v57 = vmul.f32 0.01, %v2738_v51  ;;  %v2807_v58 = vmax.f32 %v2735_v46, %v2791_v50 }
 0x25f   :  { %v2790_v7 = vmul.f32 0.01, %v2730_v56  ;;  %v2805_v59 = vmax.f32 %v2727_v48, %v2789_v55 }
 0x260   :  { %v2808_v22 = vmax.f32 %v2738_v51, %v2792_v57  ;;  %v4152_v57 = vld [vmem:[%s5095_s7 + $0x38] sm:$0xff]  }
 0x261   :  { %v2806_v60 = vmax.f32 %v2730_v56, %v2790_v7  ;;  %v4150_v56 = vld [vmem:[%s5095_s7 + $0x28] sm:$0xff]   ;;  %v5049_v7 = vld [vmem:[%s5094_s6] ss:$0 sm:$0xff] }
 0x262   :  { %v2822_v62 = vpack.c.bf16 %v2808_v22, %v2807_v58  ;;  %3829 = vmatprep.subr.bf16.mxu0 %v4150_v56 }
 0x263   :  { %v2821_v61 = vpack.c.bf16 %v2806_v60, %v2805_v59  ;;  %3830 = vmatpush3.bf16.msra.mxu0 %v4150_v56 }
 0x265   :  { %3803 = vmatprep.mubr.bf16.mxu1 %v2821_v61 }
 0x266   :  { %3804 = vmatmul.mubr.bf16.vlgmr.msra.gmra.mrb[64].mxu1 %v2822_v62 }
 0x267   :  { %3859 = vmatpush3.bf16.msra.mxu1 %v4145_v39 }
 0x268   :  { %3852 = vmatprep.subr.bf16.mxu1 %v4146_v44 }
 0x269   :  { %v3777_v63 = vpop.f32.mrb[68].mxu0 }
 0x26a   :  { %v2751_v9 = vadd.f32 %v3777_v63, %v5019_v43  ;;  %v2742_v1 = vpop.f32.mrb[69].mxu0 }
 0x26b   :  { %v2743_v2 = vadd.f32 %v5019_v43, %v2742_v1  ;;  %v3778_v0 = vpop.f32.mrb[70].mxu0  ;;  %3860 = vmatpush3.bf16.msra.mxu1 %v4146_v44 }
 0x26c   :  { %v2795_v3 = vmul.f32 0.01, %v2751_v9  ;;  %v2754_v4 = vadd.f32 %v3778_v0, %v5019_v43  ;;  %v2745_v5 = vpop.f32.mrb[71].mxu0  ;;  %3853 = vmatprep.subr.bf16.mxu1 %v4147_v40 }
 0x26d   :  { %v2793_v6 = vmul.f32 0.01, %v2743_v2  ;;  %v2746_v34 = vadd.f32 %v5019_v43, %v2745_v5 }
 0x26e   :  { %v2796_v8 = vmul.f32 0.01, %v2754_v4  ;;  %v2811_v10 = vmax.f32 %v2751_v9, %v2795_v3 }
 0x26f   :  { %v2794_v38 = vmul.f32 0.01, %v2746_v34  ;;  %3861 = vmatpush3.bf16.msra.mxu1 %v4147_v40  ;;  %v2809_v12 = vmax.f32 %v2743_v2, %v2793_v6 }
 0x270   :  { %v2812_v11 = vmax.f32 %v2754_v4, %v2796_v8  ;;  %3854 = vmatprep.subr.bf16.mxu1 %v4148_v41 }
 0x271   :  { %v2810_v37 = vmax.f32 %v2746_v34, %v2794_v38 }
 0x272   :  { %v2824_v24 = vpack.c.bf16 %v2812_v11, %v2811_v10 }
 0x273   :  { %v2823_v13 = vpack.c.bf16 %v2810_v37, %v2809_v12  ;;  %3862 = vmatpush3.bf16.msra.mxu1 %v4148_v41 }
 0x274   :  { %3855 = vmatprep.subr.bf16.mxu1 %v4149_v42 }
 0x275   :  { %3807 = vmatprep.mubr.bf16.mxu1 %v2823_v13 }
 0x276   :  { %3808 = vmatmul.mubr.bf16.gmra.mrb[68].mxu1 %v2824_v24 }
 0x277   :  { %3863 = vmatpush3.bf16.msra.mxu1 %v4149_v42 }
 0x278   :  { %3856 = vmatprep.subr.bf16.mxu1 %v4150_v56 }
 0x279   :  { %v3781_v15 = vpop.f32.mrb[72].mxu0 }
 0x27a   :  { %v2767_v14 = vadd.f32 %v3781_v15, %v5019_v43  ;;  %v2758_v16 = vpop.f32.mrb[73].mxu0 }
 0x27b   :  { %v2759_v18 = vadd.f32 %v5019_v43, %v2758_v16  ;;  %v3782_v19 = vpop.f32.mrb[74].mxu0  ;;  %3864 = vmatpush3.bf16.msra.mxu1 %v4150_v56 }
 0x27c   :  { %v2799_v27 = vmul.f32 0.01, %v2767_v14  ;;  %v2770_v20 = vadd.f32 %v3782_v19, %v5019_v43  ;;  %v2761_v17 = vpop.f32.mrb[75].mxu0 }
 0x27d   :  { %v2797_v21 = vmul.f32 0.01, %v2759_v18  ;;  %v2762_v23 = vadd.f32 %v5019_v43, %v2761_v17 }
 0x27e   :  { %v2800_v25 = vmul.f32 0.01, %v2770_v20  ;;  %v2815_v28 = vmax.f32 %v2767_v14, %v2799_v27 }
 0x27f   :  { %v2798_v26 = vmul.f32 0.01, %v2762_v23  ;;  %v2813_v52 = vmax.f32 %v2759_v18, %v2797_v21 }
 0x280   :  { %v2816_v29 = vmax.f32 %v2770_v20, %v2800_v25 }
 0x281   :  { %v2814_v30 = vmax.f32 %v2762_v23, %v2798_v26 }
 0x282   :  { %v2826_v31 = vpack.c.bf16 %v2816_v29, %v2815_v28 }
 0x283   :  { %v2825_v32 = vpack.c.bf16 %v2814_v30, %v2813_v52 }
 0x285   :  { %3811 = vmatprep.mubr.bf16.mxu1 %v2825_v32 }
 0x286   :  { %3812 = vmatmul.mubr.bf16.gmra.mrb[72].mxu1 %v2826_v31 }
 0x289   :  { %v3785_v33 = vpop.f32.mrb[76].mxu0 }
 0x28a   :  { %v2783_v36 = vadd.f32 %v3785_v33, %v5019_v43  ;;  %v2774_v35 = vpop.f32.mrb[77].mxu0 }
 0x28b   :  { %v2775_v54 = vadd.f32 %v5019_v43, %v2774_v35  ;;  %v3786_v39 = vpop.f32.mrb[78].mxu0 }
 0x28c   :  { %v2803_v44 = vmul.f32 0.01, %v2783_v36  ;;  %v2786_v40 = vadd.f32 %v3786_v39, %v5019_v43  ;;  %v2777_v41 = vpop.f32.mrb[79].mxu0 }
 0x28d   :  { %v2801_v42 = vmul.f32 0.01, %v2775_v54  ;;  %v2778_v45 = vadd.f32 %v5019_v43, %v2777_v41  ;;  %v4151_v43 = vld [vmem:[%s5095_s7 + $0x30] sm:$0xff]  }
 0x28e   :  { %v2804_v46 = vmul.f32 0.01, %v2786_v40  ;;  %v2819_v48 = vmax.f32 %v2783_v36, %v2803_v44  ;;  %3831 = vmatprep.subr.bf16.mxu0 %v4151_v43  ;;  %3857 = vmatprep.subr.bf16.mxu1 %v4151_v43 }
 0x28f   :  { %v2802_v47 = vmul.f32 0.01, %v2778_v45  ;;  %v2817_v50 = vmax.f32 %v2775_v54, %v2801_v42  ;;  %3832 = vmatpush3.bf16.msra.mxu0 %v4151_v43  ;;  %3865 = vmatpush3.bf16.msra.mxu1 %v4151_v43 }
 0x290   :  { %v2820_v49 = vmax.f32 %v2786_v40, %v2804_v46  ;;  %3833 = vmatprep.subr.bf16.mxu0 %v4152_v57  ;;  %3858 = vmatprep.subr.bf16.mxu1 %v4152_v57 }
 0x291   :  { %v2818_v51 = vmax.f32 %v2778_v45, %v2802_v47 }
 0x292   :  { %v2828_v53 = vpack.c.bf16 %v2820_v49, %v2819_v48 }
 0x293   :  { %v2827_v55 = vpack.c.bf16 %v2818_v51, %v2817_v50  ;;  %3834 = vmatpush3.bf16.msra.mxu0 %v4152_v57  ;;  %3866 = vmatpush3.bf16.msra.mxu1 %v4152_v57 }
 0x295   :  { %3815 = vmatprep.mubr.bf16.mxu1 %v2827_v55 }
 0x296   :  { %3816 = vmatmul.mubr.bf16.gmra.mrb[76].mxu1 %v2828_v53 }
 0x339   :  { %v3805_v58 = vpop.f32.mrb[64].mxu1 }
 0x33a   :  { %v2943_v22 = vadd.f32 %v3805_v58, %v5049_v7  ;;  %v2934_v59 = vpop.f32.mrb[65].mxu1 }
 0x33b   :  { %v2935_v60 = vadd.f32 %v5049_v7, %v2934_v59  ;;  %v3806_v62 = vpop.f32.mrb[66].mxu1 }
 0x33c   :  { %v2999_v61 = vmul.f32 0.01, %v2943_v22  ;;  %v2946_v63 = vadd.f32 %v3806_v62, %v5049_v7  ;;  %v2937_v9 = vpop.f32.mrb[67].mxu1 }
 0x33d   :  { %v2997_v1 = vmul.f32 0.01, %v2935_v60  ;;  %v2938_v2 = vadd.f32 %v5049_v7, %v2937_v9 }
 0x33e   :  { %v3000_v0 = vmul.f32 0.01, %v2946_v63  ;;  %v3015_v4 = vmax.f32 %v2943_v22, %v2999_v61 }
 0x33f   :  { %v2998_v3 = vmul.f32 0.01, %v2938_v2  ;;  %v3013_v6 = vmax.f32 %v2935_v60, %v2997_v1 }
 0x340   :  { %v3016_v5 = vmax.f32 %v2946_v63, %v3000_v0 }
 0x341   :  { %v3014_v34 = vmax.f32 %v2938_v2, %v2998_v3  ;;  %v5067_v2 = vld [vmem:[#allocation2] ss:$0 sm:$0xff] }
 0x342   :  { %v3030_v8 = vpack.c.bf16 %v3016_v5, %v3015_v4 }
 0x343   :  { %v3029_v38 = vpack.c.bf16 %v3014_v34, %v3013_v6 }
 0x345   :  { %3835 = vmatprep.mubr.bf16.mxu0 %v3029_v38 }
 0x346   :  { %3836 = vmatmul.mubr.bf16.vlgmr.msra.gmra.mrb[80].mxu0 %v3030_v8 }
 0x349   :  { %v3809_v10 = vpop.f32.mrb[68].mxu1 }
 0x34a   :  { %v2959_v11 = vadd.f32 %v3809_v10, %v5049_v7  ;;  %v2950_v12 = vpop.f32.mrb[69].mxu1 }
 0x34b   :  { %v2951_v37 = vadd.f32 %v5049_v7, %v2950_v12  ;;  %v3810_v24 = vpop.f32.mrb[70].mxu1 }
 0x34c   :  { %v3003_v13 = vmul.f32 0.01, %v2959_v11  ;;  %v2962_v15 = vadd.f32 %v3810_v24, %v5049_v7  ;;  %v2953_v14 = vpop.f32.mrb[71].mxu1 }
 0x34d   :  { %v3001_v16 = vmul.f32 0.01, %v2951_v37  ;;  %v2954_v18 = vadd.f32 %v5049_v7, %v2953_v14 }
 0x34e   :  { %v3004_v19 = vmul.f32 0.01, %v2962_v15  ;;  %v3019_v20 = vmax.f32 %v2959_v11, %v3003_v13 }
 0x34f   :  { %v3002_v27 = vmul.f32 0.01, %v2954_v18  ;;  %v3017_v21 = vmax.f32 %v2951_v37, %v3001_v16 }
 0x350   :  { %v3020_v17 = vmax.f32 %v2962_v15, %v3004_v19 }
 0x351   :  { %v3018_v23 = vmax.f32 %v2954_v18, %v3002_v27 }
 0x352   :  { %v3032_v25 = vpack.c.bf16 %v3020_v17, %v3019_v20 }
 0x353   :  { %v3031_v26 = vpack.c.bf16 %v3018_v23, %v3017_v21 }
 0x355   :  { %3839 = vmatprep.mubr.bf16.mxu0 %v3031_v26 }
 0x356   :  { %3840 = vmatmul.mubr.bf16.gmra.mrb[84].mxu0 %v3032_v25 }
 0x359   :  { %v3813_v28 = vpop.f32.mrb[72].mxu1 }
 0x35a   :  { %v2975_v29 = vadd.f32 %v3813_v28, %v5049_v7  ;;  %v2966_v52 = vpop.f32.mrb[73].mxu1 }
 0x35b   :  { %v2967_v30 = vadd.f32 %v5049_v7, %v2966_v52  ;;  %v3814_v31 = vpop.f32.mrb[74].mxu1 }
 0x35c   :  { %v3007_v32 = vmul.f32 0.01, %v2975_v29  ;;  %v2978_v33 = vadd.f32 %v3814_v31, %v5049_v7  ;;  %v2969_v36 = vpop.f32.mrb[75].mxu1 }
 0x35d   :  { %v3005_v35 = vmul.f32 0.01, %v2967_v30  ;;  %v2970_v54 = vadd.f32 %v5049_v7, %v2969_v36 }
 0x35e   :  { %v3008_v39 = vmul.f32 0.01, %v2978_v33  ;;  %v3023_v40 = vmax.f32 %v2975_v29, %v3007_v32 }
 0x35f   :  { %v3006_v44 = vmul.f32 0.01, %v2970_v54  ;;  %v3021_v42 = vmax.f32 %v2967_v30, %v3005_v35 }
 0x360   :  { %v3024_v41 = vmax.f32 %v2978_v33, %v3008_v39 }
 0x361   :  { %v3022_v45 = vmax.f32 %v2970_v54, %v3006_v44 }
 0x362   :  { %v3034_v46 = vpack.c.bf16 %v3024_v41, %v3023_v40 }
 0x363   :  { %v3033_v47 = vpack.c.bf16 %v3022_v45, %v3021_v42 }
 0x365   :  { %3843 = vmatprep.mubr.bf16.mxu1 %v3033_v47 }
 0x366   :  { %3844 = vmatmul.mubr.bf16.vlgmr.msra.gmra.mrb[80].mxu1 %v3034_v46 }
 0x369   :  { %v3817_v48 = vpop.f32.mrb[76].mxu1 }
 0x36a   :  { %v2991_v49 = vadd.f32 %v3817_v48, %v5049_v7  ;;  %v2982_v50 = vpop.f32.mrb[77].mxu1 }
 0x36b   :  { %v2983_v51 = vadd.f32 %v5049_v7, %v2982_v50  ;;  %v3818_v53 = vpop.f32.mrb[78].mxu1 }
 0x36c   :  { %v3011_v55 = vmul.f32 0.01, %v2991_v49  ;;  %v2994_v56 = vadd.f32 %v3818_v53, %v5049_v7  ;;  %v2985_v43 = vpop.f32.mrb[79].mxu1 }
 0x36d   :  { %v3009_v57 = vmul.f32 0.01, %v2983_v51  ;;  %v2986_v58 = vadd.f32 %v5049_v7, %v2985_v43 }
 0x36e   :  { %v3012_v22 = vmul.f32 0.01, %v2994_v56  ;;  %v3027_v60 = vmax.f32 %v2991_v49, %v3011_v55 }
 0x36f   :  { %v3010_v59 = vmul.f32 0.01, %v2986_v58  ;;  %v3025_v61 = vmax.f32 %v2983_v51, %v3009_v57 }
 0x370   :  { %v3028_v62 = vmax.f32 %v2994_v56, %v3012_v22 }
 0x371   :  { %v3026_v63 = vmax.f32 %v2986_v58, %v3010_v59 }
 0x372   :  { %v3036_v9 = vpack.c.bf16 %v3028_v62, %v3027_v60 }
 0x373   :  { %v3035_v1 = vpack.c.bf16 %v3026_v63, %v3025_v61 }
 0x375   :  { %3847 = vmatprep.mubr.bf16.mxu1 %v3035_v1 }
 0x376   :  { %3848 = vmatmul.mubr.bf16.gmra.mrb[84].mxu1 %v3036_v9 }
 0x419   :  { %v3837_v0 = vpop.f32.mrb[80].mxu0 }
 0x41a   :  { %v3151_v3 = vadd.f32 %v3837_v0, %v5067_v2  ;;  %v3142_v4 = vpop.f32.mrb[81].mxu0 }
 0x41b   :  { %v3143_v5 = vadd.f32 %v5067_v2, %v3142_v4  ;;  %v3838_v6 = vpop.f32.mrb[82].mxu0 }
 0x41c   :  { %v3207_v7 = vsub.f32 0.0, %v3151_v3  ;;  %v3154_v34 = vadd.f32 %v3838_v6, %v5067_v2  ;;  %v3145_v8 = vpop.f32.mrb[83].mxu0 }
 0x41d   :  { %v3205_v38 = vsub.f32 0.0, %v3143_v5  ;;  %v3146_v10 = vadd.f32 %v5067_v2, %v3145_v8 }
 0x41e   :  { %v3225_v11 = vmul.f32 1.442695, %v3207_v7  ;;  %v3208_v12 = vsub.f32 0.0, %v3154_v34 }
 0x41f   :  { %v3221_v37 = vmul.f32 1.442695, %v3205_v38  ;;  %v3206_v24 = vsub.f32 0.0, %v3146_v10 }
 0x420   :  { %4153 = vpow2.f32 %v3225_v11  ;;  %v3227_v13 = vmul.f32 1.442695, %v3208_v12 }
 0x421   :  { %4155 = vpow2.f32 %v3221_v37  ;;  %v3223_v15 = vmul.f32 1.442695, %v3206_v24 }
 0x422   :  { %4157 = vpow2.f32 %v3227_v13 }
 0x423   :  { %4159 = vpow2.f32 %v3223_v15 }
 0x429   :  { %v3841_v14 = vpop.f32.mrb[84].mxu0 }
 0x42a   :  { %v4154_v16 = vpop.eup %4153  ;;  %v3167_v18 = vadd.f32 %v3841_v14, %v5067_v2  ;;  %v3158_v19 = vpop.f32.mrb[85].mxu0 }
 0x42b   :  { %v4156_v27 = vpop.eup %4155  ;;  %v3255_v20 = vadd.f32 1.0, %v4154_v16  ;;  %v3159_v17 = vadd.f32 %v5067_v2, %v3158_v19  ;;  %v3842_v21 = vpop.f32.mrb[86].mxu0 }
 0x42c   :  { %v4158_v23 = vpop.eup %4157  ;;  %v3253_v25 = vadd.f32 1.0, %v4156_v27  ;;  %v3211_v26 = vsub.f32 0.0, %v3167_v18  ;;  %v3170_v28 = vadd.f32 %v3842_v21, %v5067_v2  ;;  %v3161_v29 = vpop.f32.mrb[87].mxu0 }
 0x42d   :  { %v4160_v52 = vpop.eup %4159  ;;  %4161 = vrcp.f32 %v3255_v20  ;;  %v3256_v30 = vadd.f32 1.0, %v4158_v23  ;;  %v3209_v31 = vsub.f32 0.0, %v3159_v17  ;;  %v3162_v32 = vadd.f32 %v5067_v2, %v3161_v29 }
 0x42e   :  { %4163 = vrcp.f32 %v3253_v25  ;;  %v3254_v33 = vadd.f32 1.0, %v4160_v52  ;;  %v3233_v36 = vmul.f32 1.442695, %v3211_v26  ;;  %v3212_v35 = vsub.f32 0.0, %v3170_v28 }
 0x42f   :  { %4165 = vrcp.f32 %v3256_v30  ;;  %v3229_v54 = vmul.f32 1.442695, %v3209_v31  ;;  %v3210_v39 = vsub.f32 0.0, %v3162_v32 }
 0x430   :  { %4167 = vrcp.f32 %v3254_v33  ;;  %v3235_v44 = vmul.f32 1.442695, %v3212_v35 }
 0x431   :  { %4169 = vpow2.f32 %v3233_v36  ;;  %v3231_v40 = vmul.f32 1.442695, %v3210_v39 }
 0x432   :  { %4171 = vpow2.f32 %v3229_v54 }
 0x433   :  { %4173 = vpow2.f32 %v3235_v44 }
 0x434   :  { %4175 = vpow2.f32 %v3231_v40 }
 0x437   :  { %v4162_v41 = vpop.eup %4161 }
 0x438   :  { %v4164_v42 = vpop.eup %4163 }
 0x439   :  { %v4166_v45 = vpop.eup %4165  ;;  %3302 = vst.msk [vmem:[#allocation8] sm:$0xff] %vm3301_vm0, %v4164_v42  ;;  %v3845_v46 = vpop.f32.mrb[80].mxu1 }
 0x43a   :  { %v4168_v47 = vpop.eup %4167  ;;  %v3183_v48 = vadd.f32 %v3845_v46, %v5067_v2  ;;  %v3174_v49 = vpop.f32.mrb[81].mxu1 }
 0x43b   :  { %v4170_v50 = vpop.eup %4169  ;;  %v3175_v51 = vadd.f32 %v5067_v2, %v3174_v49  ;;  %v3846_v53 = vpop.f32.mrb[82].mxu1 }
 0x43c   :  { %v4172_v55 = vpop.eup %4171  ;;  %v3259_v56 = vadd.f32 1.0, %v4170_v50  ;;  %v3215_v43 = vsub.f32 0.0, %v3183_v48  ;;  %v3186_v57 = vadd.f32 %v3846_v53, %v5067_v2  ;;  %v3177_v58 = vpop.f32.mrb[83].mxu1 }
 0x43d   :  { %v4174_v22 = vpop.eup %4173  ;;  %v3257_v59 = vadd.f32 1.0, %v4172_v55  ;;  %v3213_v60 = vsub.f32 0.0, %v3175_v51  ;;  %v3178_v62 = vadd.f32 %v5067_v2, %v3177_v58 }
 0x43e   :  { %v4176_v61 = vpop.eup %4175  ;;  %4177 = vrcp.f32 %v3259_v56  ;;  %v3260_v63 = vadd.f32 1.0, %v4174_v22  ;;  %v3241_v9 = vmul.f32 1.442695, %v3215_v43  ;;  %v3216_v1 = vsub.f32 0.0, %v3186_v57 }
 0x43f   :  { %4179 = vrcp.f32 %v3257_v59  ;;  %v3258_v0 = vadd.f32 1.0, %v4176_v61  ;;  %v3237_v3 = vmul.f32 1.442695, %v3213_v60  ;;  %v3214_v4 = vsub.f32 0.0, %v3178_v62 }
 0x440   :  { %v3335_v5 = vld [vmem:[#allocation8] sm:$0x3]  ;;  %4181 = vrcp.f32 %v3260_v63  ;;  %v3243_v6 = vmul.f32 1.442695, %v3216_v1 }
 0x441   :  { %3336 = vst [vmem:[%s5097_s9] sm:$0x3] %v3335_v5  ;;  %4183 = vrcp.f32 %v3258_v0  ;;  %v3239_v7 = vmul.f32 1.442695, %v3214_v4 }
 0x442   :  { %4185 = vpow2.f32 %v3241_v9 }
 0x443   :  { %4187 = vpow2.f32 %v3237_v3 }
 0x444   :  { %4189 = vpow2.f32 %v3243_v6 }
 0x445   :  { %4191 = vpow2.f32 %v3239_v7 }
 0x448   :  { %v4178_v34 = vpop.eup %4177 }
 0x449   :  { %v4180_v8 = vpop.eup %4179  ;;  %v3849_v38 = vpop.f32.mrb[84].mxu1 }
 0x44a   :  { %v4182_v10 = vpop.eup %4181  ;;  %v3199_v11 = vadd.f32 %v3849_v38, %v5067_v2  ;;  %v3190_v12 = vpop.f32.mrb[85].mxu1 }
 0x44b   :  { %v4184_v37 = vpop.eup %4183  ;;  %v3191_v24 = vadd.f32 %v5067_v2, %v3190_v12  ;;  %v3850_v13 = vpop.f32.mrb[86].mxu1 }
 0x44c   :  { %v4186_v15 = vpop.eup %4185  ;;  %v3219_v14 = vsub.f32 0.0, %v3199_v11  ;;  %v3202_v16 = vadd.f32 %v3850_v13, %v5067_v2  ;;  %v3193_v18 = vpop.f32.mrb[87].mxu1 }
 0x44d   :  { %v4188_v19 = vpop.eup %4187  ;;  %v3263_v27 = vadd.f32 1.0, %v4186_v15  ;;  %v3217_v20 = vsub.f32 0.0, %v3191_v24  ;;  %v3194_v17 = vadd.f32 %v5067_v2, %v3193_v18 }
 0x44e   :  { %v4190_v21 = vpop.eup %4189  ;;  %v3261_v23 = vadd.f32 1.0, %v4188_v19  ;;  %v3220_v25 = vsub.f32 0.0, %v3202_v16  ;;  %v3249_v29 = vmul.f32 1.442695, %v3219_v14 }
 0x44f   :  { %v4192_v26 = vpop.eup %4191  ;;  %4193 = vrcp.f32 %v3263_v27  ;;  %v3264_v28 = vadd.f32 1.0, %v4190_v21  ;;  %v3218_v52 = vsub.f32 0.0, %v3194_v17  ;;  %v3245_v31 = vmul.f32 1.442695, %v3217_v20 }
 0x450   :  { %4195 = vrcp.f32 %v3261_v23  ;;  %v3262_v30 = vadd.f32 1.0, %v4192_v26  ;;  %v3251_v32 = vmul.f32 1.442695, %v3220_v25 }
 0x451   :  { %4197 = vrcp.f32 %v3264_v28  ;;  %v3247_v33 = vmul.f32 1.442695, %v3218_v52 }
 0x452   :  { %4199 = vrcp.f32 %v3262_v30 }
 0x453   :  { %4201 = vpow2.f32 %v3249_v29 }
 0x454   :  { %4203 = vpow2.f32 %v3245_v31 }
 0x455   :  { %4205 = vpow2.f32 %v3251_v32 }
 0x456   :  { %4207 = vpow2.f32 %v3247_v33 }
 0x459   :  { %v4194_v2 = vpop.eup %4193 }
 0x45a   :  { %v4196_v36 = vpop.eup %4195 }
 0x45b   :  { %v4198_v35 = vpop.eup %4197 }
 0x45c   :  { %v4200_v54 = vpop.eup %4199 }
 0x45d   :  { %v4202_v39 = vpop.eup %4201 }
 0x45e   :  { %v4204_v44 = vpop.eup %4203  ;;  %v3267_v40 = vadd.f32 1.0, %v4202_v39 }
 0x45f   :  { %v4206_v41 = vpop.eup %4205  ;;  %v3265_v42 = vadd.f32 1.0, %v4204_v44 }
 0x460   :  { %v4208_v45 = vpop.eup %4207  ;;  %4209 = vrcp.f32 %v3267_v40  ;;  %v3268_v46 = vadd.f32 1.0, %v4206_v41 }
 0x461   :  { %4211 = vrcp.f32 %v3265_v42  ;;  %v3266_v47 = vadd.f32 1.0, %v4208_v45 }
 0x462   :  { %4213 = vrcp.f32 %v3268_v46 }
 0x463   :  { %4215 = vrcp.f32 %v3266_v47 }
 0x46a   :  { %v4210_v48 = vpop.eup %4209 }
 0x46b   :  { %v4212_v49 = vpop.eup %4211 }
 0x46c   :  { %v4214_v50 = vpop.eup %4213 }
 0x46d   :  { %v4216_v51 = vpop.eup %4215 }
 0x46e   :  { %3353 = vsyncpa [#allocation4], 1 }
 0x46f   :  { %3354 = vsyncpa [#allocation6], 1 }

// kernel: tpu_custom_call.1
= control target key start
LH: loop header
LB: loop body
LE: loop exit
PB: predicated region body
PF: predicated region fallthrough
CT: control target
= control target key end

     0   :  { %s5088_s0 = inlined_call_operand.vmem [shape: f32[2,1024], index: 0, kind: input, shape index: {}]   ;;  %s5089_s1 = inlined_call_operand.hbm [shape: bf16[1024,128], index: 1, kind: input, shape index: {}]   ;;  %s5090_s2 = inlined_call_operand.hbm [shape: f32[1,128], index: 2, kind: input, shape index: {}]   ;;  %s5091_s3 = inlined_call_operand.vmem [shape: bf16[128,128], index: 3, kind: input, shape index: {}]   ;;  %s5092_s4 = inlined_call_operand.vmem [shape: f32[1,128], index: 4, kind: input, shape index: {}]   ;;  %s5093_s5 = inlined_call_operand.hbm [shape: bf16[128,128], index: 5, kind: input, shape index: {}]   ;;  %s5094_s6 = inlined_call_operand.vmem [shape: f32[1,128], index: 6, kind: input, shape index: {}]   ;;  %s5095_s7 = inlined_call_operand.vmem [shape: bf16[128,1], index: 7, kind: input, shape index: {}]   ;;  %s5096_s8 = inlined_call_operand.<no memory space> [shape: f32[1,1], index: 8, kind: input, shape index: {}]   ;;  %s5097_s9 = inlined_call_operand.vmem [shape: f32[2,1], index: 9, kind: output, shape index: {}]  }
   0x1   :  { %v14_v0 = vstv %s5096_s8 }
   0x2   :  { %15 = vst [vmem:[#allocation2] sm:$0x1] %v14_v0 }
   0x3   :  { %16 = vsyncpa [#allocation4], 0 }
   0x4   :  { %17 = vsyncpa [#allocation6], 0  ;;  %s4287_s11 = smov [#allocation5]   ;;  %s4288_s13 = smov [#allocation3]  }
   0x5   :  { %s38_s12 = sshll.u32 %s4287_s11, 4  ;;  %s25_s14 = sshll.u32 %s4288_s13, 4  ;;  %s39_s12 = int_to_ptr.vmem [resolvable:$true] %s38_s12  ;;  %s4346_s14 = int_to_ptr.vmem [resolvable:$true] %s25_s14 }
   0x6   :  { %s4217_s17 = scalar_lea.hbm %s5090_s2, 16 }
   0x7   :  { %p4218_p0 = scmp.ne.s32.totalorder %s5090_s2, %s4217_s17  ;;  %p4221_p1 = scmp.lt.u32.totalorder %s4217_s17, %s5090_s2 }
   0x9   :  { %p4223_p2 = pnand %p4221_p1, %p4218_p0 }
   0xb   :  { %4226 = shalt.err (!%p4223_p2)
}
   0xc   :  { %s4227_s21 = scalar_lea.vmem %s39_s12, 16  ;;  %s4231_s22 = scalar_lea.vmem %s39_s12, 32 }
   0xd   :  { %p4228_p3 = scmp.ne.s32.totalorder %s39_s12, %s4227_s21  ;;  %p4232_p4 = scmp.lt.s32.totalorder %s39_s12, %s39_s12 }
   0xe   :  { %p4233_p5 = scmp.lt.s32.totalorder %s4231_s22, %s4227_s21 }
  0x10   :  { %p4234_p6 = por %p4233_p5, %p4232_p4 }
  0x12   :  { %p4235_p7 = pnand %p4234_p6, %p4228_p3 }
  0x14   :  { %4238 = shalt.err (!%p4235_p7)
}
  0x15   :  { %41 = dma.hbm_to_vmem [thread:$0]  %s5090_s2, 16, %s39_s12, [#allocation6]  }
  0x16   :  { %s4239_s27 = scalar_lea.hbm %s5089_s1, 8192 }
  0x17   :  { %p4240_p8 = scmp.ne.s32.totalorder %s5089_s1, %s4239_s27  ;;  %p4243_p9 = scmp.lt.u32.totalorder %s4239_s27, %s5089_s1 }
  0x19   :  { %p4245_p10 = pnand %p4243_p9, %p4240_p8 }
  0x1b   :  { %4248 = shalt.err (!%p4245_p10)
}
  0x1c   :  { %s4249_s11 = scalar_lea.vmem %s4346_s14, 8192  ;;  %p4254_p12 = scmp.lt.s32.totalorder %s4346_s14, %s4346_s14 }
  0x1d   :  { %p4250_p11 = scmp.ne.s32.totalorder %s4346_s14, %s4249_s11  ;;  %p4255_p13 = scmp.lt.s32.totalorder %s4249_s11, %s4249_s11 }
  0x1f   :  { %p4256_p0 = por %p4255_p13, %p4254_p12 }
  0x21   :  { %p4257_p1 = pnand %p4256_p0, %p4250_p11 }
  0x23   :  { %4260 = shalt.err (!%p4257_p1)
}
  0x24   :  { %s4289_s2 = smov 64   ;;  %s4290_s12 = smov 4  }
  0x25   :  { %31 = dma.hbm_to_vmem [thread:$0]  %s5089_s1, 8192, %s4346_s14, [#allocation4], %s4289_s2, %s4289_s2, %s4290_s12  }
  0x26   :  { %s4291_s16 = smov [#allocation7]   ;;  %s4261_s20 = scalar_lea.hbm %s5093_s5, 1024 }
  0x27   :  { %s51_s17 = sshll.u32 %s4291_s16, 4  ;;  %p4262_p2 = scmp.ne.s32.totalorder %s5093_s5, %s4261_s20  ;;  %s52_s17 = int_to_ptr.vmem [resolvable:$true] %s51_s17 }
  0x28   :  { %p4265_p3 = scmp.lt.u32.totalorder %s4261_s20, %s5093_s5 }
  0x2a   :  { %p4267_p4 = pnand %p4265_p3, %p4262_p2 }
  0x2c   :  { %4270 = shalt.err (!%p4267_p4)
}
  0x2d   :  { %s4271_s24 = scalar_lea.vmem %s52_s17, 1024  ;;  %p4276_p6 = scmp.lt.s32.totalorder %s52_s17, %s52_s17 }
  0x2e   :  { %p4272_p5 = scmp.ne.s32.totalorder %s52_s17, %s4271_s24  ;;  %p4277_p7 = scmp.lt.s32.totalorder %s4271_s24, %s4271_s24 }
  0x30   :  { %p4278_p8 = por %p4277_p7, %p4276_p6 }
  0x32   :  { %p4279_p9 = pnand %p4278_p8, %p4272_p5 }
  0x34   :  { %4282 = shalt.err (!%p4279_p9)
}
  0x35   :  { %57 = dma.hbm_to_vmem [thread:$0]  %s5093_s5, 1024, %s52_s17, [#allocation6], %s4289_s2, %s4289_s2, %s4290_s12  }
  0x36   :  { %4283 = dma.done.wait [#allocation4], 8192  }
  0x37   :  { %4284 = vsyncadd [#allocation4], 4294959104 }
  0x38   :  { %4285 = dma.done.wait [#allocation6], 1040  }
  0x39   :  { %4286 = vsyncadd [#allocation6], 4294966256  ;;  %v3873_v1 = vld [vmem:[#allocation3 + $0x40] sm:$0xff]   ;;  %v3877_v5 = vld [vmem:[#allocation3 + $0x48] sm:$0xff]   ;;  %v4292_v26 = vmov 1983009808   ;;  %v337_v28 = vlaneseq }
  0x3a   :  { %v3874_v2 = vld [vmem:[#allocation3 + $0xc0] sm:$0xff]   ;;  %3451 = vmatprep.subr.bf16.mxu0 %v3873_v1  ;;  %v3878_v6 = vld [vmem:[#allocation3 + $0xc8] sm:$0xff]   ;;  %v3881_v9 = vld [vmem:[#allocation3 + $0x50] sm:$0xff]   ;;  %v335_v27 = vunpack.c.l.s4 %v4292_v26  ;;  %vm3301_vm0 = vcmask 7168  }
  0x3b   :  { %v3875_v3 = vld [vmem:[#allocation3] sm:$0xff]   ;;  %3515 = vmatprep.subr.bf16.mxu1 %v3874_v2  ;;  %v3879_v7 = vld [vmem:[#allocation3 + $0x8] sm:$0xff]   ;;  %v3882_v10 = vld [vmem:[#allocation3 + $0xd0] sm:$0xff]   ;;  %v338_v34 = vshrl.u32 %v337_v28, 7 }
  0x3c   :  { %v3876_v4 = vld [vmem:[#allocation3 + $0x80] sm:$0xff]   ;;  %3452 = vmatpush3.bf16.msra.mxu0 %v3875_v3  ;;  %v3880_v8 = vld [vmem:[#allocation3 + $0x88] sm:$0xff]   ;;  %v3883_v11 = vld [vmem:[#allocation3 + $0x10] sm:$0xff]   ;;  %v336_v33 = vunpack.c.0.s8 %v335_v27 }
  0x3d   :  { %3516 = vmatpush3.bf16.msra.mxu1 %v3876_v4  ;;  %3453 = vmatprep.subr.bf16.mxu0 %v3877_v5  ;;  %v3884_v12 = vld [vmem:[#allocation3 + $0x90] sm:$0xff]   ;;  %v3885_v13 = vld [vmem:[#allocation3 + $0x58] sm:$0xff]   ;;  %v3889_v17 = vld [vmem:[#allocation3 + $0x60] sm:$0xff]  }
  0x3e   :  { %3517 = vmatprep.subr.bf16.mxu1 %v3878_v6  ;;  %v3886_v14 = vld [vmem:[#allocation3 + $0xd8] sm:$0xff]   ;;  %v3890_v18 = vld [vmem:[#allocation3 + $0xe0] sm:$0xff]   ;;  %v3893_v21 = vld [vmem:[#allocation3 + $0x68] sm:$0xff]   ;;  %v4389_v38 = vsub.s32 %v336_v33, %v338_v34 }
  0x3f   :  { %v3887_v15 = vld [vmem:[#allocation3 + $0x18] sm:$0xff]   ;;  %v3891_v19 = vld [vmem:[#allocation3 + $0x20] sm:$0xff]   ;;  %v3894_v22 = vld [vmem:[#allocation3 + $0xe8] sm:$0xff]  }
  0x40   :  { %3454 = vmatpush3.bf16.msra.mxu0 %v3879_v7  ;;  %v3888_v16 = vld [vmem:[#allocation3 + $0x98] sm:$0xff]   ;;  %v3892_v20 = vld [vmem:[#allocation3 + $0xa0] sm:$0xff]   ;;  %v3895_v23 = vld [vmem:[#allocation3 + $0x28] sm:$0xff]  }
  0x41   :  { %3518 = vmatpush3.bf16.msra.mxu1 %v3880_v8  ;;  %3455 = vmatprep.subr.bf16.mxu0 %v3881_v9  ;;  %v3896_v24 = vld [vmem:[#allocation3 + $0xa8] sm:$0xff]   ;;  %v3897_v25 = vld [vmem:[#allocation3 + $0x70] sm:$0xff]   ;;  %v3901_v32 = vld [vmem:[#allocation3 + $0x78] sm:$0xff]  }
  0x42   :  { %3519 = vmatprep.subr.bf16.mxu1 %v3882_v10  ;;  %v3898_v29 = vld [vmem:[#allocation3 + $0xf0] sm:$0xff]   ;;  %v3902_v35 = vld [vmem:[#allocation3 + $0xf8] sm:$0xff]   ;;  %v3917_v54 = vld [vmem:[#allocation3 + $0x140] sm:$0xff]  }
  0x43   :  { %v3899_v30 = vld [vmem:[#allocation3 + $0x30] sm:$0xff]   ;;  %v3903_v36 = vld [vmem:[#allocation3 + $0x38] sm:$0xff]   ;;  %v3918_v59 = vld [vmem:[#allocation3 + $0x100] sm:$0xff]  }
  0x44   :  { %3456 = vmatpush3.bf16.msra.mxu0 %v3883_v11  ;;  %v3900_v31 = vld [vmem:[#allocation3 + $0xb0] sm:$0xff]   ;;  %v3904_v37 = vld [vmem:[#allocation3 + $0xb8] sm:$0xff]   ;;  %v3919_v63 = vld [vmem:[#allocation3 + $0x1c0] sm:$0xff]  }
  0x45   :  { %3520 = vmatpush3.bf16.msra.mxu1 %v3884_v12  ;;  %3457 = vmatprep.subr.bf16.mxu0 %v3885_v13  ;;  %v3905_v39 = vld [vmem:[%s5088_s0] ss:$16 sps:$4 sm:$0xff]   ;;  %v3913_v44 = vld [vmem:[%s5088_s0 + $0x4] ss:$16 sps:$4 sm:$0xff]  }
  0x46   :  { %3521 = vmatprep.subr.bf16.mxu1 %v3886_v14  ;;  %v3907_v40 = vld [vmem:[%s5088_s0 + $0x20] ss:$16 sps:$4 sm:$0xff]   ;;  %v340_v43 = vrot.slane %v3905_v39, %v4389_v38  ;;  %v3914_v45 = vld [vmem:[%s5088_s0 + $0x24] ss:$16 sps:$4 sm:$0xff]   ;;  %v347_v51 = vrot.slane %v3913_v44, %v4389_v38 }
  0x47   :  { %v3909_v41 = vld [vmem:[%s5088_s0 + $0x40] ss:$16 sps:$4 sm:$0xff]   ;;  %v3915_v46 = vld [vmem:[%s5088_s0 + $0x44] ss:$16 sps:$4 sm:$0xff]   ;;  %v354_v47 = vrot.slane %v3907_v40, %v4389_v38  ;;  %v361_v52 = vrot.slane %v3914_v45, %v4389_v38 }
  0x48   :  { %3458 = vmatpush3.bf16.msra.mxu0 %v3887_v15  ;;  %v3911_v42 = vld [vmem:[%s5088_s0 + $0x60] ss:$16 sps:$4 sm:$0xff]   ;;  %v412_v48 = vrot.slane %v3909_v41, %v4389_v38  ;;  %v3916_v50 = vld [vmem:[%s5088_s0 + $0x64] ss:$16 sps:$4 sm:$0xff]   ;;  %v419_v53 = vrot.slane %v3915_v46, %v4389_v38 }
  0x49   :  { %3522 = vmatpush3.bf16.msra.mxu1 %v3888_v16  ;;  %3459 = vmatprep.subr.bf16.mxu0 %v3889_v17  ;;  %v426_v49 = vrot.slane %v3911_v42, %v4389_v38  ;;  %v363_v55 = vcombine.high %v340_v43, %v354_v47  ;;  %v433_v57 = vrot.slane %v3916_v50, %v4389_v38  ;;  %v3920_v3 = vld [vmem:[#allocation3 + $0x180] sm:$0xff]   ;;  %v3934_v26 = vld [vmem:[#allocation3 + $0x108] sm:$0xff]  }
  0x4a   :  { %3523 = vmatprep.subr.bf16.mxu1 %v3890_v18  ;;  %v362_v58 = vcombine.low %v340_v43, %v354_v47  ;;  %v365_v60 = vcombine.high %v347_v51, %v361_v52  ;;  %v364_v62 = vcombine.low %v347_v51, %v361_v52  ;;  %v3921_v7 = vld [vmem:[%s5088_s0 + $0x80] ss:$16 sps:$4 sm:$0xff]   ;;  %v3929_v11 = vld [vmem:[%s5088_s0 + $0x84] ss:$16 sps:$4 sm:$0xff]  }
  0x4b   :  { %v435_v56 = vcombine.high %v412_v48, %v426_v49  ;;  %v434_v61 = vcombine.low %v412_v48, %v426_v49  ;;  %v437_v1 = vcombine.high %v419_v53, %v433_v57  ;;  %v436_v2 = vcombine.low %v419_v53, %v433_v57  ;;  %v3923_v8 = vld [vmem:[%s5088_s0 + $0xa0] ss:$16 sps:$4 sm:$0xff]   ;;  %v3930_v12 = vld [vmem:[%s5088_s0 + $0xa4] ss:$16 sps:$4 sm:$0xff]  }
  0x4c   :  { %3460 = vmatpush3.bf16.msra.mxu0 %v3891_v19  ;;  %v3925_v9 = vld [vmem:[%s5088_s0 + $0xc0] ss:$16 sps:$4 sm:$0xff]   ;;  %v484_v13 = vrot.slane %v3921_v7, %v4389_v38  ;;  %v498_v14 = vrot.slane %v3923_v8, %v4389_v38  ;;  %v3931_v16 = vld [vmem:[%s5088_s0 + $0xc4] ss:$16 sps:$4 sm:$0xff]   ;;  %v491_v19 = vrot.slane %v3929_v11, %v4389_v38 }
  0x4d   :  { %3524 = vmatpush3.bf16.msra.mxu1 %v3892_v20  ;;  %3461 = vmatprep.subr.bf16.mxu0 %v3893_v21  ;;  %v1611_v0 = vpack.c.bf16 %v435_v56, %v363_v55  ;;  %v1610_v4 = vpack.c.bf16 %v434_v61, %v362_v58  ;;  %v1613_v5 = vpack.c.bf16 %v437_v1, %v365_v60  ;;  %v3927_v10 = vld [vmem:[%s5088_s0 + $0xe0] ss:$16 sps:$4 sm:$0xff]   ;;  %v3932_v17 = vld [vmem:[%s5088_s0 + $0xe4] ss:$16 sps:$4 sm:$0xff]  }
  0x4e   :  { %3525 = vmatprep.subr.bf16.mxu1 %v3894_v22  ;;  %v1612_v6 = vpack.c.bf16 %v436_v2, %v364_v62  ;;  %v556_v15 = vrot.slane %v3925_v9, %v4389_v38  ;;  %v570_v18 = vrot.slane %v3927_v10, %v4389_v38  ;;  %v505_v20 = vrot.slane %v3930_v12, %v4389_v38  ;;  %v3933_v21 = vld [vmem:[#allocation3 + $0x148] sm:$0xff]   ;;  %v3945_v44 = vld [vmem:[%s5088_s0 + $0x104] ss:$16 sps:$4 sm:$0xff]  }
  0x4f   :  { %2225 = vmatprep.mubr.bf16.mxu0 %v1611_v0  ;;  %2322 = vmatprep.mubr.bf16.mxu1 %v1613_v5  ;;  %v507_v22 = vcombine.high %v484_v13, %v498_v14  ;;  %v3936_v34 = vld [vmem:[#allocation3 + $0x188] sm:$0xff]   ;;  %v3946_v47 = vld [vmem:[%s5088_s0 + $0x124] ss:$16 sps:$4 sm:$0xff]   ;;  %v635_v52 = vrot.slane %v3945_v44, %v4389_v38 }
  0x50   :  { %3462 = vmatpush3.bf16.msra.mxu0 %v3895_v23  ;;  %v563_v23 = vrot.slane %v3931_v16, %v4389_v38  ;;  %v579_v27 = vcombine.high %v556_v15, %v570_v18  ;;  %v509_v28 = vcombine.high %v491_v19, %v505_v20  ;;  %v3937_v40 = vld [vmem:[%s5088_s0 + $0x100] ss:$16 sps:$4 sm:$0xff]   ;;  %v3947_v48 = vld [vmem:[%s5088_s0 + $0x144] ss:$16 sps:$4 sm:$0xff]   ;;  %v649_v55 = vrot.slane %v3946_v47, %v4389_v38 }
  0x51   :  { %3526 = vmatpush3.bf16.msra.mxu1 %v3896_v24  ;;  %3463 = vmatprep.subr.bf16.mxu0 %v3897_v25  ;;  %v577_v24 = vrot.slane %v3932_v17, %v4389_v38  ;;  %v506_v25 = vcombine.low %v484_v13, %v498_v14  ;;  %v3939_v41 = vld [vmem:[%s5088_s0 + $0x120] ss:$16 sps:$4 sm:$0xff]   ;;  %v628_v45 = vrot.slane %v3937_v40, %v4389_v38  ;;  %v3948_v49 = vld [vmem:[%s5088_s0 + $0x164] ss:$16 sps:$4 sm:$0xff]  }
  0x52   :  { %3527 = vmatprep.subr.bf16.mxu1 %v3898_v29  ;;  %v578_v29 = vcombine.low %v556_v15, %v570_v18  ;;  %v3941_v42 = vld [vmem:[%s5088_s0 + $0x140] ss:$16 sps:$4 sm:$0xff]   ;;  %v642_v46 = vrot.slane %v3939_v41, %v4389_v38  ;;  %v707_v56 = vrot.slane %v3947_v48, %v4389_v38  ;;  %v721_v57 = vrot.slane %v3948_v49, %v4389_v38  ;;  %v3961_v13 = vld [vmem:[%s5088_s0 + $0x184] ss:$16 sps:$4 sm:$0xff]  }
  0x53   :  { %v580_v33 = vcombine.low %v563_v23, %v577_v24  ;;  %v3943_v43 = vld [vmem:[%s5088_s0 + $0x160] ss:$16 sps:$4 sm:$0xff]   ;;  %v700_v50 = vrot.slane %v3941_v42, %v4389_v38  ;;  %v652_v1 = vcombine.low %v635_v52, %v649_v55  ;;  %v3962_v14 = vld [vmem:[%s5088_s0 + $0x1a4] ss:$16 sps:$4 sm:$0xff]  }
  0x54   :  { %3464 = vmatpush3.bf16.msra.mxu0 %v3899_v30  ;;  %v508_v30 = vcombine.low %v491_v19, %v505_v20  ;;  %v714_v51 = vrot.slane %v3943_v43, %v4389_v38  ;;  %v3949_v53 = vld [vmem:[#allocation3 + $0x150] sm:$0xff]   ;;  %v650_v60 = vcombine.low %v628_v45, %v642_v46  ;;  %v725_v0 = vcombine.high %v707_v56, %v721_v57 }
  0x55   :  { %3528 = vmatpush3.bf16.msra.mxu1 %v3900_v31  ;;  %3465 = vmatprep.subr.bf16.mxu0 %v3901_v32  ;;  %v3935_v31 = vld [vmem:[#allocation3 + $0x1c8] sm:$0xff]   ;;  %v581_v32 = vcombine.high %v563_v23, %v577_v24  ;;  %v3950_v58 = vld [vmem:[#allocation3 + $0x110] sm:$0xff]   ;;  %v724_v2 = vcombine.low %v707_v56, %v721_v57  ;;  %v779_v20 = vrot.slane %v3961_v13, %v4389_v38  ;;  %v3965_v23 = vld [vmem:[#allocation3 + $0x158] sm:$0xff]  }
  0x56   :  { %3529 = vmatprep.subr.bf16.mxu1 %v3902_v35  ;;  %v1619_v35 = vpack.c.bf16 %v579_v27, %v507_v22  ;;  %v1620_v39 = vpack.c.bf16 %v580_v33, %v508_v30  ;;  %v722_v61 = vcombine.low %v700_v50, %v714_v51  ;;  %v3951_v62 = vld [vmem:[#allocation3 + $0x1d0] sm:$0xff]  }
  0x57   :  { %v1628_v7 = vpack.c.bf16 %v724_v2, %v652_v1  ;;  %v3953_v8 = vld [vmem:[%s5088_s0 + $0x180] ss:$16 sps:$4 sm:$0xff]   ;;  %v3963_v15 = vld [vmem:[%s5088_s0 + $0x1c4] ss:$16 sps:$4 sm:$0xff]  }
  0x58   :  { %3466 = vmatpush3.bf16.msra.mxu0 %v3903_v36  ;;  %v1618_v36 = vpack.c.bf16 %v578_v29, %v506_v25  ;;  %v1626_v5 = vpack.c.bf16 %v722_v61, %v650_v60  ;;  %v3955_v9 = vld [vmem:[%s5088_s0 + $0x1a0] ss:$16 sps:$4 sm:$0xff]   ;;  %v772_v12 = vrot.slane %v3953_v8, %v4389_v38  ;;  %v3964_v19 = vld [vmem:[%s5088_s0 + $0x1e4] ss:$16 sps:$4 sm:$0xff]   ;;  %v851_v22 = vrot.slane %v3963_v15, %v4389_v38 }
  0x59   :  { %3530 = vmatpush3.bf16.msra.mxu1 %v3904_v37  ;;  %3579 = vmatprep.subr.bf16.mxu0 %v3917_v54  ;;  %v1621_v37 = vpack.c.bf16 %v581_v32, %v509_v28  ;;  %v651_v54 = vcombine.high %v628_v45, %v642_v46  ;;  %v3957_v10 = vld [vmem:[%s5088_s0 + $0x1c0] ss:$16 sps:$4 sm:$0xff]   ;;  %v786_v16 = vrot.slane %v3955_v9, %v4389_v38  ;;  %v3977_v45 = vld [vmem:[%s5088_s0 + $0x204] ss:$16 sps:$4 sm:$0xff]  }
  0x5a   :  { %3643 = vmatprep.subr.bf16.mxu1 %v3919_v63  ;;  %v653_v63 = vcombine.high %v635_v52, %v649_v55  ;;  %v3959_v11 = vld [vmem:[%s5088_s0 + $0x1e0] ss:$16 sps:$4 sm:$0xff]   ;;  %v844_v17 = vrot.slane %v3957_v10, %v4389_v38  ;;  %v3978_v46 = vld [vmem:[%s5088_s0 + $0x224] ss:$16 sps:$4 sm:$0xff]  }
  0x5b   :  { %2226 = vmatmul.mubr.bf16.vlgmr.msra.gmra.mrb[0].mxu0 %v1610_v4  ;;  %v858_v18 = vrot.slane %v3959_v11, %v4389_v38  ;;  %v795_v24 = vcombine.high %v772_v12, %v786_v16  ;;  %v794_v27 = vcombine.low %v772_v12, %v786_v16  ;;  %v3966_v28 = vld [vmem:[#allocation3 + $0x118] sm:$0xff]   ;;  %v3981_v55 = vld [vmem:[#allocation3 + $0x160] sm:$0xff]  }
  0x5c   :  { %3580 = vmatpush3.bf16.msra.mxu0 %v3918_v59  ;;  %2323 = vmatmul.mubr.bf16.vlgmr.msra.gmra.mrb[0].mxu1 %v1612_v6  ;;  %v723_v59 = vcombine.high %v700_v50, %v714_v51  ;;  %v1629_v6 = vpack.c.bf16 %v725_v0, %v653_v63  ;;  %v3967_v32 = vld [vmem:[#allocation3 + $0x1d8] sm:$0xff]   ;;  %v3979_v50 = vld [vmem:[%s5088_s0 + $0x244] ss:$16 sps:$4 sm:$0xff]  }
  0x5d   :  { %3644 = vmatpush3.bf16.msra.mxu1 %v3920_v3  ;;  %3581 = vmatprep.subr.bf16.mxu0 %v3933_v21  ;;  %v3952_v3 = vld [vmem:[#allocation3 + $0x190] sm:$0xff]   ;;  %v793_v21 = vrot.slane %v3962_v14, %v4389_v38  ;;  %v867_v25 = vcombine.high %v844_v17, %v858_v18  ;;  %v866_v30 = vcombine.low %v844_v17, %v858_v18  ;;  %v3982_v60 = vld [vmem:[#allocation3 + $0x120] sm:$0xff]  }
  0x5e   :  { %3645 = vmatprep.subr.bf16.mxu1 %v3935_v31  ;;  %2233 = vmatprep.mubr.bf16.mxu0 %v1619_v35  ;;  %v1627_v4 = vpack.c.bf16 %v723_v59, %v651_v54  ;;  %v3969_v41 = vld [vmem:[%s5088_s0 + $0x200] ss:$16 sps:$4 sm:$0xff]   ;;  %v3980_v51 = vld [vmem:[%s5088_s0 + $0x264] ss:$16 sps:$4 sm:$0xff]   ;;  %v937_v54 = vrot.slane %v3978_v46, %v4389_v38  ;;  %v995_v57 = vrot.slane %v3979_v50, %v4389_v38 }
  0x5f   :  { %2330 = vmatprep.mubr.bf16.mxu1 %v1621_v37  ;;  %v797_v29 = vcombine.high %v779_v20, %v793_v21  ;;  %v796_v31 = vcombine.low %v779_v20, %v793_v21  ;;  %v1635_v33 = vpack.c.bf16 %v867_v25, %v795_v24  ;;  %v1634_v37 = vpack.c.bf16 %v866_v30, %v794_v27  ;;  %v3971_v42 = vld [vmem:[%s5088_s0 + $0x220] ss:$16 sps:$4 sm:$0xff]   ;;  %v3993_v13 = vld [vmem:[%s5088_s0 + $0x284] ss:$16 sps:$4 sm:$0xff]  }
  0x60   :  { %3582 = vmatpush3.bf16.msra.mxu0 %v3934_v26  ;;  %v865_v26 = vrot.slane %v3964_v19, %v4389_v38  ;;  %v3973_v43 = vld [vmem:[%s5088_s0 + $0x240] ss:$16 sps:$4 sm:$0xff]   ;;  %v916_v47 = vrot.slane %v3969_v41, %v4389_v38  ;;  %v930_v48 = vrot.slane %v3971_v42, %v4389_v38  ;;  %v3994_v16 = vld [vmem:[%s5088_s0 + $0x2a4] ss:$16 sps:$4 sm:$0xff]   ;;  %v1067_v21 = vrot.slane %v3993_v13, %v4389_v38 }
  0x61   :  { %3646 = vmatpush3.bf16.msra.mxu1 %v3936_v34  ;;  %3583 = vmatprep.subr.bf16.mxu0 %v3949_v53  ;;  %v3975_v44 = vld [vmem:[%s5088_s0 + $0x260] ss:$16 sps:$4 sm:$0xff]   ;;  %v988_v49 = vrot.slane %v3973_v43, %v4389_v38  ;;  %v923_v53 = vrot.slane %v3977_v45, %v4389_v38  ;;  %v3995_v17 = vld [vmem:[%s5088_s0 + $0x2c4] ss:$16 sps:$4 sm:$0xff]   ;;  %v1081_v24 = vrot.slane %v3994_v16, %v4389_v38 }
  0x62   :  { %3647 = vmatprep.subr.bf16.mxu1 %v3951_v62  ;;  %v869_v34 = vcombine.high %v851_v22, %v865_v26  ;;  %v868_v35 = vcombine.low %v851_v22, %v865_v26  ;;  %v1002_v52 = vrot.slane %v3975_v44, %v4389_v38  ;;  %v939_v56 = vcombine.high %v916_v47, %v930_v48  ;;  %v3983_v1 = vld [vmem:[#allocation3 + $0x1e0] sm:$0xff]   ;;  %v3997_v22 = vld [vmem:[#allocation3 + $0x168] sm:$0xff]  }
  0x63   :  { %2234 = vmatmul.mubr.bf16.gmra.mrb[4].mxu0 %v1618_v36  ;;  %v3968_v36 = vld [vmem:[#allocation3 + $0x198] sm:$0xff]   ;;  %v938_v59 = vcombine.low %v916_v47, %v930_v48  ;;  %v941_v62 = vcombine.high %v923_v53, %v937_v54  ;;  %v940_v0 = vcombine.low %v923_v53, %v937_v54  ;;  %v3996_v18 = vld [vmem:[%s5088_s0 + $0x2e4] ss:$16 sps:$4 sm:$0xff]   ;;  %v1139_v25 = vrot.slane %v3995_v17, %v4389_v38  ;;  %v3998_v27 = vld [vmem:[#allocation3 + $0x128] sm:$0xff]  }
  0x64   :  { %2331 = vmatmul.mubr.bf16.gmra.mrb[4].mxu1 %v1620_v39  ;;  %3584 = vmatpush3.bf16.msra.mxu0 %v3950_v58  ;;  %v1637_v39 = vpack.c.bf16 %v869_v34, %v797_v29  ;;  %v1636_v40 = vpack.c.bf16 %v868_v35, %v796_v31  ;;  %v1009_v58 = vrot.slane %v3980_v51, %v4389_v38  ;;  %v3985_v9 = vld [vmem:[%s5088_s0 + $0x280] ss:$16 sps:$4 sm:$0xff]   ;;  %v4009_v47 = vld [vmem:[%s5088_s0 + $0x304] ss:$16 sps:$4 sm:$0xff]  }
  0x65   :  { %3648 = vmatpush3.bf16.msra.mxu1 %v3952_v3  ;;  %2241 = vmatprep.mubr.bf16.mxu0 %v1627_v4  ;;  %v1011_v61 = vcombine.high %v988_v49, %v1002_v52  ;;  %v1010_v63 = vcombine.low %v988_v49, %v1002_v52  ;;  %v3984_v4 = vld [vmem:[#allocation3 + $0x1a0] sm:$0xff]   ;;  %v1060_v14 = vrot.slane %v3985_v9, %v4389_v38  ;;  %v3999_v31 = vld [vmem:[#allocation3 + $0x1e8] sm:$0xff]  }
  0x66   :  { %2338 = vmatprep.mubr.bf16.mxu1 %v1629_v6  ;;  %3585 = vmatprep.subr.bf16.mxu0 %v3965_v23  ;;  %v1013_v2 = vcombine.high %v995_v57, %v1009_v58  ;;  %v1012_v3 = vcombine.low %v995_v57, %v1009_v58  ;;  %v3987_v10 = vld [vmem:[%s5088_s0 + $0x2a0] ss:$16 sps:$4 sm:$0xff]   ;;  %v1153_v26 = vrot.slane %v3996_v18, %v4389_v38  ;;  %v4010_v48 = vld [vmem:[%s5088_s0 + $0x324] ss:$16 sps:$4 sm:$0xff]  }
  0x67   :  { %3649 = vmatprep.subr.bf16.mxu1 %v3967_v32  ;;  %v1642_v6 = vpack.c.bf16 %v1010_v63, %v938_v59  ;;  %v3989_v11 = vld [vmem:[%s5088_s0 + $0x2c0] ss:$16 sps:$4 sm:$0xff]   ;;  %v1074_v15 = vrot.slane %v3987_v10, %v4389_v38  ;;  %v1085_v32 = vcombine.high %v1067_v21, %v1081_v24  ;;  %v1084_v34 = vcombine.low %v1067_v21, %v1081_v24  ;;  %v4011_v49 = vld [vmem:[%s5088_s0 + $0x344] ss:$16 sps:$4 sm:$0xff]  }
  0x68   :  { %3586 = vmatpush3.bf16.msra.mxu0 %v3966_v28  ;;  %v1644_v8 = vpack.c.bf16 %v1012_v3, %v940_v0  ;;  %v3991_v12 = vld [vmem:[%s5088_s0 + $0x2e0] ss:$16 sps:$4 sm:$0xff]   ;;  %v1132_v19 = vrot.slane %v3989_v11, %v4389_v38  ;;  %v1156_v35 = vcombine.low %v1139_v25, %v1153_v26  ;;  %v4012_v53 = vld [vmem:[%s5088_s0 + $0x364] ss:$16 sps:$4 sm:$0xff]   ;;  %v1211_v54 = vrot.slane %v4009_v47, %v4389_v38  ;;  %v4041_v47 = vld [vmem:[%s5088_s0 + $0xc] ss:$16 sps:$4 sm:$0xff]  }
  0x69   :  { %3650 = vmatpush3.bf16.msra.mxu1 %v3968_v36  ;;  %3587 = vmatprep.subr.bf16.mxu0 %v3981_v55  ;;  %v1146_v20 = vrot.slane %v3991_v12, %v4389_v38  ;;  %v1083_v23 = vcombine.high %v1060_v14, %v1074_v15  ;;  %v1082_v29 = vcombine.low %v1060_v14, %v1074_v15  ;;  %v4000_v36 = vld [vmem:[#allocation3 + $0x1a8] sm:$0xff]   ;;  %v4013_v57 = vld [vmem:[#allocation3 + $0x170] sm:$0xff]   ;;  %v4029_v24 = vld [vmem:[#allocation3 + $0x178] sm:$0xff]  }
  0x6a   :  { %3651 = vmatprep.subr.bf16.mxu1 %v3983_v1  ;;  %v1652_v41 = vpack.c.bf16 %v1156_v35, %v1084_v34  ;;  %v4001_v42 = vld [vmem:[%s5088_s0 + $0x300] ss:$16 sps:$4 sm:$0xff]   ;;  %v1225_v55 = vrot.slane %v4010_v48, %v4389_v38  ;;  %v4025_v14 = vld [vmem:[%s5088_s0 + $0x384] ss:$16 sps:$4 sm:$0xff]  }
  0x6b   :  { %2242 = vmatmul.mubr.bf16.gmra.mrb[8].mxu0 %v1626_v5  ;;  %v1643_v5 = vpack.c.bf16 %v1011_v61, %v939_v56  ;;  %v1155_v28 = vcombine.high %v1132_v19, %v1146_v20  ;;  %v1154_v30 = vcombine.low %v1132_v19, %v1146_v20  ;;  %v4003_v43 = vld [vmem:[%s5088_s0 + $0x320] ss:$16 sps:$4 sm:$0xff]   ;;  %v1204_v46 = vrot.slane %v4001_v42, %v4389_v38  ;;  %v4026_v15 = vld [vmem:[%s5088_s0 + $0x3a4] ss:$16 sps:$4 sm:$0xff]  }
  0x6c   :  { %2339 = vmatmul.mubr.bf16.gmra.mrb[8].mxu1 %v1628_v7  ;;  %2249 = vmatprep.mubr.bf16.mxu0 %v1635_v33  ;;  %v1645_v7 = vpack.c.bf16 %v1013_v2, %v941_v62  ;;  %v1157_v33 = vcombine.high %v1139_v25, %v1153_v26  ;;  %v4005_v44 = vld [vmem:[%s5088_s0 + $0x340] ss:$16 sps:$4 sm:$0xff]   ;;  %v1218_v50 = vrot.slane %v4003_v43, %v4389_v38  ;;  %v4027_v19 = vld [vmem:[%s5088_s0 + $0x3c4] ss:$16 sps:$4 sm:$0xff]   ;;  %v4033_v43 = vld [vmem:[%s5088_s0 + $0x8] ss:$16 sps:$4 sm:$0xff]  }
  0x6d   :  { %2346 = vmatprep.mubr.bf16.mxu1 %v1637_v39  ;;  %3588 = vmatpush3.bf16.msra.mxu0 %v3982_v60  ;;  %v1650_v39 = vpack.c.bf16 %v1154_v30, %v1082_v29  ;;  %v4007_v45 = vld [vmem:[%s5088_s0 + $0x360] ss:$16 sps:$4 sm:$0xff]   ;;  %v1276_v51 = vrot.slane %v4005_v44, %v4389_v38  ;;  %v1283_v56 = vrot.slane %v4011_v49, %v4389_v38  ;;  %v4028_v20 = vld [vmem:[%s5088_s0 + $0x3e4] ss:$16 sps:$4 sm:$0xff]   ;;  %v4035_v44 = vld [vmem:[%s5088_s0 + $0x28] ss:$16 sps:$4 sm:$0xff]  }
  0x6e   :  { %3652 = vmatpush3.bf16.msra.mxu1 %v3984_v4  ;;  %3589 = vmatprep.subr.bf16.mxu0 %v3997_v22  ;;  %v1290_v52 = vrot.slane %v4007_v45, %v4389_v38  ;;  %v1227_v58 = vcombine.high %v1204_v46, %v1218_v50  ;;  %v1297_v60 = vrot.slane %v4012_v53, %v4389_v38  ;;  %v4014_v62 = vld [vmem:[#allocation3 + $0x130] sm:$0xff]   ;;  %v4030_v29 = vld [vmem:[#allocation3 + $0x138] sm:$0xff]  }
  0x6f   :  { %3653 = vmatprep.subr.bf16.mxu1 %v3999_v31  ;;  %v1226_v61 = vcombine.low %v1204_v46, %v1218_v50  ;;  %v1229_v63 = vcombine.high %v1211_v54, %v1225_v55  ;;  %v1228_v1 = vcombine.low %v1211_v54, %v1225_v55  ;;  %v4015_v2 = vld [vmem:[#allocation3 + $0x1f0] sm:$0xff]   ;;  %v1355_v22 = vrot.slane %v4025_v14, %v4389_v38  ;;  %v4031_v34 = vld [vmem:[#allocation3 + $0x1f8] sm:$0xff]  }
  0x70   :  { %v1299_v59 = vcombine.high %v1276_v51, %v1290_v52  ;;  %v1298_v0 = vcombine.low %v1276_v51, %v1290_v52  ;;  %v1301_v4 = vcombine.high %v1283_v56, %v1297_v60  ;;  %v4017_v10 = vld [vmem:[%s5088_s0 + $0x380] ss:$16 sps:$4 sm:$0xff]   ;;  %v1427_v26 = vrot.slane %v4027_v19, %v4389_v38  ;;  %v4037_v45 = vld [vmem:[%s5088_s0 + $0x48] ss:$16 sps:$4 sm:$0xff]   ;;  %v4042_v50 = vld [vmem:[%s5088_s0 + $0x2c] ss:$16 sps:$4 sm:$0xff]  }
  0x71   :  { %3590 = vmatpush3.bf16.msra.mxu0 %v3998_v27  ;;  %v4019_v11 = vld [vmem:[%s5088_s0 + $0x3a0] ss:$16 sps:$4 sm:$0xff]   ;;  %v1348_v16 = vrot.slane %v4017_v10, %v4389_v38  ;;  %v1441_v27 = vrot.slane %v4028_v20, %v4389_v38  ;;  %v4039_v46 = vld [vmem:[%s5088_s0 + $0x68] ss:$16 sps:$4 sm:$0xff]   ;;  %v376_v48 = vrot.slane %v4033_v43, %v4389_v38  ;;  %v390_v49 = vrot.slane %v4035_v44, %v4389_v38  ;;  %v4043_v51 = vld [vmem:[%s5088_s0 + $0x4c] ss:$16 sps:$4 sm:$0xff]  }
  0x72   :  { %3654 = vmatpush3.bf16.msra.mxu1 %v4000_v36  ;;  %3591 = vmatprep.subr.bf16.mxu0 %v4013_v57  ;;  %v1659_v3 = vpack.c.bf16 %v1299_v59, %v1227_v58  ;;  %v4021_v12 = vld [vmem:[%s5088_s0 + $0x3c0] ss:$16 sps:$4 sm:$0xff]   ;;  %v1362_v17 = vrot.slane %v4019_v11, %v4389_v38  ;;  %v4044_v52 = vld [vmem:[%s5088_s0 + $0x6c] ss:$16 sps:$4 sm:$0xff]   ;;  %v448_v53 = vrot.slane %v4037_v45, %v4389_v38 }
  0x73   :  { %2250 = vmatmul.mubr.bf16.gmra.mrb[12].mxu0 %v1634_v37  ;;  %v1651_v37 = vpack.c.bf16 %v1155_v28, %v1083_v23  ;;  %3655 = vmatprep.subr.bf16.mxu1 %v4015_v2  ;;  %v4023_v13 = vld [vmem:[%s5088_s0 + $0x3e0] ss:$16 sps:$4 sm:$0xff]   ;;  %v1420_v18 = vrot.slane %v4021_v12, %v4389_v38  ;;  %v1369_v23 = vrot.slane %v4026_v15, %v4389_v38  ;;  %v4047_v2 = vld [vmem:[%s5088_s0 + $0xa8] ss:$16 sps:$4 sm:$0xff]   ;;  %v4054_v10 = vld [vmem:[%s5088_s0 + $0xac] ss:$16 sps:$4 sm:$0xff]  }
  0x74   :  { %2347 = vmatmul.mubr.bf16.gmra.mrb[12].mxu1 %v1636_v40  ;;  %2257 = vmatprep.mubr.bf16.mxu0 %v1643_v5  ;;  %v1653_v40 = vpack.c.bf16 %v1157_v33, %v1085_v32  ;;  %v1300_v5 = vcombine.low %v1283_v56, %v1297_v60  ;;  %v1434_v21 = vrot.slane %v4023_v13, %v4389_v38  ;;  %v4055_v11 = vld [vmem:[%s5088_s0 + $0xcc] ss:$16 sps:$4 sm:$0xff]  }
  0x75   :  { %2354 = vmatprep.mubr.bf16.mxu1 %v1645_v7  ;;  %3592 = vmatpush3.bf16.msra.mxu0 %v4014_v62  ;;  %v1658_v7 = vpack.c.bf16 %v1298_v0, %v1226_v61  ;;  %v1371_v25 = vcombine.high %v1348_v16, %v1362_v17  ;;  %v1370_v28 = vcombine.low %v1348_v16, %v1362_v17  ;;  %v4056_v16 = vld [vmem:[%s5088_s0 + $0xec] ss:$16 sps:$4 sm:$0xff]  }
  0x76   :  { %v1660_v9 = vpack.c.bf16 %v1300_v5, %v1228_v1  ;;  %v1443_v30 = vcombine.high %v1420_v18, %v1434_v21  ;;  %v1373_v31 = vcombine.high %v1355_v22, %v1369_v23  ;;  %v1442_v32 = vcombine.low %v1420_v18, %v1434_v21  ;;  %3593 = vmatprep.subr.bf16.mxu0 %v4029_v24  ;;  %v4068_v43 = vld [vmem:[%s5088_s0 + $0x16c] ss:$16 sps:$4 sm:$0xff]  }
  0x77   :  { %v1372_v33 = vcombine.low %v1355_v22, %v1369_v23  ;;  %v1445_v35 = vcombine.high %v1427_v26, %v1441_v27  ;;  %v1444_v36 = vcombine.low %v1427_v26, %v1441_v27  ;;  %v462_v54 = vrot.slane %v4039_v46, %v4389_v38 }
  0x78   :  { %v383_v55 = vrot.slane %v4041_v47, %v4389_v38  ;;  %v398_v56 = vcombine.low %v376_v48, %v390_v49  ;;  %v399_v57 = vcombine.high %v376_v48, %v390_v49  ;;  %v397_v58 = vrot.slane %v4042_v50, %v4389_v38 }
  0x79   :  { %3594 = vmatpush3.bf16.msra.mxu0 %v4030_v29  ;;  %v1668_v42 = vpack.c.bf16 %v1444_v36, %v1372_v33  ;;  %v455_v59 = vrot.slane %v4043_v51, %v4389_v38  ;;  %v470_v60 = vcombine.low %v448_v53, %v462_v54  ;;  %v471_v61 = vcombine.high %v448_v53, %v462_v54  ;;  %v4059_v29 = vld [vmem:[%s5088_s0 + $0x128] ss:$16 sps:$4 sm:$0xff]   ;;  %v4065_v36 = vld [vmem:[%s5088_s0 + $0x10c] ss:$16 sps:$4 sm:$0xff]  }
  0x7a   :  { %v469_v62 = vrot.slane %v4044_v52, %v4389_v38  ;;  %v400_v0 = vcombine.low %v383_v55, %v397_v58  ;;  %v401_v1 = vcombine.high %v383_v55, %v397_v58  ;;  %v534_v13 = vrot.slane %v4047_v2, %v4389_v38  ;;  %v4069_v54 = vld [vmem:[%s5088_s0 + $0x188] ss:$16 sps:$4 sm:$0xff]  }
  0x7b   :  { %2258 = vmatmul.mubr.bf16.gmra.mrb[16].mxu0 %v1642_v6  ;;  %v4016_v6 = vld [vmem:[#allocation3 + $0x1b0] sm:$0xff]   ;;  %v1615_v5 = vpack.c.bf16 %v471_v61, %v399_v57  ;;  %v541_v20 = vrot.slane %v4054_v10, %v4389_v38  ;;  %v599_v23 = vrot.slane %v4055_v11, %v4389_v38  ;;  %v613_v24 = vrot.slane %v4056_v16, %v4389_v38 }
  0x7c   :  { %2355 = vmatmul.mubr.bf16.gmra.mrb[16].mxu1 %v1644_v8  ;;  %2265 = vmatprep.mubr.bf16.mxu0 %v1651_v37  ;;  %v1661_v8 = vpack.c.bf16 %v1301_v4, %v1229_v63  ;;  %v4032_v37 = vld [vmem:[#allocation3 + $0x1b8] sm:$0xff]   ;;  %v671_v47 = vrot.slane %v4065_v36, %v4389_v38  ;;  %v757_v51 = vrot.slane %v4068_v43, %v4389_v38 }
  0x7d   :  { %2362 = vmatprep.mubr.bf16.mxu1 %v1653_v40  ;;  %3656 = vmatpush3.bf16.msra.mxu1 %v4016_v6  ;;  %v1666_v40 = vpack.c.bf16 %v1442_v32, %v1370_v28  ;;  %v4045_v63 = vld [vmem:[%s5088_s0 + $0x88] ss:$16 sps:$4 sm:$0xff]   ;;  %v472_v6 = vcombine.low %v455_v59, %v469_v62  ;;  %v617_v32 = vcombine.high %v599_v23, %v613_v24 }
  0x7e   :  { %3657 = vmatprep.subr.bf16.mxu1 %v4031_v34  ;;  %v4051_v4 = vld [vmem:[%s5088_s0 + $0xe8] ss:$16 sps:$4 sm:$0xff]   ;;  %v520_v12 = vrot.slane %v4045_v63, %v4389_v38  ;;  %v616_v34 = vcombine.low %v599_v23, %v613_v24 }
  0x7f   :  { %v606_v15 = vrot.slane %v4051_v4, %v4389_v38  ;;  %v1616_v18 = vpack.c.bf16 %v472_v6, %v400_v0  ;;  %v4057_v28 = vld [vmem:[%s5088_s0 + $0x108] ss:$16 sps:$4 sm:$0xff]   ;;  %v4079_v4 = vld [vmem:[%s5088_s0 + $0x1cc] ss:$16 sps:$4 sm:$0xff]  }
  0x80   :  { %v543_v21 = vcombine.high %v520_v12, %v534_v13  ;;  %v542_v26 = vcombine.low %v520_v12, %v534_v13  ;;  %v4071_v55 = vld [vmem:[%s5088_s0 + $0x1a8] ss:$16 sps:$4 sm:$0xff]  }
  0x81   :  { %3658 = vmatpush3.bf16.msra.mxu1 %v4032_v37  ;;  %v4066_v37 = vld [vmem:[%s5088_s0 + $0x12c] ss:$16 sps:$4 sm:$0xff]   ;;  %v4075_v61 = vld [vmem:[%s5088_s0 + $0x1e8] ss:$16 sps:$4 sm:$0xff]   ;;  %v822_v2 = vrot.slane %v4071_v55, %v4389_v38 }
  0x82   :  { %v685_v49 = vrot.slane %v4066_v37, %v4389_v38  ;;  %v4081_v16 = vld [vmem:[%s5088_s0 + $0x208] ss:$16 sps:$4 sm:$0xff]  }
  0x83   :  { %2266 = vmatmul.mubr.bf16.gmra.mrb[20].mxu0 %v1650_v39  ;;  %v1667_v39 = vpack.c.bf16 %v1443_v30, %v1371_v25  ;;  %v4061_v30 = vld [vmem:[%s5088_s0 + $0x148] ss:$16 sps:$4 sm:$0xff]  }
  0x84   :  { %2363 = vmatmul.mubr.bf16.gmra.mrb[20].mxu1 %v1652_v41  ;;  %2273 = vmatprep.mubr.bf16.mxu0 %v1659_v3  ;;  %v1669_v41 = vpack.c.bf16 %v1445_v35, %v1373_v31  ;;  %v4049_v3 = vld [vmem:[%s5088_s0 + $0xc8] ss:$16 sps:$4 sm:$0xff]   ;;  %v688_v0 = vcombine.low %v671_v47, %v685_v49 }
  0x85   :  { %2370 = vmatprep.mubr.bf16.mxu1 %v1661_v8  ;;  %v1614_v8 = vpack.c.bf16 %v470_v60, %v398_v56  ;;  %v592_v14 = vrot.slane %v4049_v3, %v4389_v38  ;;  %v4063_v35 = vld [vmem:[%s5088_s0 + $0x168] ss:$16 sps:$4 sm:$0xff]   ;;  %v689_v56 = vcombine.high %v671_v47, %v685_v49  ;;  %v4078_v3 = vld [vmem:[%s5088_s0 + $0x1ac] ss:$16 sps:$4 sm:$0xff]  }
  0x86   :  { %v750_v46 = vrot.slane %v4063_v35, %v4389_v38  ;;  %v4073_v60 = vld [vmem:[%s5088_s0 + $0x1c8] ss:$16 sps:$4 sm:$0xff]   ;;  %v829_v12 = vrot.slane %v4078_v3, %v4389_v38 }
  0x87   :  { %v615_v22 = vcombine.high %v592_v14, %v606_v15  ;;  %v614_v27 = vcombine.low %v592_v14, %v606_v15  ;;  %v887_v14 = vrot.slane %v4079_v4, %v4389_v38  ;;  %v4093_v43 = vld [vmem:[%s5088_s0 + $0x288] ss:$16 sps:$4 sm:$0xff]  }
  0x89   :  { %v1623_v31 = vpack.c.bf16 %v615_v22, %v543_v21  ;;  %v1622_v45 = vpack.c.bf16 %v614_v27, %v542_v26  ;;  %v4087_v21 = vld [vmem:[%s5088_s0 + $0x268] ss:$16 sps:$4 sm:$0xff]   ;;  %v4089_v26 = vld [vmem:[%s5088_s0 + $0x20c] ss:$16 sps:$4 sm:$0xff]  }
  0x8a   :  { %v4090_v27 = vld [vmem:[%s5088_s0 + $0x22c] ss:$16 sps:$4 sm:$0xff]   ;;  %v959_v36 = vrot.slane %v4089_v26, %v4389_v38 }
  0x8b   :  { %2274 = vmatmul.mubr.bf16.gmra.mrb[24].mxu0 %v1658_v7  ;;  %v473_v7 = vcombine.high %v455_v59, %v469_v62  ;;  %v4077_v62 = vld [vmem:[%s5088_s0 + $0x18c] ss:$16 sps:$4 sm:$0xff]   ;;  %v973_v37 = vrot.slane %v4090_v27, %v4389_v38 }
  0x8c   :  { %2371 = vmatmul.mubr.bf16.gmra.mrb[24].mxu1 %v1660_v9  ;;  %2281 = vmatprep.mubr.bf16.mxu0 %v1667_v39  ;;  %v4053_v9 = vld [vmem:[%s5088_s0 + $0x8c] ss:$16 sps:$4 sm:$0xff]   ;;  %v664_v39 = vrot.slane %v4057_v28, %v4389_v38  ;;  %v815_v11 = vrot.slane %v4077_v62, %v4389_v38 }
  0x8d   :  { %2378 = vmatprep.mubr.bf16.mxu1 %v1669_v41  ;;  %v1617_v17 = vpack.c.bf16 %v473_v7, %v401_v1  ;;  %v527_v19 = vrot.slane %v4053_v9, %v4389_v38  ;;  %v736_v41 = vrot.slane %v4061_v30, %v4389_v38  ;;  %v808_v1 = vrot.slane %v4069_v54, %v4389_v38  ;;  %v4091_v28 = vld [vmem:[%s5088_s0 + $0x24c] ss:$16 sps:$4 sm:$0xff]  }
  0x8e   :  { %v894_v9 = vrot.slane %v4075_v61, %v4389_v38  ;;  %v4104_v54 = vld [vmem:[%s5088_s0 + $0x2ec] ss:$16 sps:$4 sm:$0xff]  }
  0x8f   :  { %v545_v25 = vcombine.high %v527_v19, %v541_v20  ;;  %v544_v33 = vcombine.low %v527_v19, %v541_v20  ;;  %v759_v53 = vcombine.high %v736_v41, %v750_v46  ;;  %v758_v59 = vcombine.low %v736_v41, %v750_v46  ;;  %v4083_v19 = vld [vmem:[%s5088_s0 + $0x228] ss:$16 sps:$4 sm:$0xff]  }
  0x90   :  { %v831_v10 = vcombine.high %v808_v1, %v822_v2  ;;  %v4085_v20 = vld [vmem:[%s5088_s0 + $0x248] ss:$16 sps:$4 sm:$0xff]   ;;  %v966_v30 = vrot.slane %v4083_v19, %v4389_v38  ;;  %v1031_v41 = vrot.slane %v4091_v28, %v4389_v38  ;;  %v832_v46 = vcombine.low %v815_v11, %v829_v12 }
  0x91   :  { %v1625_v44 = vpack.c.bf16 %v617_v32, %v545_v25  ;;  %v1624_v52 = vpack.c.bf16 %v616_v34, %v544_v33  ;;  %v4788_v25 = vrot.slane %v4081_v16, %v4389_v38  ;;  %v1038_v32 = vrot.slane %v4087_v21, %v4389_v38  ;;  %v4092_v33 = vld [vmem:[%s5088_s0 + $0x26c] ss:$16 sps:$4 sm:$0xff]  }
  0x93   :  { %2282 = vmatmul.mubr.bf16.gmra.mrb[28].mxu0 %v1666_v40  ;;  %v678_v40 = vrot.slane %v4059_v29, %v4389_v38  ;;  %v830_v29 = vcombine.low %v808_v1, %v822_v2  ;;  %v4105_v1 = vld [vmem:[%s5088_s0 + $0x308] ss:$16 sps:$4 sm:$0xff]  }
  0x94   :  { %2379 = vmatmul.mubr.bf16.gmra.mrb[28].mxu1 %v1668_v42  ;;  %2419 = vmatprep.mubr.bf16.mxu0 %v1615_v5  ;;  %v4067_v42 = vld [vmem:[%s5088_s0 + $0x14c] ss:$16 sps:$4 sm:$0xff]  }
  0x95   :  { %2516 = vmatprep.mubr.bf16.mxu1 %v1617_v17  ;;  %v687_v48 = vcombine.high %v664_v39, %v678_v40  ;;  %v743_v50 = vrot.slane %v4067_v42, %v4389_v38  ;;  %v686_v58 = vcombine.low %v664_v39, %v678_v40  ;;  %v4080_v5 = vld [vmem:[%s5088_s0 + $0x1ec] ss:$16 sps:$4 sm:$0xff]   ;;  %v975_v39 = vcombine.high %v4788_v25, %v966_v30 }
  0x96   :  { %v901_v15 = vrot.slane %v4080_v5, %v4389_v38  ;;  %v1045_v42 = vrot.slane %v4092_v33, %v4389_v38  ;;  %v1189_v5 = vrot.slane %v4104_v54, %v4389_v38  ;;  %v4121_v33 = vld [vmem:[%s5088_s0 + $0x3c8] ss:$16 sps:$4 sm:$0xff]  }
  0x97   :  { %v761_v57 = vcombine.high %v743_v50, %v757_v51  ;;  %v1631_v63 = vpack.c.bf16 %v759_v53, %v687_v48  ;;  %v760_v7 = vcombine.low %v743_v50, %v757_v51  ;;  %v1630_v17 = vpack.c.bf16 %v758_v59, %v686_v58  ;;  %v4099_v50 = vld [vmem:[%s5088_s0 + $0x2e8] ss:$16 sps:$4 sm:$0xff]   ;;  %v4101_v51 = vld [vmem:[%s5088_s0 + $0x28c] ss:$16 sps:$4 sm:$0xff]  }
  0x98   :  { %v905_v24 = vcombine.high %v887_v14, %v901_v15  ;;  %v904_v47 = vcombine.low %v887_v14, %v901_v15  ;;  %v977_v48 = vcombine.high %v959_v36, %v973_v37  ;;  %v1049_v49 = vcombine.high %v1031_v41, %v1045_v42  ;;  %v4103_v53 = vld [vmem:[%s5088_s0 + $0x2cc] ss:$16 sps:$4 sm:$0xff]  }
  0x99   :  { %v1633_v6 = vpack.c.bf16 %v761_v57, %v689_v56  ;;  %v1632_v22 = vpack.c.bf16 %v760_v7, %v688_v0  ;;  %v4835_v57 = vrot.slane %v4093_v43, %v4389_v38  ;;  %v1103_v2 = vrot.slane %v4101_v51, %v4389_v38  ;;  %v4109_v7 = vld [vmem:[%s5088_s0 + $0x348] ss:$16 sps:$4 sm:$0xff]   ;;  %v4128_v43 = vld [vmem:[%s5088_s0 + $0x3ec] ss:$16 sps:$4 sm:$0xff]  }
  0x9a   :  { %v1640_v61 = vpack.c.bf16 %v904_v47, %v832_v46  ;;  %v1649_v62 = vpack.c.bf16 %v1049_v49, %v977_v48  ;;  %v1175_v4 = vrot.slane %v4103_v53, %v4389_v38  ;;  %v1048_v14 = vcombine.low %v1031_v41, %v1045_v42  ;;  %v4126_v41 = vld [vmem:[%s5088_s0 + $0x3ac] ss:$16 sps:$4 sm:$0xff]  }
  0x9b   :  { %2420 = vmatmul.mubr.bf16.vlgmr.msra.gmra.mrb[32].mxu0 %v1614_v8  ;;  %v880_v8 = vrot.slane %v4073_v60, %v4389_v38  ;;  %v1182_v60 = vrot.slane %v4099_v50, %v4389_v38  ;;  %v4127_v42 = vld [vmem:[%s5088_s0 + $0x3cc] ss:$16 sps:$4 sm:$0xff]  }
  0x9c   :  { %2517 = vmatmul.mubr.bf16.vlgmr.msra.gmra.mrb[32].mxu1 %v1616_v18  ;;  %2427 = vmatprep.mubr.bf16.mxu0 %v1623_v31  ;;  %v833_v18 = vcombine.high %v815_v11, %v829_v12  ;;  %v1024_v31 = vrot.slane %v4085_v20, %v4389_v38  ;;  %v4115_v11 = vld [vmem:[%s5088_s0 + $0x34c] ss:$16 sps:$4 sm:$0xff]   ;;  %v1193_v19 = vcombine.high %v1175_v4, %v1189_v5 }
  0x9d   :  { %2524 = vmatprep.mubr.bf16.mxu1 %v1625_v44  ;;  %v903_v13 = vcombine.high %v880_v8, %v894_v9  ;;  %v902_v35 = vcombine.low %v880_v8, %v894_v9  ;;  %v4095_v44 = vld [vmem:[%s5088_s0 + $0x2a8] ss:$16 sps:$4 sm:$0xff]   ;;  %v4113_v9 = vld [vmem:[%s5088_s0 + $0x30c] ss:$16 sps:$4 sm:$0xff]   ;;  %v1240_v20 = vrot.slane %v4105_v1, %v4389_v38  ;;  %v1319_v28 = vrot.slane %v4115_v11, %v4389_v38 }
  0x9e   :  { %v1641_v34 = vpack.c.bf16 %v905_v24, %v833_v18  ;;  %v1047_v40 = vcombine.high %v1024_v31, %v1038_v32  ;;  %v1110_v58 = vrot.slane %v4095_v44, %v4389_v38  ;;  %v1046_v0 = vcombine.low %v1024_v31, %v1038_v32  ;;  %v4111_v8 = vld [vmem:[%s5088_s0 + $0x368] ss:$16 sps:$4 sm:$0xff]   ;;  %v4116_v12 = vld [vmem:[%s5088_s0 + $0x36c] ss:$16 sps:$4 sm:$0xff]  }
  0x9f   :  { %v1639_v23 = vpack.c.bf16 %v903_v13, %v831_v10  ;;  %v1638_v55 = vpack.c.bf16 %v902_v35, %v830_v29  ;;  %v4114_v10 = vld [vmem:[%s5088_s0 + $0x32c] ss:$16 sps:$4 sm:$0xff]   ;;  %v976_v13 = vcombine.low %v959_v36, %v973_v37  ;;  %v1247_v26 = vrot.slane %v4113_v9, %v4389_v38  ;;  %v4117_v31 = vld [vmem:[%s5088_s0 + $0x388] ss:$16 sps:$4 sm:$0xff]  }
  0xa0   :  { %v1647_v56 = vpack.c.bf16 %v1047_v40, %v975_v39  ;;  %v1119_v15 = vcombine.high %v4835_v57, %v1110_v58  ;;  %v1261_v27 = vrot.slane %v4114_v10, %v4389_v38  ;;  %v1333_v29 = vrot.slane %v4116_v12, %v4389_v38  ;;  %v4119_v32 = vld [vmem:[%s5088_s0 + $0x3a8] ss:$16 sps:$4 sm:$0xff]   ;;  %v4125_v40 = vld [vmem:[%s5088_s0 + $0x38c] ss:$16 sps:$4 sm:$0xff]  }
  0xa1   :  { %v1648_v24 = vpack.c.bf16 %v1048_v14, %v976_v13  ;;  %v1118_v35 = vcombine.low %v4835_v57, %v1110_v58  ;;  %v1384_v50 = vrot.slane %v4117_v31, %v4389_v38  ;;  %v1398_v51 = vrot.slane %v4119_v32, %v4389_v38  ;;  %v4129_v13 = vld [vmem:[%s5091_s3] sm:$0xff]   ;;  %v4130_v14 = vld [vmem:[%s5091_s3 + $0x8] sm:$0xff]  }
  0xa2   :  { %v1265_v46 = vcombine.high %v1247_v26, %v1261_v27  ;;  %v1337_v47 = vcombine.high %v1319_v28, %v1333_v29  ;;  %v1405_v57 = vrot.slane %v4126_v41, %v4389_v38  ;;  %v1463_v58 = vrot.slane %v4127_v42, %v4389_v38  ;;  %3755 = vmatprep.subr.bf16.mxu0 %v4129_v13 }
  0xa3   :  { %2428 = vmatmul.mubr.bf16.gmra.mrb[36].mxu0 %v1622_v45  ;;  %v4097_v45 = vld [vmem:[%s5088_s0 + $0x2c8] ss:$16 sps:$4 sm:$0xff]   ;;  %v1336_v1 = vcombine.low %v1319_v28, %v1333_v29 }
  0xa4   :  { %2525 = vmatmul.mubr.bf16.gmra.mrb[36].mxu1 %v1624_v52  ;;  %2435 = vmatprep.mubr.bf16.mxu0 %v1631_v63  ;;  %v4102_v52 = vld [vmem:[%s5088_s0 + $0x2ac] ss:$16 sps:$4 sm:$0xff]   ;;  %v1168_v59 = vrot.slane %v4097_v45, %v4389_v38  ;;  %v974_v63 = vcombine.low %v4788_v25, %v966_v30  ;;  %v1192_v45 = vcombine.low %v1175_v4, %v1189_v5 }
  0xa5   :  { %2532 = vmatprep.mubr.bf16.mxu1 %v1633_v6  ;;  %v1117_v3 = vrot.slane %v4102_v52, %v4389_v38  ;;  %v4107_v6 = vld [vmem:[%s5088_s0 + $0x328] ss:$16 sps:$4 sm:$0xff]   ;;  %v1456_v52 = vrot.slane %v4121_v33, %v4389_v38  ;;  %3756 = vmatpush3.bf16.msra.mxu0 %v4129_v13 }
  0xa6   :  { %v1191_v16 = vcombine.high %v1168_v59, %v1182_v60  ;;  %v1254_v21 = vrot.slane %v4107_v6, %v4389_v38  ;;  %v1190_v36 = vcombine.low %v1168_v59, %v1182_v60  ;;  %v1477_v59 = vrot.slane %v4128_v43, %v4389_v38  ;;  %3757 = vmatprep.subr.bf16.mxu0 %v4130_v14 }
  0xa7   :  { %v1121_v18 = vcombine.high %v1103_v2, %v1117_v3  ;;  %v1120_v44 = vcombine.low %v1103_v2, %v1117_v3 }
  0xa8   :  { %v1655_v25 = vpack.c.bf16 %v1191_v16, %v1119_v15  ;;  %v1263_v37 = vcombine.high %v1240_v20, %v1254_v21  ;;  %v1654_v48 = vpack.c.bf16 %v1190_v36, %v1118_v35  ;;  %v1262_v60 = vcombine.low %v1240_v20, %v1254_v21  ;;  %v4131_v15 = vld [vmem:[%s5091_s3 + $0x10] sm:$0xff]   ;;  %v4132_v16 = vld [vmem:[%s5091_s3 + $0x18] sm:$0xff]  }
  0xa9   :  { %v1657_v30 = vpack.c.bf16 %v1193_v19, %v1121_v18  ;;  %v1656_v54 = vpack.c.bf16 %v1192_v45, %v1120_v44  ;;  %v1481_v3 = vcombine.high %v1463_v58, %v1477_v59  ;;  %v1480_v10 = vcombine.low %v1463_v58, %v1477_v59  ;;  %3758 = vmatpush3.bf16.msra.mxu0 %v4130_v14  ;;  %v4134_v18 = vld [vmem:[%s5091_s3 + $0x28] sm:$0xff]   ;;  %v4135_v19 = vld [vmem:[%s5091_s3 + $0x30] sm:$0xff]   ;;  %v4136_v20 = vld [vmem:[%s5091_s3 + $0x38] sm:$0xff]  }
  0xaa   :  { %3759 = vmatprep.subr.bf16.mxu0 %v4131_v15 }
  0xab   :  { %2436 = vmatmul.mubr.bf16.gmra.mrb[40].mxu0 %v1630_v17  ;;  %v1646_v17 = vpack.c.bf16 %v1046_v0, %v974_v63  ;;  %v1264_v0 = vcombine.low %v1247_v26, %v1261_v27 }
  0xac   :  { %2443 = vmatprep.mubr.bf16.mxu0 %v1639_v23  ;;  %2533 = vmatmul.mubr.bf16.gmra.mrb[40].mxu1 %v1632_v22  ;;  %v1312_v22 = vrot.slane %v4109_v7, %v4389_v38  ;;  %v1326_v23 = vrot.slane %v4111_v8, %v4389_v38  ;;  %v1406_v8 = vcombine.low %v1384_v50, %v1398_v51 }
  0xad   :  { %2540 = vmatprep.mubr.bf16.mxu1 %v1641_v34  ;;  %v4123_v34 = vld [vmem:[%s5088_s0 + $0x3e8] ss:$16 sps:$4 sm:$0xff]   ;;  %v1664_v6 = vpack.c.bf16 %v1336_v1, %v1264_v0  ;;  %3760 = vmatpush3.bf16.msra.mxu0 %v4131_v15 }
  0xae   :  { %v1335_v39 = vcombine.high %v1312_v22, %v1326_v23  ;;  %v1470_v53 = vrot.slane %v4123_v34, %v4389_v38  ;;  %3761 = vmatprep.subr.bf16.mxu0 %v4132_v16 }
  0xb0   :  { %v1663_v49 = vpack.c.bf16 %v1335_v39, %v1263_v37  ;;  %v1479_v63 = vcombine.high %v1456_v52, %v1470_v53  ;;  %v1478_v9 = vcombine.low %v1456_v52, %v1470_v53 }
  0xb1   :  { %3762 = vmatpush3.bf16.msra.mxu0 %v4132_v16 }
  0xb2   :  { %v1670_v11 = vpack.c.bf16 %v1478_v9, %v1406_v8 }
  0xb3   :  { %2444 = vmatmul.mubr.bf16.gmra.mrb[44].mxu0 %v1638_v55  ;;  %v1665_v55 = vpack.c.bf16 %v1337_v47, %v1265_v46 }
  0xb4   :  { %2451 = vmatprep.mubr.bf16.mxu0 %v1647_v56  ;;  %2541 = vmatmul.mubr.bf16.gmra.mrb[44].mxu1 %v1640_v61  ;;  %v1391_v56 = vrot.slane %v4125_v40, %v4389_v38  ;;  %v1334_v61 = vcombine.low %v1312_v22, %v1326_v23  ;;  %v4935_v22 = vld [vmem:[#allocation5] ss:$0 sm:$0xff] }
  0xb5   :  { %2548 = vmatprep.mubr.bf16.mxu1 %v1649_v62  ;;  %v1407_v62 = vcombine.high %v1384_v50, %v1398_v51 }
  0xb6   :  { %v1409_v2 = vcombine.high %v1391_v56, %v1405_v57  ;;  %v1662_v4 = vpack.c.bf16 %v1334_v61, %v1262_v60  ;;  %v1408_v38 = vcombine.low %v1391_v56, %v1405_v57  ;;  %v4137_v56 = vld [vmem:[#allocation7] sm:$0xff]   ;;  %v4138_v57 = vld [vmem:[#allocation7 + $0x8] sm:$0xff]  }
  0xb7   :  { %v1671_v5 = vpack.c.bf16 %v1479_v63, %v1407_v62  ;;  %3787 = vmatprep.subr.bf16.mxu1 %v4137_v56 }
  0xb8   :  { %v1673_v7 = vpack.c.bf16 %v1481_v3, %v1409_v2  ;;  %v1672_v12 = vpack.c.bf16 %v1480_v10, %v1408_v38  ;;  %3788 = vmatpush3.bf16.msra.mxu1 %v4137_v56  ;;  %v4140_v38 = vld [vmem:[#allocation7 + $0x18] sm:$0xff]  }
  0xb9   :  { %3789 = vmatprep.subr.bf16.mxu1 %v4138_v57 }
  0xbb   :  { %2452 = vmatmul.mubr.bf16.gmra.mrb[48].mxu0 %v1646_v17  ;;  %v4133_v17 = vld [vmem:[%s5091_s3 + $0x20] sm:$0xff]  }
  0xbc   :  { %2459 = vmatprep.mubr.bf16.mxu0 %v1655_v25  ;;  %2549 = vmatmul.mubr.bf16.gmra.mrb[48].mxu1 %v1648_v24 }
  0xbd   :  { %2556 = vmatprep.mubr.bf16.mxu1 %v1657_v30  ;;  %3763 = vmatprep.subr.bf16.mxu0 %v4133_v17 }
  0xbe   :  { %3764 = vmatpush3.bf16.msra.mxu0 %v4133_v17  ;;  %3790 = vmatpush3.bf16.msra.mxu1 %v4138_v57  ;;  %v4141_v17 = vld [vmem:[#allocation7 + $0x20] sm:$0xff]  }
  0xbf   :  { %3765 = vmatprep.subr.bf16.mxu0 %v4134_v18 }
  0xc2   :  { %3766 = vmatpush3.bf16.msra.mxu0 %v4134_v18 }
  0xc3   :  { %2460 = vmatmul.mubr.bf16.gmra.mrb[52].mxu0 %v1654_v48  ;;  %3767 = vmatprep.subr.bf16.mxu0 %v4135_v19 }
  0xc4   :  { %2467 = vmatprep.mubr.bf16.mxu0 %v1663_v49  ;;  %2557 = vmatmul.mubr.bf16.gmra.mrb[52].mxu1 %v1656_v54 }
  0xc5   :  { %2564 = vmatprep.mubr.bf16.mxu1 %v1665_v55 }
  0xc6   :  { %3768 = vmatpush3.bf16.msra.mxu0 %v4135_v19 }
  0xc7   :  { %3769 = vmatprep.subr.bf16.mxu0 %v4136_v20 }
  0xca   :  { %3770 = vmatpush3.bf16.msra.mxu0 %v4136_v20 }
  0xcb   :  { %2468 = vmatmul.mubr.bf16.gmra.mrb[56].mxu0 %v1662_v4 }
  0xcc   :  { %2475 = vmatprep.mubr.bf16.mxu0 %v1671_v5  ;;  %2565 = vmatmul.mubr.bf16.gmra.mrb[56].mxu1 %v1664_v6  ;;  %v4139_v5 = vld [vmem:[#allocation7 + $0x10] sm:$0xff]  }
  0xcd   :  { %2572 = vmatprep.mubr.bf16.mxu1 %v1673_v7  ;;  %3791 = vmatprep.subr.bf16.mxu1 %v4139_v5 }
  0xce   :  { %3792 = vmatpush3.bf16.msra.mxu1 %v4139_v5 }
  0xcf   :  { %3793 = vmatprep.subr.bf16.mxu1 %v4140_v38 }
  0xd2   :  { %3794 = vmatpush3.bf16.msra.mxu1 %v4140_v38 }
  0xd3   :  { %2476 = vmatmul.mubr.bf16.gmra.mrb[60].mxu0 %v1670_v11  ;;  %3795 = vmatprep.subr.bf16.mxu1 %v4141_v17 }
  0xd4   :  { %2573 = vmatmul.mubr.bf16.gmra.mrb[60].mxu1 %v1672_v12 }
  0xd6   :  { %3796 = vmatpush3.bf16.msra.mxu1 %v4141_v17 }
 0x12e   :  { %v3467_v21 = vpop.f32.mrb[0].mxu0 }
 0x12f   :  { %v3468_v23 = vpop.f32.mrb[1].mxu0  ;;  %v3531_v24 = vpop.f32.mrb[0].mxu1 }
 0x130   :  { %v3469_v25 = vadd.f32 %v3468_v23, %v3467_v21  ;;  %v3470_v26 = vpop.f32.mrb[2].mxu0  ;;  %v3532_v27 = vpop.f32.mrb[1].mxu1 }
 0x131   :  { %v3471_v28 = vpop.f32.mrb[3].mxu0  ;;  %v3533_v30 = vadd.f32 %v3532_v27, %v3531_v24  ;;  %v3534_v31 = vpop.f32.mrb[2].mxu1 }
 0x132   :  { %v2228_v29 = vadd.f32 %v3469_v25, %v4935_v22  ;;  %v3472_v32 = vadd.f32 %v3471_v28, %v3470_v26  ;;  %v3535_v33 = vpop.f32.mrb[3].mxu1 }
 0x133   :  { %v3536_v36 = vadd.f32 %v3535_v33, %v3534_v31 }
 0x134   :  { %v4938_v34 = vadd.f32 %v3533_v30, %v2228_v29  ;;  %v2231_v35 = vadd.f32 %v3472_v32, %v4935_v22 }
 0x136   :  { %v4941_v37 = vadd.f32 %v3536_v36, %v2231_v35  ;;  %v3473_v39 = vpop.f32.mrb[4].mxu0 }
 0x137   :  { %v3537_v40 = vpop.f32.mrb[4].mxu1  ;;  %v3474_v41 = vpop.f32.mrb[5].mxu0 }
 0x138   :  { %v3475_v42 = vadd.f32 %v3474_v41, %v3473_v39  ;;  %v3538_v43 = vpop.f32.mrb[5].mxu1  ;;  %v3476_v44 = vpop.f32.mrb[6].mxu0 }
 0x139   :  { %v3539_v45 = vadd.f32 %v3538_v43, %v3537_v40  ;;  %v3540_v46 = vpop.f32.mrb[6].mxu1  ;;  %v3477_v47 = vpop.f32.mrb[7].mxu0 }
 0x13a   :  { %v2236_v48 = vadd.f32 %v3475_v42, %v4935_v22  ;;  %v3478_v49 = vadd.f32 %v3477_v47, %v3476_v44  ;;  %v3541_v50 = vpop.f32.mrb[7].mxu1 }
 0x13b   :  { %v3542_v51 = vadd.f32 %v3541_v50, %v3540_v46 }
 0x13c   :  { %v4944_v52 = vadd.f32 %v3539_v45, %v2236_v48  ;;  %v2239_v53 = vadd.f32 %v3478_v49, %v4935_v22 }
 0x13e   :  { %v4947_v54 = vadd.f32 %v3542_v51, %v2239_v53  ;;  %v3479_v55 = vpop.f32.mrb[8].mxu0 }
 0x13f   :  { %v3543_v58 = vpop.f32.mrb[8].mxu1  ;;  %v3480_v59 = vpop.f32.mrb[9].mxu0 }
 0x140   :  { %v3481_v60 = vadd.f32 %v3480_v59, %v3479_v55  ;;  %v3544_v61 = vpop.f32.mrb[9].mxu1  ;;  %v3482_v62 = vpop.f32.mrb[10].mxu0 }
 0x141   :  { %v3545_v63 = vadd.f32 %v3544_v61, %v3543_v58  ;;  %v3546_v0 = vpop.f32.mrb[10].mxu1  ;;  %v3483_v1 = vpop.f32.mrb[11].mxu0 }
 0x142   :  { %v2244_v2 = vadd.f32 %v3481_v60, %v4935_v22  ;;  %v3484_v3 = vadd.f32 %v3483_v1, %v3482_v62  ;;  %v3547_v4 = vpop.f32.mrb[11].mxu1 }
 0x143   :  { %v3548_v6 = vadd.f32 %v3547_v4, %v3546_v0 }
 0x144   :  { %v4950_v7 = vadd.f32 %v3545_v63, %v2244_v2  ;;  %v2247_v8 = vadd.f32 %v3484_v3, %v4935_v22 }
 0x146   :  { %v4953_v9 = vadd.f32 %v3548_v6, %v2247_v8  ;;  %v3485_v10 = vpop.f32.mrb[12].mxu0 }
 0x147   :  { %v3486_v11 = vpop.f32.mrb[13].mxu0  ;;  %v3549_v12 = vpop.f32.mrb[12].mxu1 }
 0x148   :  { %v3487_v13 = vadd.f32 %v3486_v11, %v3485_v10  ;;  %v3488_v14 = vpop.f32.mrb[14].mxu0  ;;  %v3550_v15 = vpop.f32.mrb[13].mxu1 }
 0x149   :  { %v3489_v16 = vpop.f32.mrb[15].mxu0  ;;  %v3551_v19 = vadd.f32 %v3550_v15, %v3549_v12  ;;  %v3552_v20 = vpop.f32.mrb[14].mxu1 }
 0x14a   :  { %v2252_v18 = vadd.f32 %v3487_v13, %v4935_v22  ;;  %v3490_v21 = vadd.f32 %v3489_v16, %v3488_v14  ;;  %v3553_v23 = vpop.f32.mrb[15].mxu1 }
 0x14b   :  { %v3554_v26 = vadd.f32 %v3553_v23, %v3552_v20 }
 0x14c   :  { %v4956_v24 = vadd.f32 %v3551_v19, %v2252_v18  ;;  %v2255_v25 = vadd.f32 %v3490_v21, %v4935_v22 }
 0x14e   :  { %v4959_v27 = vadd.f32 %v3554_v26, %v2255_v25  ;;  %v3491_v28 = vpop.f32.mrb[16].mxu0 }
 0x14f   :  { %v3555_v29 = vpop.f32.mrb[16].mxu1  ;;  %v3492_v30 = vpop.f32.mrb[17].mxu0 }
 0x150   :  { %v3493_v31 = vadd.f32 %v3492_v30, %v3491_v28  ;;  %v3556_v32 = vpop.f32.mrb[17].mxu1  ;;  %v3494_v33 = vpop.f32.mrb[18].mxu0 }
 0x151   :  { %v3557_v35 = vadd.f32 %v3556_v32, %v3555_v29  ;;  %v3558_v36 = vpop.f32.mrb[18].mxu1  ;;  %v3495_v39 = vpop.f32.mrb[19].mxu0 }
 0x152   :  { %v2260_v40 = vadd.f32 %v3493_v31, %v4935_v22  ;;  %v3496_v41 = vadd.f32 %v3495_v39, %v3494_v33  ;;  %v3559_v42 = vpop.f32.mrb[19].mxu1 }
 0x153   :  { %v3560_v43 = vadd.f32 %v3559_v42, %v3558_v36 }
 0x154   :  { %v4962_v44 = vadd.f32 %v3557_v35, %v2260_v40  ;;  %v2263_v45 = vadd.f32 %v3496_v41, %v4935_v22 }
 0x156   :  { %v4965_v46 = vadd.f32 %v3560_v43, %v2263_v45  ;;  %v3497_v47 = vpop.f32.mrb[20].mxu0 }
 0x157   :  { %v3561_v48 = vpop.f32.mrb[20].mxu1  ;;  %v3498_v49 = vpop.f32.mrb[21].mxu0 }
 0x158   :  { %v3499_v50 = vadd.f32 %v3498_v49, %v3497_v47  ;;  %v3562_v51 = vpop.f32.mrb[21].mxu1  ;;  %v3500_v53 = vpop.f32.mrb[22].mxu0 }
 0x159   :  { %v3563_v55 = vadd.f32 %v3562_v51, %v3561_v48  ;;  %v3564_v56 = vpop.f32.mrb[22].mxu1  ;;  %v3501_v57 = vpop.f32.mrb[23].mxu0 }
 0x15a   :  { %v2268_v58 = vadd.f32 %v3499_v50, %v4935_v22  ;;  %v3502_v59 = vadd.f32 %v3501_v57, %v3500_v53  ;;  %v3565_v60 = vpop.f32.mrb[23].mxu1 }
 0x15b   :  { %v3566_v61 = vadd.f32 %v3565_v60, %v3564_v56 }
 0x15c   :  { %v4968_v62 = vadd.f32 %v3563_v55, %v2268_v58  ;;  %v2271_v63 = vadd.f32 %v3502_v59, %v4935_v22 }
 0x15e   :  { %v4971_v0 = vadd.f32 %v3566_v61, %v2271_v63  ;;  %v3503_v1 = vpop.f32.mrb[24].mxu0 }
 0x15f   :  { %v3504_v2 = vpop.f32.mrb[25].mxu0  ;;  %v3567_v3 = vpop.f32.mrb[24].mxu1 }
 0x160   :  { %v3505_v4 = vadd.f32 %v3504_v2, %v3503_v1  ;;  %v3506_v5 = vpop.f32.mrb[26].mxu0  ;;  %v3568_v6 = vpop.f32.mrb[25].mxu1 }
 0x161   :  { %v3507_v8 = vpop.f32.mrb[27].mxu0  ;;  %v3569_v10 = vadd.f32 %v3568_v6, %v3567_v3  ;;  %v3570_v11 = vpop.f32.mrb[26].mxu1 }
 0x162   :  { %v2276_v38 = vadd.f32 %v3505_v4, %v4935_v22  ;;  %v3508_v12 = vadd.f32 %v3507_v8, %v3506_v5  ;;  %v3571_v13 = vpop.f32.mrb[27].mxu1 }
 0x163   :  { %v3572_v16 = vadd.f32 %v3571_v13, %v3570_v11 }
 0x164   :  { %v4974_v14 = vadd.f32 %v3569_v10, %v2276_v38  ;;  %v2279_v15 = vadd.f32 %v3508_v12, %v4935_v22 }
 0x166   :  { %v4977_v17 = vadd.f32 %v3572_v16, %v2279_v15  ;;  %v3509_v18 = vpop.f32.mrb[28].mxu0 }
 0x167   :  { %v3573_v19 = vpop.f32.mrb[28].mxu1  ;;  %v3510_v20 = vpop.f32.mrb[29].mxu0 }
 0x168   :  { %v3511_v21 = vadd.f32 %v3510_v20, %v3509_v18  ;;  %v3574_v23 = vpop.f32.mrb[29].mxu1  ;;  %v3512_v25 = vpop.f32.mrb[30].mxu0 }
 0x169   :  { %v3575_v26 = vadd.f32 %v3574_v23, %v3573_v19  ;;  %v3576_v28 = vpop.f32.mrb[30].mxu1  ;;  %v3513_v29 = vpop.f32.mrb[31].mxu0 }
 0x16a   :  { %v2284_v30 = vadd.f32 %v3511_v21, %v4935_v22  ;;  %v3514_v31 = vadd.f32 %v3513_v29, %v3512_v25  ;;  %v3577_v32 = vpop.f32.mrb[31].mxu1 }
 0x16b   :  { %v3578_v33 = vadd.f32 %v3577_v32, %v3576_v28 }
 0x16c   :  { %v4980_v35 = vadd.f32 %v3575_v26, %v2284_v30  ;;  %v2287_v36 = vadd.f32 %v3514_v31, %v4935_v22 }
 0x16e   :  { %v4983_v39 = vadd.f32 %v3578_v33, %v2287_v36  ;;  %v3595_v40 = vpop.f32.mrb[32].mxu0 }
 0x16f   :  { %v3596_v41 = vpop.f32.mrb[33].mxu0  ;;  %v3659_v42 = vpop.f32.mrb[32].mxu1 }
 0x170   :  { %v3597_v43 = vadd.f32 %v3596_v41, %v3595_v40  ;;  %v3598_v45 = vpop.f32.mrb[34].mxu0  ;;  %v3660_v47 = vpop.f32.mrb[33].mxu1 }
 0x171   :  { %v3599_v48 = vpop.f32.mrb[35].mxu0  ;;  %v3661_v50 = vadd.f32 %v3660_v47, %v3659_v42  ;;  %v3662_v51 = vpop.f32.mrb[34].mxu1 }
 0x172   :  { %v2422_v49 = vadd.f32 %v3597_v43, %v4938_v34  ;;  %v3600_v53 = vadd.f32 %v3599_v48, %v3598_v45  ;;  %v3663_v55 = vpop.f32.mrb[35].mxu1 }
 0x173   :  { %v3664_v58 = vadd.f32 %v3663_v55, %v3662_v51 }
 0x174   :  { %v2519_v56 = vadd.f32 %v3661_v50, %v2422_v49  ;;  %v2425_v57 = vadd.f32 %v3600_v53, %v4941_v37 }
 0x176   :  { %v2581_v22 = vmul.f32 0.01, %v2519_v56  ;;  %v2522_v59 = vadd.f32 %v3664_v58, %v2425_v57  ;;  %v3601_v60 = vpop.f32.mrb[36].mxu0 }
 0x177   :  { %v3602_v61 = vpop.f32.mrb[37].mxu0  ;;  %v3665_v1 = vpop.f32.mrb[36].mxu1 }
 0x178   :  { %v2582_v63 = vmul.f32 0.01, %v2522_v59  ;;  %v3603_v2 = vadd.f32 %v3602_v61, %v3601_v60  ;;  %v3604_v3 = vpop.f32.mrb[38].mxu0  ;;  %v2597_v4 = vmax.f32 %v2519_v56, %v2581_v22  ;;  %v3666_v5 = vpop.f32.mrb[37].mxu1 }
 0x179   :  { %v3605_v6 = vpop.f32.mrb[39].mxu0  ;;  %v3667_v38 = vadd.f32 %v3666_v5, %v3665_v1  ;;  %v3668_v10 = vpop.f32.mrb[38].mxu1 }
 0x17a   :  { %v2598_v34 = vmax.f32 %v2522_v59, %v2582_v63  ;;  %v2430_v8 = vadd.f32 %v3603_v2, %v4944_v52  ;;  %v3606_v11 = vadd.f32 %v3605_v6, %v3604_v3  ;;  %v3669_v12 = vpop.f32.mrb[39].mxu1 }
 0x17b   :  { %v3670_v15 = vadd.f32 %v3669_v12, %v3668_v10 }
 0x17c   :  { %v2527_v37 = vadd.f32 %v3667_v38, %v2430_v8  ;;  %v2433_v13 = vadd.f32 %v3606_v11, %v4947_v54  ;;  %v2613_v16 = vpack.c.bf16 %v2598_v34, %v2597_v4 }
 0x17e   :  { %v2583_v18 = vmul.f32 0.01, %v2527_v37  ;;  %v2530_v19 = vadd.f32 %v3670_v15, %v2433_v13  ;;  %v3607_v20 = vpop.f32.mrb[40].mxu0  ;;  %3771 = vmatprep.mubr.bf16.mxu0 %v2613_v16 }
 0x17f   :  { %v3608_v21 = vpop.f32.mrb[41].mxu0  ;;  %v3671_v25 = vpop.f32.mrb[40].mxu1 }
 0x180   :  { %v2584_v23 = vmul.f32 0.01, %v2530_v19  ;;  %v3609_v26 = vadd.f32 %v3608_v21, %v3607_v20  ;;  %v3610_v28 = vpop.f32.mrb[42].mxu0  ;;  %v2599_v29 = vmax.f32 %v2527_v37, %v2583_v18  ;;  %v3672_v52 = vpop.f32.mrb[41].mxu1 }
 0x181   :  { %v3611_v30 = vpop.f32.mrb[43].mxu0  ;;  %v3673_v33 = vadd.f32 %v3672_v52, %v3671_v25  ;;  %v3674_v36 = vpop.f32.mrb[42].mxu1 }
 0x182   :  { %v2600_v31 = vmax.f32 %v2530_v19, %v2584_v23  ;;  %v2438_v32 = vadd.f32 %v3609_v26, %v4950_v7  ;;  %v3612_v54 = vadd.f32 %v3611_v30, %v3610_v28  ;;  %v3675_v40 = vpop.f32.mrb[43].mxu1 }
 0x183   :  { %v3676_v45 = vadd.f32 %v3675_v40, %v3674_v36 }
 0x184   :  { %v2614_v41 = vpack.c.bf16 %v2600_v31, %v2599_v29  ;;  %v2535_v42 = vadd.f32 %v3673_v33, %v2438_v32  ;;  %v2441_v43 = vadd.f32 %v3612_v54, %v4953_v9 }
 0x186   :  { %v2585_v47 = vmul.f32 0.01, %v2535_v42  ;;  %v2538_v48 = vadd.f32 %v3676_v45, %v2441_v43  ;;  %v3613_v49 = vpop.f32.mrb[44].mxu0  ;;  %3772 = vmatmul.mubr.bf16.vlgmr.msra.gmra.mrb[64].mxu0 %v2614_v41 }
 0x187   :  { %v3614_v50 = vpop.f32.mrb[45].mxu0  ;;  %v3677_v53 = vpop.f32.mrb[44].mxu1 }
 0x188   :  { %v2586_v51 = vmul.f32 0.01, %v2538_v48  ;;  %v3615_v55 = vadd.f32 %v3614_v50, %v3613_v49  ;;  %v3616_v56 = vpop.f32.mrb[46].mxu0  ;;  %v2601_v57 = vmax.f32 %v2535_v42, %v2585_v47  ;;  %v3678_v7 = vpop.f32.mrb[45].mxu1 }
 0x189   :  { %v3617_v58 = vpop.f32.mrb[47].mxu0  ;;  %v3679_v60 = vadd.f32 %v3678_v7, %v3677_v53  ;;  %v3680_v61 = vpop.f32.mrb[46].mxu1 }
 0x18a   :  { %v2602_v22 = vmax.f32 %v2538_v48, %v2586_v51  ;;  %v2446_v59 = vadd.f32 %v3615_v55, %v4956_v24  ;;  %v3618_v63 = vadd.f32 %v3617_v58, %v3616_v56  ;;  %v3681_v9 = vpop.f32.mrb[47].mxu1 }
 0x18b   :  { %v3682_v3 = vadd.f32 %v3681_v9, %v3680_v61 }
 0x18c   :  { %v2543_v1 = vadd.f32 %v3679_v60, %v2446_v59  ;;  %v2449_v2 = vadd.f32 %v3618_v63, %v4959_v27  ;;  %v2615_v4 = vpack.c.bf16 %v2602_v22, %v2601_v57 }
 0x18e   :  { %v2587_v5 = vmul.f32 0.01, %v2543_v1  ;;  %v2546_v6 = vadd.f32 %v3682_v3, %v2449_v2  ;;  %v3619_v34 = vpop.f32.mrb[48].mxu0  ;;  %3775 = vmatprep.mubr.bf16.mxu0 %v2615_v4 }
 0x18f   :  { %v3620_v8 = vpop.f32.mrb[49].mxu0  ;;  %v3683_v10 = vpop.f32.mrb[48].mxu1 }
 0x190   :  { %v2588_v38 = vmul.f32 0.01, %v2546_v6  ;;  %v3621_v11 = vadd.f32 %v3620_v8, %v3619_v34  ;;  %v3622_v12 = vpop.f32.mrb[50].mxu0  ;;  %v2603_v37 = vmax.f32 %v2543_v1, %v2587_v5  ;;  %v3684_v24 = vpop.f32.mrb[49].mxu1 }
 0x191   :  { %v3623_v13 = vpop.f32.mrb[51].mxu0  ;;  %v3685_v18 = vadd.f32 %v3684_v24, %v3683_v10  ;;  %v3686_v19 = vpop.f32.mrb[50].mxu1 }
 0x192   :  { %v2604_v15 = vmax.f32 %v2546_v6, %v2588_v38  ;;  %v2454_v16 = vadd.f32 %v3621_v11, %v4962_v44  ;;  %v3624_v27 = vadd.f32 %v3623_v13, %v3622_v12  ;;  %v3687_v20 = vpop.f32.mrb[51].mxu1 }
 0x193   :  { %v3688_v25 = vadd.f32 %v3687_v20, %v3686_v19 }
 0x194   :  { %v2551_v21 = vadd.f32 %v3685_v18, %v2454_v16  ;;  %v2457_v23 = vadd.f32 %v3624_v27, %v4965_v46  ;;  %v2616_v26 = vpack.c.bf16 %v2604_v15, %v2603_v37 }
 0x196   :  { %v2589_v28 = vmul.f32 0.01, %v2551_v21  ;;  %v2554_v29 = vadd.f32 %v3688_v25, %v2457_v23  ;;  %v3625_v52 = vpop.f32.mrb[52].mxu0  ;;  %3776 = vmatmul.mubr.bf16.gmra.mrb[68].mxu0 %v2616_v26 }
 0x197   :  { %v3626_v30 = vpop.f32.mrb[53].mxu0  ;;  %v3689_v32 = vpop.f32.mrb[52].mxu1 }
 0x198   :  { %v2590_v31 = vmul.f32 0.01, %v2554_v29  ;;  %v3627_v33 = vadd.f32 %v3626_v30, %v3625_v52  ;;  %v3628_v36 = vpop.f32.mrb[54].mxu0  ;;  %v2605_v54 = vmax.f32 %v2551_v21, %v2589_v28  ;;  %v3690_v44 = vpop.f32.mrb[53].mxu1 }
 0x199   :  { %v3629_v40 = vpop.f32.mrb[55].mxu0  ;;  %v3691_v43 = vadd.f32 %v3690_v44, %v3689_v32  ;;  %v3692_v45 = vpop.f32.mrb[54].mxu1  ;;  %v4146_v44 = vld [vmem:[%s5095_s7 + $0x8] sm:$0xff]  }
 0x19a   :  { %v2606_v41 = vmax.f32 %v2554_v29, %v2590_v31  ;;  %v2462_v42 = vadd.f32 %v3627_v33, %v4968_v62  ;;  %v3630_v46 = vadd.f32 %v3629_v40, %v3628_v36  ;;  %v3693_v47 = vpop.f32.mrb[55].mxu1  ;;  %v4142_v36 = vld [vmem:[#allocation7 + $0x28] sm:$0xff]  }
 0x19b   :  { %v3694_v50 = vadd.f32 %v3693_v47, %v3692_v45  ;;  %3797 = vmatprep.subr.bf16.mxu1 %v4142_v36  ;;  %v4147_v40 = vld [vmem:[%s5095_s7 + $0x10] sm:$0xff]  }
 0x19c   :  { %v2559_v48 = vadd.f32 %v3691_v43, %v2462_v42  ;;  %v2465_v49 = vadd.f32 %v3630_v46, %v4971_v0  ;;  %v2617_v51 = vpack.c.bf16 %v2606_v41, %v2605_v54  ;;  %3798 = vmatpush3.bf16.msra.mxu1 %v4142_v36  ;;  %v4144_v54 = vld [vmem:[#allocation7 + $0x38] sm:$0xff]  }
 0x19d   :  { %v4148_v41 = vld [vmem:[%s5095_s7 + $0x18] sm:$0xff]   ;;  %v4149_v42 = vld [vmem:[%s5095_s7 + $0x20] sm:$0xff]  }
 0x19e   :  { %v2591_v53 = vmul.f32 0.01, %v2559_v48  ;;  %v2562_v55 = vadd.f32 %v3694_v50, %v2465_v49  ;;  %v3631_v56 = vpop.f32.mrb[56].mxu0  ;;  %3779 = vmatprep.mubr.bf16.mxu0 %v2617_v51  ;;  %v5019_v43 = vld [vmem:[%s5092_s4] ss:$0 sm:$0xff] }
 0x19f   :  { %v3632_v57 = vpop.f32.mrb[57].mxu0  ;;  %v3695_v58 = vpop.f32.mrb[56].mxu1 }
 0x1a0   :  { %v2592_v7 = vmul.f32 0.01, %v2562_v55  ;;  %v3633_v22 = vadd.f32 %v3632_v57, %v3631_v56  ;;  %v3634_v59 = vpop.f32.mrb[58].mxu0  ;;  %v2607_v60 = vmax.f32 %v2559_v48, %v2591_v53  ;;  %v3696_v62 = vpop.f32.mrb[57].mxu1 }
 0x1a1   :  { %v3635_v61 = vpop.f32.mrb[59].mxu0  ;;  %v3697_v1 = vadd.f32 %v3696_v62, %v3695_v58  ;;  %v3698_v2 = vpop.f32.mrb[58].mxu1 }
 0x1a2   :  { %v2608_v63 = vmax.f32 %v2562_v55, %v2592_v7  ;;  %v2470_v9 = vadd.f32 %v3633_v22, %v4974_v14  ;;  %v3636_v0 = vadd.f32 %v3635_v61, %v3634_v59  ;;  %v3699_v3 = vpop.f32.mrb[59].mxu1 }
 0x1a3   :  { %v3700_v6 = vadd.f32 %v3699_v3, %v3698_v2 }
 0x1a4   :  { %v2567_v4 = vadd.f32 %v3697_v1, %v2470_v9  ;;  %v2473_v5 = vadd.f32 %v3636_v0, %v4977_v17  ;;  %v2618_v34 = vpack.c.bf16 %v2608_v63, %v2607_v60 }
 0x1a6   :  { %v2593_v8 = vmul.f32 0.01, %v2567_v4  ;;  %v2570_v38 = vadd.f32 %v3700_v6, %v2473_v5  ;;  %v3637_v10 = vpop.f32.mrb[60].mxu0  ;;  %3780 = vmatmul.mubr.bf16.gmra.mrb[72].mxu0 %v2618_v34 }
 0x1a7   :  { %v3638_v11 = vpop.f32.mrb[61].mxu0  ;;  %v3701_v37 = vpop.f32.mrb[60].mxu1 }
 0x1a8   :  { %v2594_v12 = vmul.f32 0.01, %v2570_v38  ;;  %v3639_v24 = vadd.f32 %v3638_v11, %v3637_v10  ;;  %v3640_v13 = vpop.f32.mrb[62].mxu0  ;;  %v2609_v15 = vmax.f32 %v2567_v4, %v2593_v8  ;;  %v3702_v14 = vpop.f32.mrb[61].mxu1 }
 0x1a9   :  { %v3641_v16 = vpop.f32.mrb[63].mxu0  ;;  %v3703_v27 = vadd.f32 %v3702_v14, %v3701_v37  ;;  %v3704_v20 = vpop.f32.mrb[62].mxu1 }
 0x1aa   :  { %v2610_v18 = vmax.f32 %v2570_v38, %v2594_v12  ;;  %v2478_v19 = vadd.f32 %v3639_v24, %v4980_v35  ;;  %v3642_v17 = vadd.f32 %v3641_v16, %v3640_v13  ;;  %v3705_v21 = vpop.f32.mrb[63].mxu1  ;;  %v4143_v35 = vld [vmem:[#allocation7 + $0x30] sm:$0xff]  }
 0x1ab   :  { %v3706_v26 = vadd.f32 %v3705_v21, %v3704_v20  ;;  %3799 = vmatprep.subr.bf16.mxu1 %v4143_v35 }
 0x1ac   :  { %v2575_v23 = vadd.f32 %v3703_v27, %v2478_v19  ;;  %v2481_v25 = vadd.f32 %v3642_v17, %v4983_v39  ;;  %v2619_v28 = vpack.c.bf16 %v2610_v18, %v2609_v15  ;;  %3800 = vmatpush3.bf16.msra.mxu1 %v4143_v35  ;;  %v4145_v39 = vld [vmem:[%s5095_s7] sm:$0xff]  }
 0x1ad   :  { %3801 = vmatprep.subr.bf16.mxu1 %v4144_v54  ;;  %3819 = vmatprep.subr.bf16.mxu0 %v4145_v39 }
 0x1ae   :  { %v2595_v29 = vmul.f32 0.01, %v2575_v23  ;;  %v2578_v52 = vadd.f32 %v3706_v26, %v2481_v25  ;;  %3783 = vmatprep.mubr.bf16.mxu0 %v2619_v28  ;;  %3820 = vmatpush3.bf16.msra.mxu0 %v4145_v39 }
 0x1af   :  { %3821 = vmatprep.subr.bf16.mxu0 %v4146_v44 }
 0x1b0   :  { %v2596_v30 = vmul.f32 0.01, %v2578_v52  ;;  %v2611_v31 = vmax.f32 %v2575_v23, %v2595_v29  ;;  %3802 = vmatpush3.bf16.msra.mxu1 %v4144_v54 }
 0x1b1   :  { %3851 = vmatprep.subr.bf16.mxu1 %v4145_v39 }
 0x1b2   :  { %v2612_v32 = vmax.f32 %v2578_v52, %v2596_v30  ;;  %3822 = vmatpush3.bf16.msra.mxu0 %v4146_v44 }
 0x1b3   :  { %3823 = vmatprep.subr.bf16.mxu0 %v4147_v40 }
 0x1b4   :  { %v2620_v33 = vpack.c.bf16 %v2612_v32, %v2611_v31 }
 0x1b6   :  { %3784 = vmatmul.mubr.bf16.gmra.mrb[76].mxu0 %v2620_v33 }
 0x1b7   :  { %3824 = vmatpush3.bf16.msra.mxu0 %v4147_v40 }
 0x1b8   :  { %3825 = vmatprep.subr.bf16.mxu0 %v4148_v41 }
 0x1bb   :  { %3826 = vmatpush3.bf16.msra.mxu0 %v4148_v41 }
 0x1bc   :  { %3827 = vmatprep.subr.bf16.mxu0 %v4149_v42 }
 0x1bf   :  { %3828 = vmatpush3.bf16.msra.mxu0 %v4149_v42 }
 0x259   :  { %v3773_v45 = vpop.f32.mrb[64].mxu0 }
 0x25a   :  { %v2735_v46 = vadd.f32 %v3773_v45, %v5019_v43  ;;  %v2726_v47 = vpop.f32.mrb[65].mxu0 }
 0x25b   :  { %v2727_v48 = vadd.f32 %v5019_v43, %v2726_v47  ;;  %v3774_v49 = vpop.f32.mrb[66].mxu0 }
 0x25c   :  { %v2791_v50 = vmul.f32 0.01, %v2735_v46  ;;  %v2738_v51 = vadd.f32 %v3774_v49, %v5019_v43  ;;  %v2729_v53 = vpop.f32.mrb[67].mxu0 }
 0x25d   :  { %v2789_v55 = vmul.f32 0.01, %v2727_v48  ;;  %v2730_v56 = vadd.f32 %v5019_v43, %v2729_v53 }
 0x25e   :  { %v2792_v57 = vmul.f32 0.01, %v2738_v51  ;;  %v2807_v58 = vmax.f32 %v2735_v46, %v2791_v50 }
 0x25f   :  { %v2790_v7 = vmul.f32 0.01, %v2730_v56  ;;  %v2805_v59 = vmax.f32 %v2727_v48, %v2789_v55 }
 0x260   :  { %v2808_v22 = vmax.f32 %v2738_v51, %v2792_v57  ;;  %v4152_v57 = vld [vmem:[%s5095_s7 + $0x38] sm:$0xff]  }
 0x261   :  { %v2806_v60 = vmax.f32 %v2730_v56, %v2790_v7  ;;  %v4150_v56 = vld [vmem:[%s5095_s7 + $0x28] sm:$0xff]   ;;  %v5049_v7 = vld [vmem:[%s5094_s6] ss:$0 sm:$0xff] }
 0x262   :  { %v2822_v62 = vpack.c.bf16 %v2808_v22, %v2807_v58  ;;  %3829 = vmatprep.subr.bf16.mxu0 %v4150_v56 }
 0x263   :  { %v2821_v61 = vpack.c.bf16 %v2806_v60, %v2805_v59  ;;  %3830 = vmatpush3.bf16.msra.mxu0 %v4150_v56 }
 0x265   :  { %3803 = vmatprep.mubr.bf16.mxu1 %v2821_v61 }
 0x266   :  { %3804 = vmatmul.mubr.bf16.vlgmr.msra.gmra.mrb[64].mxu1 %v2822_v62 }
 0x267   :  { %3859 = vmatpush3.bf16.msra.mxu1 %v4145_v39 }
 0x268   :  { %3852 = vmatprep.subr.bf16.mxu1 %v4146_v44 }
 0x269   :  { %v3777_v63 = vpop.f32.mrb[68].mxu0 }
 0x26a   :  { %v2751_v9 = vadd.f32 %v3777_v63, %v5019_v43  ;;  %v2742_v1 = vpop.f32.mrb[69].mxu0 }
 0x26b   :  { %v2743_v2 = vadd.f32 %v5019_v43, %v2742_v1  ;;  %v3778_v0 = vpop.f32.mrb[70].mxu0  ;;  %3860 = vmatpush3.bf16.msra.mxu1 %v4146_v44 }
 0x26c   :  { %v2795_v3 = vmul.f32 0.01, %v2751_v9  ;;  %v2754_v4 = vadd.f32 %v3778_v0, %v5019_v43  ;;  %v2745_v5 = vpop.f32.mrb[71].mxu0  ;;  %3853 = vmatprep.subr.bf16.mxu1 %v4147_v40 }
 0x26d   :  { %v2793_v6 = vmul.f32 0.01, %v2743_v2  ;;  %v2746_v34 = vadd.f32 %v5019_v43, %v2745_v5 }
 0x26e   :  { %v2796_v8 = vmul.f32 0.01, %v2754_v4  ;;  %v2811_v10 = vmax.f32 %v2751_v9, %v2795_v3 }
 0x26f   :  { %v2794_v38 = vmul.f32 0.01, %v2746_v34  ;;  %3861 = vmatpush3.bf16.msra.mxu1 %v4147_v40  ;;  %v2809_v12 = vmax.f32 %v2743_v2, %v2793_v6 }
 0x270   :  { %v2812_v11 = vmax.f32 %v2754_v4, %v2796_v8  ;;  %3854 = vmatprep.subr.bf16.mxu1 %v4148_v41 }
 0x271   :  { %v2810_v37 = vmax.f32 %v2746_v34, %v2794_v38 }
 0x272   :  { %v2824_v24 = vpack.c.bf16 %v2812_v11, %v2811_v10 }
 0x273   :  { %v2823_v13 = vpack.c.bf16 %v2810_v37, %v2809_v12  ;;  %3862 = vmatpush3.bf16.msra.mxu1 %v4148_v41 }
 0x274   :  { %3855 = vmatprep.subr.bf16.mxu1 %v4149_v42 }
 0x275   :  { %3807 = vmatprep.mubr.bf16.mxu1 %v2823_v13 }
 0x276   :  { %3808 = vmatmul.mubr.bf16.gmra.mrb[68].mxu1 %v2824_v24 }
 0x277   :  { %3863 = vmatpush3.bf16.msra.mxu1 %v4149_v42 }
 0x278   :  { %3856 = vmatprep.subr.bf16.mxu1 %v4150_v56 }
 0x279   :  { %v3781_v15 = vpop.f32.mrb[72].mxu0 }
 0x27a   :  { %v2767_v14 = vadd.f32 %v3781_v15, %v5019_v43  ;;  %v2758_v16 = vpop.f32.mrb[73].mxu0 }
 0x27b   :  { %v2759_v18 = vadd.f32 %v5019_v43, %v2758_v16  ;;  %v3782_v19 = vpop.f32.mrb[74].mxu0  ;;  %3864 = vmatpush3.bf16.msra.mxu1 %v4150_v56 }
 0x27c   :  { %v2799_v27 = vmul.f32 0.01, %v2767_v14  ;;  %v2770_v20 = vadd.f32 %v3782_v19, %v5019_v43  ;;  %v2761_v17 = vpop.f32.mrb[75].mxu0 }
 0x27d   :  { %v2797_v21 = vmul.f32 0.01, %v2759_v18  ;;  %v2762_v23 = vadd.f32 %v5019_v43, %v2761_v17 }
 0x27e   :  { %v2800_v25 = vmul.f32 0.01, %v2770_v20  ;;  %v2815_v28 = vmax.f32 %v2767_v14, %v2799_v27 }
 0x27f   :  { %v2798_v26 = vmul.f32 0.01, %v2762_v23  ;;  %v2813_v52 = vmax.f32 %v2759_v18, %v2797_v21 }
 0x280   :  { %v2816_v29 = vmax.f32 %v2770_v20, %v2800_v25 }
 0x281   :  { %v2814_v30 = vmax.f32 %v2762_v23, %v2798_v26 }
 0x282   :  { %v2826_v31 = vpack.c.bf16 %v2816_v29, %v2815_v28 }
 0x283   :  { %v2825_v32 = vpack.c.bf16 %v2814_v30, %v2813_v52 }
 0x285   :  { %3811 = vmatprep.mubr.bf16.mxu1 %v2825_v32 }
 0x286   :  { %3812 = vmatmul.mubr.bf16.gmra.mrb[72].mxu1 %v2826_v31 }
 0x289   :  { %v3785_v33 = vpop.f32.mrb[76].mxu0 }
 0x28a   :  { %v2783_v36 = vadd.f32 %v3785_v33, %v5019_v43  ;;  %v2774_v35 = vpop.f32.mrb[77].mxu0 }
 0x28b   :  { %v2775_v54 = vadd.f32 %v5019_v43, %v2774_v35  ;;  %v3786_v39 = vpop.f32.mrb[78].mxu0 }
 0x28c   :  { %v2803_v44 = vmul.f32 0.01, %v2783_v36  ;;  %v2786_v40 = vadd.f32 %v3786_v39, %v5019_v43  ;;  %v2777_v41 = vpop.f32.mrb[79].mxu0 }
 0x28d   :  { %v2801_v42 = vmul.f32 0.01, %v2775_v54  ;;  %v2778_v45 = vadd.f32 %v5019_v43, %v2777_v41  ;;  %v4151_v43 = vld [vmem:[%s5095_s7 + $0x30] sm:$0xff]  }
 0x28e   :  { %v2804_v46 = vmul.f32 0.01, %v2786_v40  ;;  %v2819_v48 = vmax.f32 %v2783_v36, %v2803_v44  ;;  %3831 = vmatprep.subr.bf16.mxu0 %v4151_v43  ;;  %3857 = vmatprep.subr.bf16.mxu1 %v4151_v43 }
 0x28f   :  { %v2802_v47 = vmul.f32 0.01, %v2778_v45  ;;  %v2817_v50 = vmax.f32 %v2775_v54, %v2801_v42  ;;  %3832 = vmatpush3.bf16.msra.mxu0 %v4151_v43  ;;  %3865 = vmatpush3.bf16.msra.mxu1 %v4151_v43 }
 0x290   :  { %v2820_v49 = vmax.f32 %v2786_v40, %v2804_v46  ;;  %3833 = vmatprep.subr.bf16.mxu0 %v4152_v57  ;;  %3858 = vmatprep.subr.bf16.mxu1 %v4152_v57 }
 0x291   :  { %v2818_v51 = vmax.f32 %v2778_v45, %v2802_v47 }
 0x292   :  { %v2828_v53 = vpack.c.bf16 %v2820_v49, %v2819_v48 }
 0x293   :  { %v2827_v55 = vpack.c.bf16 %v2818_v51, %v2817_v50  ;;  %3834 = vmatpush3.bf16.msra.mxu0 %v4152_v57  ;;  %3866 = vmatpush3.bf16.msra.mxu1 %v4152_v57 }
 0x295   :  { %3815 = vmatprep.mubr.bf16.mxu1 %v2827_v55 }
 0x296   :  { %3816 = vmatmul.mubr.bf16.gmra.mrb[76].mxu1 %v2828_v53 }
 0x339   :  { %v3805_v58 = vpop.f32.mrb[64].mxu1 }
 0x33a   :  { %v2943_v22 = vadd.f32 %v3805_v58, %v5049_v7  ;;  %v2934_v59 = vpop.f32.mrb[65].mxu1 }
 0x33b   :  { %v2935_v60 = vadd.f32 %v5049_v7, %v2934_v59  ;;  %v3806_v62 = vpop.f32.mrb[66].mxu1 }
 0x33c   :  { %v2999_v61 = vmul.f32 0.01, %v2943_v22  ;;  %v2946_v63 = vadd.f32 %v3806_v62, %v5049_v7  ;;  %v2937_v9 = vpop.f32.mrb[67].mxu1 }
 0x33d   :  { %v2997_v1 = vmul.f32 0.01, %v2935_v60  ;;  %v2938_v2 = vadd.f32 %v5049_v7, %v2937_v9 }
 0x33e   :  { %v3000_v0 = vmul.f32 0.01, %v2946_v63  ;;  %v3015_v4 = vmax.f32 %v2943_v22, %v2999_v61 }
 0x33f   :  { %v2998_v3 = vmul.f32 0.01, %v2938_v2  ;;  %v3013_v6 = vmax.f32 %v2935_v60, %v2997_v1 }
 0x340   :  { %v3016_v5 = vmax.f32 %v2946_v63, %v3000_v0 }
 0x341   :  { %v3014_v34 = vmax.f32 %v2938_v2, %v2998_v3  ;;  %v5067_v2 = vld [vmem:[#allocation2] ss:$0 sm:$0xff] }
 0x342   :  { %v3030_v8 = vpack.c.bf16 %v3016_v5, %v3015_v4 }
 0x343   :  { %v3029_v38 = vpack.c.bf16 %v3014_v34, %v3013_v6 }
 0x345   :  { %3835 = vmatprep.mubr.bf16.mxu0 %v3029_v38 }
 0x346   :  { %3836 = vmatmul.mubr.bf16.vlgmr.msra.gmra.mrb[80].mxu0 %v3030_v8 }
 0x349   :  { %v3809_v10 = vpop.f32.mrb[68].mxu1 }
 0x34a   :  { %v2959_v11 = vadd.f32 %v3809_v10, %v5049_v7  ;;  %v2950_v12 = vpop.f32.mrb[69].mxu1 }
 0x34b   :  { %v2951_v37 = vadd.f32 %v5049_v7, %v2950_v12  ;;  %v3810_v24 = vpop.f32.mrb[70].mxu1 }
 0x34c   :  { %v3003_v13 = vmul.f32 0.01, %v2959_v11  ;;  %v2962_v15 = vadd.f32 %v3810_v24, %v5049_v7  ;;  %v2953_v14 = vpop.f32.mrb[71].mxu1 }
 0x34d   :  { %v3001_v16 = vmul.f32 0.01, %v2951_v37  ;;  %v2954_v18 = vadd.f32 %v5049_v7, %v2953_v14 }
 0x34e   :  { %v3004_v19 = vmul.f32 0.01, %v2962_v15  ;;  %v3019_v20 = vmax.f32 %v2959_v11, %v3003_v13 }
 0x34f   :  { %v3002_v27 = vmul.f32 0.01, %v2954_v18  ;;  %v3017_v21 = vmax.f32 %v2951_v37, %v3001_v16 }
 0x350   :  { %v3020_v17 = vmax.f32 %v2962_v15, %v3004_v19 }
 0x351   :  { %v3018_v23 = vmax.f32 %v2954_v18, %v3002_v27 }
 0x352   :  { %v3032_v25 = vpack.c.bf16 %v3020_v17, %v3019_v20 }
 0x353   :  { %v3031_v26 = vpack.c.bf16 %v3018_v23, %v3017_v21 }
 0x355   :  { %3839 = vmatprep.mubr.bf16.mxu0 %v3031_v26 }
 0x356   :  { %3840 = vmatmul.mubr.bf16.gmra.mrb[84].mxu0 %v3032_v25 }
 0x359   :  { %v3813_v28 = vpop.f32.mrb[72].mxu1 }
 0x35a   :  { %v2975_v29 = vadd.f32 %v3813_v28, %v5049_v7  ;;  %v2966_v52 = vpop.f32.mrb[73].mxu1 }
 0x35b   :  { %v2967_v30 = vadd.f32 %v5049_v7, %v2966_v52  ;;  %v3814_v31 = vpop.f32.mrb[74].mxu1 }
 0x35c   :  { %v3007_v32 = vmul.f32 0.01, %v2975_v29  ;;  %v2978_v33 = vadd.f32 %v3814_v31, %v5049_v7  ;;  %v2969_v36 = vpop.f32.mrb[75].mxu1 }
 0x35d   :  { %v3005_v35 = vmul.f32 0.01, %v2967_v30  ;;  %v2970_v54 = vadd.f32 %v5049_v7, %v2969_v36 }
 0x35e   :  { %v3008_v39 = vmul.f32 0.01, %v2978_v33  ;;  %v3023_v40 = vmax.f32 %v2975_v29, %v3007_v32 }
 0x35f   :  { %v3006_v44 = vmul.f32 0.01, %v2970_v54  ;;  %v3021_v42 = vmax.f32 %v2967_v30, %v3005_v35 }
 0x360   :  { %v3024_v41 = vmax.f32 %v2978_v33, %v3008_v39 }
 0x361   :  { %v3022_v45 = vmax.f32 %v2970_v54, %v3006_v44 }
 0x362   :  { %v3034_v46 = vpack.c.bf16 %v3024_v41, %v3023_v40 }
 0x363   :  { %v3033_v47 = vpack.c.bf16 %v3022_v45, %v3021_v42 }
 0x365   :  { %3843 = vmatprep.mubr.bf16.mxu1 %v3033_v47 }
 0x366   :  { %3844 = vmatmul.mubr.bf16.vlgmr.msra.gmra.mrb[80].mxu1 %v3034_v46 }
 0x369   :  { %v3817_v48 = vpop.f32.mrb[76].mxu1 }
 0x36a   :  { %v2991_v49 = vadd.f32 %v3817_v48, %v5049_v7  ;;  %v2982_v50 = vpop.f32.mrb[77].mxu1 }
 0x36b   :  { %v2983_v51 = vadd.f32 %v5049_v7, %v2982_v50  ;;  %v3818_v53 = vpop.f32.mrb[78].mxu1 }
 0x36c   :  { %v3011_v55 = vmul.f32 0.01, %v2991_v49  ;;  %v2994_v56 = vadd.f32 %v3818_v53, %v5049_v7  ;;  %v2985_v43 = vpop.f32.mrb[79].mxu1 }
 0x36d   :  { %v3009_v57 = vmul.f32 0.01, %v2983_v51  ;;  %v2986_v58 = vadd.f32 %v5049_v7, %v2985_v43 }
 0x36e   :  { %v3012_v22 = vmul.f32 0.01, %v2994_v56  ;;  %v3027_v60 = vmax.f32 %v2991_v49, %v3011_v55 }
 0x36f   :  { %v3010_v59 = vmul.f32 0.01, %v2986_v58  ;;  %v3025_v61 = vmax.f32 %v2983_v51, %v3009_v57 }
 0x370   :  { %v3028_v62 = vmax.f32 %v2994_v56, %v3012_v22 }
 0x371   :  { %v3026_v63 = vmax.f32 %v2986_v58, %v3010_v59 }
 0x372   :  { %v3036_v9 = vpack.c.bf16 %v3028_v62, %v3027_v60 }
 0x373   :  { %v3035_v1 = vpack.c.bf16 %v3026_v63, %v3025_v61 }
 0x375   :  { %3847 = vmatprep.mubr.bf16.mxu1 %v3035_v1 }
 0x376   :  { %3848 = vmatmul.mubr.bf16.gmra.mrb[84].mxu1 %v3036_v9 }
 0x419   :  { %v3837_v0 = vpop.f32.mrb[80].mxu0 }
 0x41a   :  { %v3151_v3 = vadd.f32 %v3837_v0, %v5067_v2  ;;  %v3142_v4 = vpop.f32.mrb[81].mxu0 }
 0x41b   :  { %v3143_v5 = vadd.f32 %v5067_v2, %v3142_v4  ;;  %v3838_v6 = vpop.f32.mrb[82].mxu0 }
 0x41c   :  { %v3207_v7 = vsub.f32 0.0, %v3151_v3  ;;  %v3154_v34 = vadd.f32 %v3838_v6, %v5067_v2  ;;  %v3145_v8 = vpop.f32.mrb[83].mxu0 }
 0x41d   :  { %v3205_v38 = vsub.f32 0.0, %v3143_v5  ;;  %v3146_v10 = vadd.f32 %v5067_v2, %v3145_v8 }
 0x41e   :  { %v3225_v11 = vmul.f32 1.442695, %v3207_v7  ;;  %v3208_v12 = vsub.f32 0.0, %v3154_v34 }
 0x41f   :  { %v3221_v37 = vmul.f32 1.442695, %v3205_v38  ;;  %v3206_v24 = vsub.f32 0.0, %v3146_v10 }
 0x420   :  { %4153 = vpow2.f32 %v3225_v11  ;;  %v3227_v13 = vmul.f32 1.442695, %v3208_v12 }
 0x421   :  { %4155 = vpow2.f32 %v3221_v37  ;;  %v3223_v15 = vmul.f32 1.442695, %v3206_v24 }
 0x422   :  { %4157 = vpow2.f32 %v3227_v13 }
 0x423   :  { %4159 = vpow2.f32 %v3223_v15 }
 0x429   :  { %v3841_v14 = vpop.f32.mrb[84].mxu0 }
 0x42a   :  { %v4154_v16 = vpop.eup %4153  ;;  %v3167_v18 = vadd.f32 %v3841_v14, %v5067_v2  ;;  %v3158_v19 = vpop.f32.mrb[85].mxu0 }
 0x42b   :  { %v4156_v27 = vpop.eup %4155  ;;  %v3255_v20 = vadd.f32 1.0, %v4154_v16  ;;  %v3159_v17 = vadd.f32 %v5067_v2, %v3158_v19  ;;  %v3842_v21 = vpop.f32.mrb[86].mxu0 }
 0x42c   :  { %v4158_v23 = vpop.eup %4157  ;;  %v3253_v25 = vadd.f32 1.0, %v4156_v27  ;;  %v3211_v26 = vsub.f32 0.0, %v3167_v18  ;;  %v3170_v28 = vadd.f32 %v3842_v21, %v5067_v2  ;;  %v3161_v29 = vpop.f32.mrb[87].mxu0 }
 0x42d   :  { %v4160_v52 = vpop.eup %4159  ;;  %4161 = vrcp.f32 %v3255_v20  ;;  %v3256_v30 = vadd.f32 1.0, %v4158_v23  ;;  %v3209_v31 = vsub.f32 0.0, %v3159_v17  ;;  %v3162_v32 = vadd.f32 %v5067_v2, %v3161_v29 }
 0x42e   :  { %4163 = vrcp.f32 %v3253_v25  ;;  %v3254_v33 = vadd.f32 1.0, %v4160_v52  ;;  %v3233_v36 = vmul.f32 1.442695, %v3211_v26  ;;  %v3212_v35 = vsub.f32 0.0, %v3170_v28 }
 0x42f   :  { %4165 = vrcp.f32 %v3256_v30  ;;  %v3229_v54 = vmul.f32 1.442695, %v3209_v31  ;;  %v3210_v39 = vsub.f32 0.0, %v3162_v32 }
 0x430   :  { %4167 = vrcp.f32 %v3254_v33  ;;  %v3235_v44 = vmul.f32 1.442695, %v3212_v35 }
 0x431   :  { %4169 = vpow2.f32 %v3233_v36  ;;  %v3231_v40 = vmul.f32 1.442695, %v3210_v39 }
 0x432   :  { %4171 = vpow2.f32 %v3229_v54 }
 0x433   :  { %4173 = vpow2.f32 %v3235_v44 }
 0x434   :  { %4175 = vpow2.f32 %v3231_v40 }
 0x437   :  { %v4162_v41 = vpop.eup %4161 }
 0x438   :  { %v4164_v42 = vpop.eup %4163 }
 0x439   :  { %v4166_v45 = vpop.eup %4165  ;;  %3302 = vst.msk [vmem:[#allocation8] sm:$0xff] %vm3301_vm0, %v4164_v42  ;;  %v3845_v46 = vpop.f32.mrb[80].mxu1 }
 0x43a   :  { %v4168_v47 = vpop.eup %4167  ;;  %v3183_v48 = vadd.f32 %v3845_v46, %v5067_v2  ;;  %v3174_v49 = vpop.f32.mrb[81].mxu1 }
 0x43b   :  { %v4170_v50 = vpop.eup %4169  ;;  %v3175_v51 = vadd.f32 %v5067_v2, %v3174_v49  ;;  %v3846_v53 = vpop.f32.mrb[82].mxu1 }
 0x43c   :  { %v4172_v55 = vpop.eup %4171  ;;  %v3259_v56 = vadd.f32 1.0, %v4170_v50  ;;  %v3215_v43 = vsub.f32 0.0, %v3183_v48  ;;  %v3186_v57 = vadd.f32 %v3846_v53, %v5067_v2  ;;  %v3177_v58 = vpop.f32.mrb[83].mxu1 }
 0x43d   :  { %v4174_v22 = vpop.eup %4173  ;;  %v3257_v59 = vadd.f32 1.0, %v4172_v55  ;;  %v3213_v60 = vsub.f32 0.0, %v3175_v51  ;;  %v3178_v62 = vadd.f32 %v5067_v2, %v3177_v58 }
 0x43e   :  { %v4176_v61 = vpop.eup %4175  ;;  %4177 = vrcp.f32 %v3259_v56  ;;  %v3260_v63 = vadd.f32 1.0, %v4174_v22  ;;  %v3241_v9 = vmul.f32 1.442695, %v3215_v43  ;;  %v3216_v1 = vsub.f32 0.0, %v3186_v57 }
 0x43f   :  { %4179 = vrcp.f32 %v3257_v59  ;;  %v3258_v0 = vadd.f32 1.0, %v4176_v61  ;;  %v3237_v3 = vmul.f32 1.442695, %v3213_v60  ;;  %v3214_v4 = vsub.f32 0.0, %v3178_v62 }
 0x440   :  { %v3335_v5 = vld [vmem:[#allocation8] sm:$0x3]  ;;  %4181 = vrcp.f32 %v3260_v63  ;;  %v3243_v6 = vmul.f32 1.442695, %v3216_v1 }
 0x441   :  { %3336 = vst [vmem:[%s5097_s9] sm:$0x3] %v3335_v5  ;;  %4183 = vrcp.f32 %v3258_v0  ;;  %v3239_v7 = vmul.f32 1.442695, %v3214_v4 }
 0x442   :  { %4185 = vpow2.f32 %v3241_v9 }
 0x443   :  { %4187 = vpow2.f32 %v3237_v3 }
 0x444   :  { %4189 = vpow2.f32 %v3243_v6 }
 0x445   :  { %4191 = vpow2.f32 %v3239_v7 }
 0x448   :  { %v4178_v34 = vpop.eup %4177 }
 0x449   :  { %v4180_v8 = vpop.eup %4179  ;;  %v3849_v38 = vpop.f32.mrb[84].mxu1 }
 0x44a   :  { %v4182_v10 = vpop.eup %4181  ;;  %v3199_v11 = vadd.f32 %v3849_v38, %v5067_v2  ;;  %v3190_v12 = vpop.f32.mrb[85].mxu1 }
 0x44b   :  { %v4184_v37 = vpop.eup %4183  ;;  %v3191_v24 = vadd.f32 %v5067_v2, %v3190_v12  ;;  %v3850_v13 = vpop.f32.mrb[86].mxu1 }
 0x44c   :  { %v4186_v15 = vpop.eup %4185  ;;  %v3219_v14 = vsub.f32 0.0, %v3199_v11  ;;  %v3202_v16 = vadd.f32 %v3850_v13, %v5067_v2  ;;  %v3193_v18 = vpop.f32.mrb[87].mxu1 }
 0x44d   :  { %v4188_v19 = vpop.eup %4187  ;;  %v3263_v27 = vadd.f32 1.0, %v4186_v15  ;;  %v3217_v20 = vsub.f32 0.0, %v3191_v24  ;;  %v3194_v17 = vadd.f32 %v5067_v2, %v3193_v18 }
 0x44e   :  { %v4190_v21 = vpop.eup %4189  ;;  %v3261_v23 = vadd.f32 1.0, %v4188_v19  ;;  %v3220_v25 = vsub.f32 0.0, %v3202_v16  ;;  %v3249_v29 = vmul.f32 1.442695, %v3219_v14 }
 0x44f   :  { %v4192_v26 = vpop.eup %4191  ;;  %4193 = vrcp.f32 %v3263_v27  ;;  %v3264_v28 = vadd.f32 1.0, %v4190_v21  ;;  %v3218_v52 = vsub.f32 0.0, %v3194_v17  ;;  %v3245_v31 = vmul.f32 1.442695, %v3217_v20 }
 0x450   :  { %4195 = vrcp.f32 %v3261_v23  ;;  %v3262_v30 = vadd.f32 1.0, %v4192_v26  ;;  %v3251_v32 = vmul.f32 1.442695, %v3220_v25 }
 0x451   :  { %4197 = vrcp.f32 %v3264_v28  ;;  %v3247_v33 = vmul.f32 1.442695, %v3218_v52 }
 0x452   :  { %4199 = vrcp.f32 %v3262_v30 }
 0x453   :  { %4201 = vpow2.f32 %v3249_v29 }
 0x454   :  { %4203 = vpow2.f32 %v3245_v31 }
 0x455   :  { %4205 = vpow2.f32 %v3251_v32 }
 0x456   :  { %4207 = vpow2.f32 %v3247_v33 }
 0x459   :  { %v4194_v2 = vpop.eup %4193 }
 0x45a   :  { %v4196_v36 = vpop.eup %4195 }
 0x45b   :  { %v4198_v35 = vpop.eup %4197 }
 0x45c   :  { %v4200_v54 = vpop.eup %4199 }
 0x45d   :  { %v4202_v39 = vpop.eup %4201 }
 0x45e   :  { %v4204_v44 = vpop.eup %4203  ;;  %v3267_v40 = vadd.f32 1.0, %v4202_v39 }
 0x45f   :  { %v4206_v41 = vpop.eup %4205  ;;  %v3265_v42 = vadd.f32 1.0, %v4204_v44 }
 0x460   :  { %v4208_v45 = vpop.eup %4207  ;;  %4209 = vrcp.f32 %v3267_v40  ;;  %v3268_v46 = vadd.f32 1.0, %v4206_v41 }
 0x461   :  { %4211 = vrcp.f32 %v3265_v42  ;;  %v3266_v47 = vadd.f32 1.0, %v4208_v45 }
 0x462   :  { %4213 = vrcp.f32 %v3268_v46 }
 0x463   :  { %4215 = vrcp.f32 %v3266_v47 }
 0x46a   :  { %v4210_v48 = vpop.eup %4209 }
 0x46b   :  { %v4212_v49 = vpop.eup %4211 }
 0x46c   :  { %v4214_v50 = vpop.eup %4213 }
 0x46d   :  { %v4216_v51 = vpop.eup %4215 }
 0x46e   :  { %3353 = vsyncpa [#allocation4], 1 }
 0x46f   :  { %3354 = vsyncpa [#allocation6], 1 }

</bundles_post_ra>
